<compile_context>
chip_gen: v5e
topology: v5e:2x2
jax: 0.10.0
libtpu: 0.0.40
codegen_flags: <defaults>
</compile_context>

<pallas_src>
import functools
import math

import numpy as np
import jax
import jax.numpy as jnp
from jax.experimental import pallas as pl
from jax.experimental.pallas import tpu as pltpu


# ----------------------------------------------------------------------------
# host-side helpers (hoisted & cached: not rebuilt per forward call)
# ----------------------------------------------------------------------------
def _interp_matrix_np(in_size, out_size):
    """1-D bilinear interpolation matrix, PyTorch align_corners=False semantics."""
    scale = in_size / out_size
    dst = np.arange(out_size, dtype=np.float64)
    src = np.maximum(scale * (dst + 0.5) - 0.5, 0.0)      # PyTorch clamps negative src to 0
    i0 = np.minimum(np.floor(src).astype(np.int64), in_size - 1)
    i1 = np.minimum(i0 + 1, in_size - 1)
    lam = src - i0
    m = np.zeros((out_size, in_size), dtype=np.float64)
    np.add.at(m, (np.arange(out_size), i0), 1.0 - lam)
    np.add.at(m, (np.arange(out_size), i1), lam)
    return m


@functools.lru_cache(maxsize=None)
def _col_interp_matrix_t(win, wout, dtype_name):
    """(win, wout) width-interpolation matrix R_x^T; out = x @ R_x^T."""
    return jnp.asarray(_interp_matrix_np(win, wout).T, dtype=dtype_name)


@functools.lru_cache(maxsize=None)
def _row_blend_pairs(in_size, out_size):
    """Static per-output-row 2-tap blend (h0, h1, lam) -- PyTorch align_corners=False."""
    scale = in_size / out_size
    pairs = []
    for y in range(out_size):
        src = max(scale * (y + 0.5) - 0.5, 0.0)
        h0 = min(int(math.floor(src)), in_size - 1)
        h1 = min(h0 + 1, in_size - 1)
        pairs.append((h0, h1, float(src - h0)))
    return tuple(pairs)


def _kaiming_uniform_conv3x3(key, cin, cout):
    """Kaiming-uniform(a=1)-ish init; weight stored per-tap (9, Cout, Cin), bias (Cout, 1).

    NOTE(checkpoint porting): a PyTorch Conv2d weight (Cout, Cin, 3, 3) maps to this layout via
    w.permute(2, 3, 0, 1).reshape(9, Cout, Cin)   (tap index t = kh*3 + kw).
    """
    kw, kb = jax.random.split(key)
    fan_in = 9 * cin
    bw = math.sqrt(3.0 / fan_in)
    w = jax.random.uniform(kw, (9, cout, cin), jnp.float32, -bw, bw)
    bb = 1.0 / math.sqrt(fan_in)
    b = jax.random.uniform(kb, (cout, 1), jnp.float32, -bb, bb)
    return w, b


# ----------------------------------------------------------------------------
# in-kernel compute helpers (VMEM values, channels-first flat (C, H*W) layout)
# ----------------------------------------------------------------------------
def _shift_zero_fill(x, s):
    """result[:, i] = x[:, i + s] if 0 <= i + s < HW else 0   (s: static Python int)."""
    c, hw = x.shape
    if s == 0:
        return x
    if s > 0:
        return jnp.concatenate([x[:, s:], jnp.zeros((c, s), x.dtype)], axis=1)
    return jnp.concatenate([jnp.zeros((c, -s), x.dtype), x[:, :hw + s]], axis=1)


def _col_edge_masks(hw, w_sp):
    """(not_first_col, not_last_col) boolean (1, hw) masks -- hoisted once per spatial size."""
    col = jax.lax.broadcasted_iota(jnp.int32, (1, hw), 1) % w_sp
    return col >= 1, col <= w_sp - 2


def _col_shift(x, dw, col_mask):
    """Exact zero-padded one-column shift: out[:, i] = x[:, i + dw] if col+dw in range else 0."""
    hw = x.shape[1]
    if hw % 128 == 0:
        # Circular lane rotate (XLU slot, equivalent to jnp.roll); the wrapped lanes are exactly
        # the lanes the column mask zeroes, so one roll + one select is an exact padded shift.
        shifted = pltpu.roll(x, (-dw) % hw, axis=1)
    else:
        shifted = _shift_zero_fill(x, dw)
    return jnp.where(col_mask, shifted, 0.0)


def _conv3x3(x, w9, b, col_masks, w_sp, mxu_dtype, relu=True):
    """3x3 stride-1 'same' conv on channels-first flat activations; one MXU matmul per tap.

    x: (Cin, H*W) f32;  w9: (9, Cout, Cin), tap t = (dh+1)*3 + (dw+1);  b: (Cout, 1).
    The zero-filled +/-W row shift alone is exact at row boundaries, so only the two
    column-edge masks (for dw = +/-1) are needed; they are built once per spatial size.
    """
    not_first, not_last = col_masks
    cols = (_col_shift(x, -1, not_first).astype(mxu_dtype),
            x.astype(mxu_dtype),
            _col_shift(x, +1, not_last).astype(mxu_dtype))
    acc = None
    for ti, dh in enumerate((-1, 0, 1)):
        for tj in range(3):
            src = _shift_zero_fill(cols[tj], dh * w_sp)
            d = jnp.dot(w9[ti * 3 + tj], src, preferred_element_type=jnp.float32)
            acc = d if acc is None else acc + d
    y = acc + b
    return jnp.maximum(y, 0.0) if relu else y


def _bilinear_resize(x_flat, rx_t, h_pairs, hin, win, wout, mxu_dtype):
    """Separable bilinear resize (PyTorch align_corners=False) on flat (C, H*W) activations.

    Width: one 2-D MXU matmul against rx_t (win, wout) applied to an aligned (C*hin, win) stack.
    Height: per output row, a static host-precomputed 2-tap blend (h0, h1, lam).
    Only 2-D matmuls + static slices/concats are used (no dense kron resize matrix, no
    in-kernel reshape / rank-3 contractions).
    """
    c = x_flat.shape[0]
    rows = [x_flat[:, h * win:(h + 1) * win] for h in range(hin)]
    stacked = jnp.concatenate(rows, axis=0).astype(mxu_dtype)          # (C*hin, win)
    t = jnp.dot(stacked, rx_t, preferred_element_type=jnp.float32)     # (C*hin, wout)
    out_rows = []
    for (h0, h1, lam) in h_pairs:
        r0 = t[h0 * c:(h0 + 1) * c, :]
        if lam == 0.0 or h0 == h1:
            out_rows.append(r0)
        else:
            r1 = t[h1 * c:(h1 + 1) * c, :]
            out_rows.append((1.0 - lam) * r0 + lam * r1)
    return jnp.concatenate(out_rows, axis=1)                           # (C, hout*wout)


# ----------------------------------------------------------------------------
# Module
# ----------------------------------------------------------------------------
class ProtoNetWithBoundaryPallas:
    """Eval-mode ProtoNetWithBoundary; the entire refine+tower pipeline is one fused Pallas kernel."""

    def __init__(self, key, in_features, feature_channels, planes=8, num_bases=4, num_convs=2,
                 mxu_dtype=jnp.float32, vmem_limit_bytes=None):
        self.in_features = tuple(in_features)
        self.planes = planes
        self.mask_dim = num_bases + 1
        self.num_convs = num_convs
        self.mxu_dtype = mxu_dtype                  # bf16 recommended on v6e/v7x (f32 accumulation)
        self.vmem_limit_bytes = vmem_limit_bytes    # set ~40-100 MiB for production spatial sizes

        L = len(self.in_features)
        keys = jax.random.split(key, L + num_convs + 2)
        ki = 0
        # refine convs: 3x3, C_f -> planes, + ReLU  (per-level weights: different Cin per level)
        self.refine_w = []
        refine_b = []
        for f in self.in_features:
            w, b = _kaiming_uniform_conv3x3(keys[ki], feature_channels[f], planes)
            ki += 1
            self.refine_w.append(w.astype(mxu_dtype))
            refine_b.append(b)
        # tower: num_convs x (3x3 planes->planes + ReLU), Upsample 2x, 3x3 + ReLU, 1x1 -> mask_dim
        tower_w, tower_b = [], []
        for _ in range(num_convs + 1):              # num_convs tower convs + post-upsample conv
            w, b = _kaiming_uniform_conv3x3(keys[ki], planes, planes)
            ki += 1
            tower_w.append(w)
            tower_b.append(b)
        self.tower_w = jnp.stack(tower_w).astype(mxu_dtype)      # (num_convs+1, 9, P, P)
        # packed biases: [refine_0..refine_{L-1}, tower_0..tower_{nc-1}, post_up]  -> (n, P, 1)
        self.biases = jnp.stack(refine_b + tower_b)              # f32
        # final 1x1 conv (plain Conv2d: bias, no activation)
        kw, kb = jax.random.split(keys[ki])
        bw = math.sqrt(3.0 / planes)
        self.final_w = jax.random.uniform(kw, (self.mask_dim, planes), jnp.float32,
                                          -bw, bw).astype(mxu_dtype)
        bb = 1.0 / math.sqrt(planes)
        self.final_b = jax.random.uniform(kb, (self.mask_dim, 1), jnp.float32, -bb, bb)

    def forward(self, features_nchw):
        """features_nchw: dict name -> (N, C, H, W) float32.  Returns (outputs, losses)."""
        feats = [features_nchw[f] for f in self.in_features]
        N = feats[0].shape[0]
        shapes = [(f.shape[1], f.shape[2], f.shape[3]) for f in feats]   # (C, H, W) per level
        _, H0, W0 = shapes[0]
        Hup, Wup = 2 * H0, 2 * W0
        L = len(feats)
        nc = self.num_convs
        md = self.mask_dim
        mxu = self.mxu_dtype
        dtype_name = np.dtype(mxu).name

        # ---- assemble pallas_call operands + specs (glue: NCHW -> (N, C, H*W) is a pure reshape)
        inputs, in_specs = [], []

        def add_const(arr):
            inputs.append(arr)
            in_specs.append(pl.BlockSpec(arr.shape, lambda n, _nd=arr.ndim: (0,) * _nd))

        # features: squeezed batch dim -> kernel refs are lane-dense 2-D (C, H*W)
        for f, (c, h, w) in zip(feats, shapes):
            inputs.append(f.reshape(N, c, h * w))
            in_specs.append(pl.BlockSpec((pl.Squeezed(), c, h * w), lambda n: (n, 0, 0)))

        for w9 in self.refine_w:
            add_const(w9)                                  # (9, P, Cin_i)
        add_const(self.tower_w)                            # (nc+1, 9, P, P)
        add_const(self.biases)                             # (L+nc+1, P, 1)
        add_const(self.final_w)                            # (md, P)
        add_const(self.final_b)                            # (md, 1)

        # separable resize constants: only the 1-D width interp matrices are tensors; the height
        # blends are static (h0, h1, lam) schedules folded into the trace.
        resize_meta = []
        for i in range(1, L):                              # refine[i] output -> level-0 size
            _, hi, wi = shapes[i]
            add_const(_col_interp_matrix_t(wi, W0, dtype_name))
            resize_meta.append((hi, wi, _row_blend_pairs(hi, H0)))
        add_const(_col_interp_matrix_t(W0, Wup, dtype_name))   # tower Upsample(scale_factor=2)
        up_pairs = _row_blend_pairs(H0, Hup)

        # ---- fused kernel: refine convs + resize-adds + tower convs + 2x upsample + 1x1 conv
        def kernel(*refs):
            p = 0
            feat = refs[p:p + L]; p += L
            rw = refs[p:p + L]; p += L
            tw_ref, pb_ref, fw_ref, fb_ref = refs[p:p + 4]; p += 4
            rxs = refs[p:p + (L - 1)]; p += L - 1
            rxu_ref = refs[p]; p += 1
            out_ref = refs[p]

            # column-edge masks, hoisted per spatial size (shared by all convs at that size)
            cm0 = _col_edge_masks(H0 * W0, W0)

            # x = relu(refine[0](feat0))
            x = _conv3x3(feat[0][...].astype(jnp.float32), rw[0][...], pb_ref[0], cm0, W0, mxu)
            # x += bilinear_resize(relu(refine[i](feat_i)), size(x))   (align_corners=False)
            for i in range(1, L):
                hi, wi, pairs = resize_meta[i - 1]
                cmi = _col_edge_masks(hi * wi, wi)
                y = _conv3x3(feat[i][...].astype(jnp.float32), rw[i][...], pb_ref[i],
                             cmi, wi, mxu)
                y = _bilinear_resize(y, rxs[i - 1][...], pairs, hi, wi, W0, mxu)
                x = x + y
            # tower convs
            for j in range(nc):
                x = _conv3x3(x, tw_ref[j], pb_ref[L + j], cm0, W0, mxu)
            # Upsample(scale_factor=2, mode='bilinear', align_corners=False)
            x = _bilinear_resize(x, rxu_ref[...], up_pairs, H0, W0, Wup, mxu)
            # post-upsample 3x3 conv + ReLU
            cmu = _col_edge_masks(Hup * Wup, Wup)
            x = _conv3x3(x, tw_ref[nc], pb_ref[L + nc], cmu, Wup, mxu)
            # final 1x1 conv (bias, no activation); store is lane-dense (Hup*Wup mult. of 128)
            x = jnp.dot(fw_ref[...], x.astype(mxu), preferred_element_type=jnp.float32) \
                + fb_ref[...]
            out_ref[...] = x.astype(out_ref.dtype)

        cp_kwargs = dict(dimension_semantics=("parallel",))
        if self.vmem_limit_bytes is not None:
            cp_kwargs["vmem_limit_bytes"] = self.vmem_limit_bytes

        out = pl.pallas_call(
            kernel,
            out_shape=jax.ShapeDtypeStruct((N, md, Hup * Wup), jnp.float32),
            grid=(N,),
            in_specs=in_specs,
            out_specs=pl.BlockSpec((pl.Squeezed(), md, Hup * Wup), lambda n: (n, 0, 0)),
            compiler_params=pltpu.CompilerParams(**cp_kwargs),
        )(*inputs)

        bases_nchw = out.reshape(N, md, Hup, Wup)      # NCHW, like PyTorch
        outputs = {"bases": [bases_nchw]}
        losses = {}   # eval mode: loss_on / condition_loss_on / boundary-loss branches not taken
        return outputs, losses


# ----------------------------------------------------------------------------
# Main
# ----------------------------------------------------------------------------
if __name__ == "__main__":
    key = jax.random.PRNGKey(0)
    k_p3, k_p5, k_params = jax.random.split(key, 3)

    # Two pyramid levels (NCHW, like PyTorch): p3 = (2, 4, 16, 16), p5 = (2, 6, 8, 8)
    features = {
        "p3": jax.random.normal(k_p3, (2, 4, 16, 16), jnp.float32),
        "p5": jax.random.normal(k_p5, (2, 6, 8, 8), jnp.float32),
    }

    model = ProtoNetWithBoundaryPallas(
        k_params,
        in_features=("p3", "p5"),
        feature_channels={"p3": 4, "p5": 6},
        planes=8,       # cfg.MODEL.BASIS_MODULE.CONVS_DIM
        num_bases=4,    # cfg.MODEL.BASIS_MODULE.NUM_BASES  -> mask_dim = 5
        num_convs=2,    # cfg.MODEL.BASIS_MODULE.NUM_CONVS
        # mxu_dtype=jnp.bfloat16 and vmem_limit_bytes=~40-100 MiB recommended for v6e/v7x at
        # production spatial sizes; kept at the defaults here for an exact f32 demo run.
    )

    outputs, losses = model.forward(features)
    bases = jax.block_until_ready(outputs["bases"][0])

    # mask_dim = 5, spatial doubled by the tower's Upsample(scale_factor=2): 16 -> 32
    assert bases.shape == (2, 5, 32, 32), bases.shape
    assert bases.dtype == jnp.float32
    assert losses == {}
    print("KERNEL_OK")
</pallas_src>

<mosaic_0001>
module attributes {stable_mosaic.version = 11 : i64} {
  func.func @kernel(%arg0: i32, %arg1: memref<1x4x256xf32, #tpu.memory_space<vmem>>, %arg2: memref<1x6x64xf32, #tpu.memory_space<vmem>>, %arg3: memref<9x8x4xf32, #tpu.memory_space<vmem>>, %arg4: memref<9x8x6xf32, #tpu.memory_space<vmem>>, %arg5: memref<3x9x8x8xf32, #tpu.memory_space<vmem>>, %arg6: memref<5x8x1xf32, #tpu.memory_space<vmem>>, %arg7: memref<5x8xf32, #tpu.memory_space<vmem>>, %arg8: memref<5x1xf32, #tpu.memory_space<vmem>>, %arg9: memref<8x16xf32, #tpu.memory_space<vmem>>, %arg10: memref<16x32xf32, #tpu.memory_space<vmem>>, %arg11: memref<1x5x1024xf32, #tpu.memory_space<vmem>>) attributes {dimension_semantics = [#tpu.dimension_semantics<parallel>], iteration_bounds = array<i64: 2>, scalar_prefetch = 0 : i64, scratch_operands = 0 : i64, tpu.core_type = #tpu.core_type<tc>, window_params = [{transform_indices = @transform_0, window_bounds = array<i64: 1, 4, 256>}, {transform_indices = @transform_1, window_bounds = array<i64: 1, 6, 64>}, {pipeline_mode = #tpu.pipeline_mode<synchronous>, transform_indices = @transform_2, window_bounds = array<i64: 9, 8, 4>}, {pipeline_mode = #tpu.pipeline_mode<synchronous>, transform_indices = @transform_3, window_bounds = array<i64: 9, 8, 6>}, {pipeline_mode = #tpu.pipeline_mode<synchronous>, transform_indices = @transform_4, window_bounds = array<i64: 3, 9, 8, 8>}, {pipeline_mode = #tpu.pipeline_mode<synchronous>, transform_indices = @transform_5, window_bounds = array<i64: 5, 8, 1>}, {pipeline_mode = #tpu.pipeline_mode<synchronous>, transform_indices = @transform_6, window_bounds = array<i64: 5, 8>}, {pipeline_mode = #tpu.pipeline_mode<synchronous>, transform_indices = @transform_7, window_bounds = array<i64: 5, 1>}, {pipeline_mode = #tpu.pipeline_mode<synchronous>, transform_indices = @transform_8, window_bounds = array<i64: 8, 16>}, {pipeline_mode = #tpu.pipeline_mode<synchronous>, transform_indices = @transform_9, window_bounds = array<i64: 16, 32>}, {transform_indices = @transform_10, window_bounds = array<i64: 1, 5, 1024>}]} {
    %0 = tpu.iota {dimensions = array<i32: 1>} : vector<1x256xi32>
    %c16_i32 = arith.constant 16 : i32
    %c0_i32 = arith.constant 0 : i32
    %1 = arith.cmpi eq, %c16_i32, %c0_i32 : i32
    %c1_i32 = arith.constant 1 : i32
    %2 = arith.select %1, %c1_i32, %c16_i32 : i32
    %3 = vector.broadcast %2 : i32 to vector<1x256xi32>
    %4 = arith.remsi %0, %3 : vector<1x256xi32>
    %c0_i32_0 = arith.constant 0 : i32
    %5 = vector.broadcast %c0_i32_0 : i32 to vector<1x256xi32>
    %6 = arith.cmpi ne, %4, %5 : vector<1x256xi32>
    %c0_i32_1 = arith.constant 0 : i32
    %7 = vector.broadcast %c0_i32_1 : i32 to vector<1x256xi32>
    %8 = arith.cmpi slt, %4, %7 : vector<1x256xi32>
    %c0_i32_2 = arith.constant 0 : i32
    %9 = arith.cmpi slt, %2, %c0_i32_2 : i32
    %10 = vector.broadcast %9 : i1 to vector<1x256xi1>
    %11 = vector.broadcast %10 : vector<1x256xi1> to vector<1x256xi1>
    %12 = arith.xori %8, %11 : vector<1x256xi1>
    %13 = arith.andi %12, %6 : vector<1x256xi1>
    %14 = vector.broadcast %2 : i32 to vector<1x256xi32>
    %15 = arith.addi %4, %14 : vector<1x256xi32>
    %16 = arith.select %13, %15, %4 : vector<1x256xi1>, vector<1x256xi32>
    %c1_i32_3 = arith.constant 1 : i32
    %17 = vector.broadcast %c1_i32_3 : i32 to vector<1x256xi32>
    %18 = arith.cmpi sge, %16, %17 : vector<1x256xi32>
    %c14_i32 = arith.constant 14 : i32
    %19 = vector.broadcast %c14_i32 : i32 to vector<1x256xi32>
    %20 = arith.cmpi sle, %16, %19 : vector<1x256xi32>
    %c0 = arith.constant 0 : index
    %c0_4 = arith.constant 0 : index
    %c0_5 = arith.constant 0 : index
    %21 = vector.load %arg1[%c0, %c0_4, %c0_5] : memref<1x4x256xf32, #tpu.memory_space<vmem>>, vector<1x4x256xf32>
    %22 = vector.shape_cast %21 : vector<1x4x256xf32> to vector<4x256xf32>
    %c0_6 = arith.constant 0 : index
    %c0_7 = arith.constant 0 : index
    %c0_8 = arith.constant 0 : index
    %23 = vector.load %arg3[%c0_6, %c0_7, %c0_8] : memref<9x8x4xf32, #tpu.memory_space<vmem>>, vector<9x8x4xf32>
    %c0_9 = arith.constant 0 : index
    %c0_10 = arith.constant 0 : index
    %c0_11 = arith.constant 0 : index
    %24 = vector.load %arg6[%c0_9, %c0_10, %c0_11] : memref<5x8x1xf32, #tpu.memory_space<vmem>>, vector<1x8x1xf32>
    %25 = vector.shape_cast %24 : vector<1x8x1xf32> to vector<8x1xf32>
    %c1_i32_12 = arith.constant 1 : i32
    %26 = tpu.dynamic_rotate %22 by %c1_i32_12 dim 1 : vector<4x256xf32>, i32 -> vector<4x256xf32>
    %cst = arith.constant 0.000000e+00 : f32
    %27 = vector.shape_cast %18 : vector<1x256xi1> to vector<1x256xi1>
    %28 = vector.broadcast %27 : vector<1x256xi1> to vector<4x256xi1>
    %29 = vector.broadcast %cst : f32 to vector<4x256xf32>
    %30 = arith.select %28, %26, %29 : vector<4x256xi1>, vector<4x256xf32>
    %c255_i32 = arith.constant 255 : i32
    %31 = tpu.dynamic_rotate %22 by %c255_i32 dim 1 : vector<4x256xf32>, i32 -> vector<4x256xf32>
    %cst_13 = arith.constant 0.000000e+00 : f32
    %32 = vector.shape_cast %20 : vector<1x256xi1> to vector<1x256xi1>
    %33 = vector.broadcast %32 : vector<1x256xi1> to vector<4x256xi1>
    %34 = vector.broadcast %cst_13 : f32 to vector<4x256xf32>
    %35 = arith.select %33, %31, %34 : vector<4x256xi1>, vector<4x256xf32>
    %cst_14 = arith.constant 0.000000e+00 : f32
    %36 = vector.broadcast %cst_14 : f32 to vector<4x16xf32>
    %37 = vector.extract_strided_slice %30 {offsets = [0, 0], sizes = [4, 240], strides = [1, 1]} : vector<4x256xf32> to vector<4x240xf32>
    %38 = tpu.concatenate %36, %37 in 1 : vector<4x16xf32>, vector<4x240xf32> -> vector<4x256xf32>
    %39 = vector.extract_strided_slice %23 {offsets = [0, 0, 0], sizes = [1, 8, 4], strides = [1, 1, 1]} : vector<9x8x4xf32> to vector<1x8x4xf32>
    %40 = vector.shape_cast %39 : vector<1x8x4xf32> to vector<8x4xf32>
    %cst_15 = arith.constant dense<0.000000e+00> : vector<8x256xf32>
    %41 = tpu.matmul %40, %38, %cst_15 {dimension_numbers = #tpu.dot_dimension_numbers<[1], [0], [0], [1], [0, 0, 1, 1], [], []>} : vector<8x4xf32>, vector<4x256xf32>, vector<8x256xf32> -> vector<8x256xf32>
    %cst_16 = arith.constant 0.000000e+00 : f32
    %42 = vector.broadcast %cst_16 : f32 to vector<4x16xf32>
    %43 = vector.extract_strided_slice %22 {offsets = [0, 0], sizes = [4, 240], strides = [1, 1]} : vector<4x256xf32> to vector<4x240xf32>
    %44 = tpu.concatenate %42, %43 in 1 : vector<4x16xf32>, vector<4x240xf32> -> vector<4x256xf32>
    %45 = vector.extract_strided_slice %23 {offsets = [1, 0, 0], sizes = [1, 8, 4], strides = [1, 1, 1]} : vector<9x8x4xf32> to vector<1x8x4xf32>
    %46 = vector.shape_cast %45 : vector<1x8x4xf32> to vector<8x4xf32>
    %cst_17 = arith.constant dense<0.000000e+00> : vector<8x256xf32>
    %47 = tpu.matmul %46, %44, %cst_17 {dimension_numbers = #tpu.dot_dimension_numbers<[1], [0], [0], [1], [0, 0, 1, 1], [], []>} : vector<8x4xf32>, vector<4x256xf32>, vector<8x256xf32> -> vector<8x256xf32>
    %48 = arith.addf %41, %47 : vector<8x256xf32>
    %cst_18 = arith.constant 0.000000e+00 : f32
    %49 = vector.broadcast %cst_18 : f32 to vector<4x16xf32>
    %50 = vector.extract_strided_slice %35 {offsets = [0, 0], sizes = [4, 240], strides = [1, 1]} : vector<4x256xf32> to vector<4x240xf32>
    %51 = tpu.concatenate %49, %50 in 1 : vector<4x16xf32>, vector<4x240xf32> -> vector<4x256xf32>
    %52 = vector.extract_strided_slice %23 {offsets = [2, 0, 0], sizes = [1, 8, 4], strides = [1, 1, 1]} : vector<9x8x4xf32> to vector<1x8x4xf32>
    %53 = vector.shape_cast %52 : vector<1x8x4xf32> to vector<8x4xf32>
    %cst_19 = arith.constant dense<0.000000e+00> : vector<8x256xf32>
    %54 = tpu.matmul %53, %51, %cst_19 {dimension_numbers = #tpu.dot_dimension_numbers<[1], [0], [0], [1], [0, 0, 1, 1], [], []>} : vector<8x4xf32>, vector<4x256xf32>, vector<8x256xf32> -> vector<8x256xf32>
    %55 = arith.addf %48, %54 : vector<8x256xf32>
    %56 = vector.extract_strided_slice %23 {offsets = [3, 0, 0], sizes = [1, 8, 4], strides = [1, 1, 1]} : vector<9x8x4xf32> to vector<1x8x4xf32>
    %57 = vector.shape_cast %56 : vector<1x8x4xf32> to vector<8x4xf32>
    %cst_20 = arith.constant dense<0.000000e+00> : vector<8x256xf32>
    %58 = tpu.matmul %57, %30, %cst_20 {dimension_numbers = #tpu.dot_dimension_numbers<[1], [0], [0], [1], [0, 0, 1, 1], [], []>} : vector<8x4xf32>, vector<4x256xf32>, vector<8x256xf32> -> vector<8x256xf32>
    %59 = arith.addf %55, %58 : vector<8x256xf32>
    %60 = vector.extract_strided_slice %23 {offsets = [4, 0, 0], sizes = [1, 8, 4], strides = [1, 1, 1]} : vector<9x8x4xf32> to vector<1x8x4xf32>
    %61 = vector.shape_cast %60 : vector<1x8x4xf32> to vector<8x4xf32>
    %cst_21 = arith.constant dense<0.000000e+00> : vector<8x256xf32>
    %62 = tpu.matmul %61, %22, %cst_21 {dimension_numbers = #tpu.dot_dimension_numbers<[1], [0], [0], [1], [0, 0, 1, 1], [], []>} : vector<8x4xf32>, vector<4x256xf32>, vector<8x256xf32> -> vector<8x256xf32>
    %63 = arith.addf %59, %62 : vector<8x256xf32>
    %64 = vector.extract_strided_slice %23 {offsets = [5, 0, 0], sizes = [1, 8, 4], strides = [1, 1, 1]} : vector<9x8x4xf32> to vector<1x8x4xf32>
    %65 = vector.shape_cast %64 : vector<1x8x4xf32> to vector<8x4xf32>
    %cst_22 = arith.constant dense<0.000000e+00> : vector<8x256xf32>
    %66 = tpu.matmul %65, %35, %cst_22 {dimension_numbers = #tpu.dot_dimension_numbers<[1], [0], [0], [1], [0, 0, 1, 1], [], []>} : vector<8x4xf32>, vector<4x256xf32>, vector<8x256xf32> -> vector<8x256xf32>
    %67 = arith.addf %63, %66 : vector<8x256xf32>
    %68 = vector.extract_strided_slice %30 {offsets = [0, 16], sizes = [4, 240], strides = [1, 1]} : vector<4x256xf32> to vector<4x240xf32>
    %cst_23 = arith.constant 0.000000e+00 : f32
    %69 = vector.broadcast %cst_23 : f32 to vector<4x16xf32>
    %70 = tpu.concatenate %68, %69 in 1 : vector<4x240xf32>, vector<4x16xf32> -> vector<4x256xf32>
    %71 = vector.extract_strided_slice %23 {offsets = [6, 0, 0], sizes = [1, 8, 4], strides = [1, 1, 1]} : vector<9x8x4xf32> to vector<1x8x4xf32>
    %72 = vector.shape_cast %71 : vector<1x8x4xf32> to vector<8x4xf32>
    %cst_24 = arith.constant dense<0.000000e+00> : vector<8x256xf32>
    %73 = tpu.matmul %72, %70, %cst_24 {dimension_numbers = #tpu.dot_dimension_numbers<[1], [0], [0], [1], [0, 0, 1, 1], [], []>} : vector<8x4xf32>, vector<4x256xf32>, vector<8x256xf32> -> vector<8x256xf32>
    %74 = arith.addf %67, %73 : vector<8x256xf32>
    %75 = vector.extract_strided_slice %22 {offsets = [0, 16], sizes = [4, 240], strides = [1, 1]} : vector<4x256xf32> to vector<4x240xf32>
    %cst_25 = arith.constant 0.000000e+00 : f32
    %76 = vector.broadcast %cst_25 : f32 to vector<4x16xf32>
    %77 = tpu.concatenate %75, %76 in 1 : vector<4x240xf32>, vector<4x16xf32> -> vector<4x256xf32>
    %78 = vector.extract_strided_slice %23 {offsets = [7, 0, 0], sizes = [1, 8, 4], strides = [1, 1, 1]} : vector<9x8x4xf32> to vector<1x8x4xf32>
    %79 = vector.shape_cast %78 : vector<1x8x4xf32> to vector<8x4xf32>
    %cst_26 = arith.constant dense<0.000000e+00> : vector<8x256xf32>
    %80 = tpu.matmul %79, %77, %cst_26 {dimension_numbers = #tpu.dot_dimension_numbers<[1], [0], [0], [1], [0, 0, 1, 1], [], []>} : vector<8x4xf32>, vector<4x256xf32>, vector<8x256xf32> -> vector<8x256xf32>
    %81 = arith.addf %74, %80 : vector<8x256xf32>
    %82 = vector.extract_strided_slice %35 {offsets = [0, 16], sizes = [4, 240], strides = [1, 1]} : vector<4x256xf32> to vector<4x240xf32>
    %cst_27 = arith.constant 0.000000e+00 : f32
    %83 = vector.broadcast %cst_27 : f32 to vector<4x16xf32>
    %84 = tpu.concatenate %82, %83 in 1 : vector<4x240xf32>, vector<4x16xf32> -> vector<4x256xf32>
    %85 = vector.extract_strided_slice %23 {offsets = [8, 0, 0], sizes = [1, 8, 4], strides = [1, 1, 1]} : vector<9x8x4xf32> to vector<1x8x4xf32>
    %86 = vector.shape_cast %85 : vector<1x8x4xf32> to vector<8x4xf32>
    %cst_28 = arith.constant dense<0.000000e+00> : vector<8x256xf32>
    %87 = tpu.matmul %86, %84, %cst_28 {dimension_numbers = #tpu.dot_dimension_numbers<[1], [0], [0], [1], [0, 0, 1, 1], [], []>} : vector<8x4xf32>, vector<4x256xf32>, vector<8x256xf32> -> vector<8x256xf32>
    %88 = arith.addf %81, %87 : vector<8x256xf32>
    %89 = vector.broadcast %25 : vector<8x1xf32> to vector<8x256xf32>
    %90 = arith.addf %88, %89 : vector<8x256xf32>
    %cst_29 = arith.constant 0.000000e+00 : f32
    %91 = vector.broadcast %cst_29 : f32 to vector<8x256xf32>
    %92 = arith.maximumf %90, %91 : vector<8x256xf32>
    %93 = tpu.iota {dimensions = array<i32: 1>} : vector<1x64xi32>
    %c8_i32 = arith.constant 8 : i32
    %c0_i32_30 = arith.constant 0 : i32
    %94 = arith.cmpi eq, %c8_i32, %c0_i32_30 : i32
    %c1_i32_31 = arith.constant 1 : i32
    %95 = arith.select %94, %c1_i32_31, %c8_i32 : i32
    %96 = vector.broadcast %95 : i32 to vector<1x64xi32>
    %97 = arith.remsi %93, %96 : vector<1x64xi32>
    %c0_i32_32 = arith.constant 0 : i32
    %98 = vector.broadcast %c0_i32_32 : i32 to vector<1x64xi32>
    %99 = arith.cmpi ne, %97, %98 : vector<1x64xi32>
    %c0_i32_33 = arith.constant 0 : i32
    %100 = vector.broadcast %c0_i32_33 : i32 to vector<1x64xi32>
    %101 = arith.cmpi slt, %97, %100 : vector<1x64xi32>
    %c0_i32_34 = arith.constant 0 : i32
    %102 = arith.cmpi slt, %95, %c0_i32_34 : i32
    %103 = vector.broadcast %102 : i1 to vector<1x64xi1>
    %104 = vector.broadcast %103 : vector<1x64xi1> to vector<1x64xi1>
    %105 = arith.xori %101, %104 : vector<1x64xi1>
    %106 = arith.andi %105, %99 : vector<1x64xi1>
    %107 = vector.broadcast %95 : i32 to vector<1x64xi32>
    %108 = arith.addi %97, %107 : vector<1x64xi32>
    %109 = arith.select %106, %108, %97 : vector<1x64xi1>, vector<1x64xi32>
    %c1_i32_35 = arith.constant 1 : i32
    %110 = vector.broadcast %c1_i32_35 : i32 to vector<1x64xi32>
    %111 = arith.cmpi sge, %109, %110 : vector<1x64xi32>
    %c6_i32 = arith.constant 6 : i32
    %112 = vector.broadcast %c6_i32 : i32 to vector<1x64xi32>
    %113 = arith.cmpi sle, %109, %112 : vector<1x64xi32>
    %c0_36 = arith.constant 0 : index
    %c0_37 = arith.constant 0 : index
    %c0_38 = arith.constant 0 : index
    %114 = vector.load %arg2[%c0_36, %c0_37, %c0_38] : memref<1x6x64xf32, #tpu.memory_space<vmem>>, vector<1x6x64xf32>
    %115 = vector.shape_cast %114 : vector<1x6x64xf32> to vector<6x64xf32>
    %c0_39 = arith.constant 0 : index
    %c0_40 = arith.constant 0 : index
    %c0_41 = arith.constant 0 : index
    %116 = vector.load %arg4[%c0_39, %c0_40, %c0_41] : memref<9x8x6xf32, #tpu.memory_space<vmem>>, vector<9x8x6xf32>
    %c1 = arith.constant 1 : index
    %c0_42 = arith.constant 0 : index
    %c0_43 = arith.constant 0 : index
    %117 = vector.load %arg6[%c1, %c0_42, %c0_43] : memref<5x8x1xf32, #tpu.memory_space<vmem>>, vector<1x8x1xf32>
    %118 = vector.shape_cast %117 : vector<1x8x1xf32> to vector<8x1xf32>
    %cst_44 = arith.constant 0.000000e+00 : f32
    %119 = vector.broadcast %cst_44 : f32 to vector<6x1xf32>
    %120 = vector.extract_strided_slice %115 {offsets = [0, 0], sizes = [6, 63], strides = [1, 1]} : vector<6x64xf32> to vector<6x63xf32>
    %121 = tpu.concatenate %119, %120 in 1 : vector<6x1xf32>, vector<6x63xf32> -> vector<6x64xf32>
    %cst_45 = arith.constant 0.000000e+00 : f32
    %122 = vector.shape_cast %111 : vector<1x64xi1> to vector<1x64xi1>
    %123 = vector.broadcast %122 : vector<1x64xi1> to vector<6x64xi1>
    %124 = vector.broadcast %cst_45 : f32 to vector<6x64xf32>
    %125 = arith.select %123, %121, %124 : vector<6x64xi1>, vector<6x64xf32>
    %126 = vector.extract_strided_slice %115 {offsets = [0, 1], sizes = [6, 63], strides = [1, 1]} : vector<6x64xf32> to vector<6x63xf32>
    %cst_46 = arith.constant 0.000000e+00 : f32
    %127 = vector.broadcast %cst_46 : f32 to vector<6x1xf32>
    %128 = tpu.concatenate %126, %127 in 1 : vector<6x63xf32>, vector<6x1xf32> -> vector<6x64xf32>
    %cst_47 = arith.constant 0.000000e+00 : f32
    %129 = vector.shape_cast %113 : vector<1x64xi1> to vector<1x64xi1>
    %130 = vector.broadcast %129 : vector<1x64xi1> to vector<6x64xi1>
    %131 = vector.broadcast %cst_47 : f32 to vector<6x64xf32>
    %132 = arith.select %130, %128, %131 : vector<6x64xi1>, vector<6x64xf32>
    %cst_48 = arith.constant 0.000000e+00 : f32
    %133 = vector.broadcast %cst_48 : f32 to vector<6x8xf32>
    %134 = vector.extract_strided_slice %125 {offsets = [0, 0], sizes = [6, 56], strides = [1, 1]} : vector<6x64xf32> to vector<6x56xf32>
    %135 = tpu.concatenate %133, %134 in 1 : vector<6x8xf32>, vector<6x56xf32> -> vector<6x64xf32>
    %136 = vector.extract_strided_slice %116 {offsets = [0, 0, 0], sizes = [1, 8, 6], strides = [1, 1, 1]} : vector<9x8x6xf32> to vector<1x8x6xf32>
    %137 = vector.shape_cast %136 : vector<1x8x6xf32> to vector<8x6xf32>
    %cst_49 = arith.constant dense<0.000000e+00> : vector<8x64xf32>
    %138 = tpu.matmul %137, %135, %cst_49 {dimension_numbers = #tpu.dot_dimension_numbers<[1], [0], [0], [1], [0, 0, 1, 1], [], []>} : vector<8x6xf32>, vector<6x64xf32>, vector<8x64xf32> -> vector<8x64xf32>
    %cst_50 = arith.constant 0.000000e+00 : f32
    %139 = vector.broadcast %cst_50 : f32 to vector<6x8xf32>
    %140 = vector.extract_strided_slice %115 {offsets = [0, 0], sizes = [6, 56], strides = [1, 1]} : vector<6x64xf32> to vector<6x56xf32>
    %141 = tpu.concatenate %139, %140 in 1 : vector<6x8xf32>, vector<6x56xf32> -> vector<6x64xf32>
    %142 = vector.extract_strided_slice %116 {offsets = [1, 0, 0], sizes = [1, 8, 6], strides = [1, 1, 1]} : vector<9x8x6xf32> to vector<1x8x6xf32>
    %143 = vector.shape_cast %142 : vector<1x8x6xf32> to vector<8x6xf32>
    %cst_51 = arith.constant dense<0.000000e+00> : vector<8x64xf32>
    %144 = tpu.matmul %143, %141, %cst_51 {dimension_numbers = #tpu.dot_dimension_numbers<[1], [0], [0], [1], [0, 0, 1, 1], [], []>} : vector<8x6xf32>, vector<6x64xf32>, vector<8x64xf32> -> vector<8x64xf32>
    %145 = arith.addf %138, %144 : vector<8x64xf32>
    %cst_52 = arith.constant 0.000000e+00 : f32
    %146 = vector.broadcast %cst_52 : f32 to vector<6x8xf32>
    %147 = vector.extract_strided_slice %132 {offsets = [0, 0], sizes = [6, 56], strides = [1, 1]} : vector<6x64xf32> to vector<6x56xf32>
    %148 = tpu.concatenate %146, %147 in 1 : vector<6x8xf32>, vector<6x56xf32> -> vector<6x64xf32>
    %149 = vector.extract_strided_slice %116 {offsets = [2, 0, 0], sizes = [1, 8, 6], strides = [1, 1, 1]} : vector<9x8x6xf32> to vector<1x8x6xf32>
    %150 = vector.shape_cast %149 : vector<1x8x6xf32> to vector<8x6xf32>
    %cst_53 = arith.constant dense<0.000000e+00> : vector<8x64xf32>
    %151 = tpu.matmul %150, %148, %cst_53 {dimension_numbers = #tpu.dot_dimension_numbers<[1], [0], [0], [1], [0, 0, 1, 1], [], []>} : vector<8x6xf32>, vector<6x64xf32>, vector<8x64xf32> -> vector<8x64xf32>
    %152 = arith.addf %145, %151 : vector<8x64xf32>
    %153 = vector.extract_strided_slice %116 {offsets = [3, 0, 0], sizes = [1, 8, 6], strides = [1, 1, 1]} : vector<9x8x6xf32> to vector<1x8x6xf32>
    %154 = vector.shape_cast %153 : vector<1x8x6xf32> to vector<8x6xf32>
    %cst_54 = arith.constant dense<0.000000e+00> : vector<8x64xf32>
    %155 = tpu.matmul %154, %125, %cst_54 {dimension_numbers = #tpu.dot_dimension_numbers<[1], [0], [0], [1], [0, 0, 1, 1], [], []>} : vector<8x6xf32>, vector<6x64xf32>, vector<8x64xf32> -> vector<8x64xf32>
    %156 = arith.addf %152, %155 : vector<8x64xf32>
    %157 = vector.extract_strided_slice %116 {offsets = [4, 0, 0], sizes = [1, 8, 6], strides = [1, 1, 1]} : vector<9x8x6xf32> to vector<1x8x6xf32>
    %158 = vector.shape_cast %157 : vector<1x8x6xf32> to vector<8x6xf32>
    %cst_55 = arith.constant dense<0.000000e+00> : vector<8x64xf32>
    %159 = tpu.matmul %158, %115, %cst_55 {dimension_numbers = #tpu.dot_dimension_numbers<[1], [0], [0], [1], [0, 0, 1, 1], [], []>} : vector<8x6xf32>, vector<6x64xf32>, vector<8x64xf32> -> vector<8x64xf32>
    %160 = arith.addf %156, %159 : vector<8x64xf32>
    %161 = vector.extract_strided_slice %116 {offsets = [5, 0, 0], sizes = [1, 8, 6], strides = [1, 1, 1]} : vector<9x8x6xf32> to vector<1x8x6xf32>
    %162 = vector.shape_cast %161 : vector<1x8x6xf32> to vector<8x6xf32>
    %cst_56 = arith.constant dense<0.000000e+00> : vector<8x64xf32>
    %163 = tpu.matmul %162, %132, %cst_56 {dimension_numbers = #tpu.dot_dimension_numbers<[1], [0], [0], [1], [0, 0, 1, 1], [], []>} : vector<8x6xf32>, vector<6x64xf32>, vector<8x64xf32> -> vector<8x64xf32>
    %164 = arith.addf %160, %163 : vector<8x64xf32>
    %165 = vector.extract_strided_slice %125 {offsets = [0, 8], sizes = [6, 56], strides = [1, 1]} : vector<6x64xf32> to vector<6x56xf32>
    %cst_57 = arith.constant 0.000000e+00 : f32
    %166 = vector.broadcast %cst_57 : f32 to vector<6x8xf32>
    %167 = tpu.concatenate %165, %166 in 1 : vector<6x56xf32>, vector<6x8xf32> -> vector<6x64xf32>
    %168 = vector.extract_strided_slice %116 {offsets = [6, 0, 0], sizes = [1, 8, 6], strides = [1, 1, 1]} : vector<9x8x6xf32> to vector<1x8x6xf32>
    %169 = vector.shape_cast %168 : vector<1x8x6xf32> to vector<8x6xf32>
    %cst_58 = arith.constant dense<0.000000e+00> : vector<8x64xf32>
    %170 = tpu.matmul %169, %167, %cst_58 {dimension_numbers = #tpu.dot_dimension_numbers<[1], [0], [0], [1], [0, 0, 1, 1], [], []>} : vector<8x6xf32>, vector<6x64xf32>, vector<8x64xf32> -> vector<8x64xf32>
    %171 = arith.addf %164, %170 : vector<8x64xf32>
    %172 = vector.extract_strided_slice %115 {offsets = [0, 8], sizes = [6, 56], strides = [1, 1]} : vector<6x64xf32> to vector<6x56xf32>
    %cst_59 = arith.constant 0.000000e+00 : f32
    %173 = vector.broadcast %cst_59 : f32 to vector<6x8xf32>
    %174 = tpu.concatenate %172, %173 in 1 : vector<6x56xf32>, vector<6x8xf32> -> vector<6x64xf32>
    %175 = vector.extract_strided_slice %116 {offsets = [7, 0, 0], sizes = [1, 8, 6], strides = [1, 1, 1]} : vector<9x8x6xf32> to vector<1x8x6xf32>
    %176 = vector.shape_cast %175 : vector<1x8x6xf32> to vector<8x6xf32>
    %cst_60 = arith.constant dense<0.000000e+00> : vector<8x64xf32>
    %177 = tpu.matmul %176, %174, %cst_60 {dimension_numbers = #tpu.dot_dimension_numbers<[1], [0], [0], [1], [0, 0, 1, 1], [], []>} : vector<8x6xf32>, vector<6x64xf32>, vector<8x64xf32> -> vector<8x64xf32>
    %178 = arith.addf %171, %177 : vector<8x64xf32>
    %179 = vector.extract_strided_slice %132 {offsets = [0, 8], sizes = [6, 56], strides = [1, 1]} : vector<6x64xf32> to vector<6x56xf32>
    %cst_61 = arith.constant 0.000000e+00 : f32
    %180 = vector.broadcast %cst_61 : f32 to vector<6x8xf32>
    %181 = tpu.concatenate %179, %180 in 1 : vector<6x56xf32>, vector<6x8xf32> -> vector<6x64xf32>
    %182 = vector.extract_strided_slice %116 {offsets = [8, 0, 0], sizes = [1, 8, 6], strides = [1, 1, 1]} : vector<9x8x6xf32> to vector<1x8x6xf32>
    %183 = vector.shape_cast %182 : vector<1x8x6xf32> to vector<8x6xf32>
    %cst_62 = arith.constant dense<0.000000e+00> : vector<8x64xf32>
    %184 = tpu.matmul %183, %181, %cst_62 {dimension_numbers = #tpu.dot_dimension_numbers<[1], [0], [0], [1], [0, 0, 1, 1], [], []>} : vector<8x6xf32>, vector<6x64xf32>, vector<8x64xf32> -> vector<8x64xf32>
    %185 = arith.addf %178, %184 : vector<8x64xf32>
    %186 = vector.broadcast %118 : vector<8x1xf32> to vector<8x64xf32>
    %187 = arith.addf %185, %186 : vector<8x64xf32>
    %cst_63 = arith.constant 0.000000e+00 : f32
    %188 = vector.broadcast %cst_63 : f32 to vector<8x64xf32>
    %189 = arith.maximumf %187, %188 : vector<8x64xf32>
    %c0_64 = arith.constant 0 : index
    %c0_65 = arith.constant 0 : index
    %190 = vector.load %arg9[%c0_64, %c0_65] : memref<8x16xf32, #tpu.memory_space<vmem>>, vector<8x16xf32>
    %191 = vector.extract_strided_slice %189 {offsets = [0, 0], sizes = [8, 8], strides = [1, 1]} : vector<8x64xf32> to vector<8x8xf32>
    %192 = vector.extract_strided_slice %189 {offsets = [0, 8], sizes = [8, 8], strides = [1, 1]} : vector<8x64xf32> to vector<8x8xf32>
    %193 = vector.extract_strided_slice %189 {offsets = [0, 16], sizes = [8, 8], strides = [1, 1]} : vector<8x64xf32> to vector<8x8xf32>
    %194 = vector.extract_strided_slice %189 {offsets = [0, 24], sizes = [8, 8], strides = [1, 1]} : vector<8x64xf32> to vector<8x8xf32>
    %195 = vector.extract_strided_slice %189 {offsets = [0, 32], sizes = [8, 8], strides = [1, 1]} : vector<8x64xf32> to vector<8x8xf32>
    %196 = vector.extract_strided_slice %189 {offsets = [0, 40], sizes = [8, 8], strides = [1, 1]} : vector<8x64xf32> to vector<8x8xf32>
    %197 = vector.extract_strided_slice %189 {offsets = [0, 48], sizes = [8, 8], strides = [1, 1]} : vector<8x64xf32> to vector<8x8xf32>
    %198 = vector.extract_strided_slice %189 {offsets = [0, 56], sizes = [8, 8], strides = [1, 1]} : vector<8x64xf32> to vector<8x8xf32>
    %199 = tpu.concatenate %191, %192, %193, %194, %195, %196, %197, %198 in 0 : vector<8x8xf32>, vector<8x8xf32>, vector<8x8xf32>, vector<8x8xf32>, vector<8x8xf32>, vector<8x8xf32>, vector<8x8xf32>, vector<8x8xf32> -> vector<64x8xf32>
    %cst_66 = arith.constant dense<0.000000e+00> : vector<64x16xf32>
    %200 = tpu.matmul %199, %190, %cst_66 {dimension_numbers = #tpu.dot_dimension_numbers<[1], [0], [0], [1], [0, 0, 1, 1], [], []>} : vector<64x8xf32>, vector<8x16xf32>, vector<64x16xf32> -> vector<64x16xf32>
    %201 = vector.extract_strided_slice %200 {offsets = [0, 0], sizes = [8, 16], strides = [1, 1]} : vector<64x16xf32> to vector<8x16xf32>
    %202 = vector.extract_strided_slice %200 {offsets = [0, 0], sizes = [8, 16], strides = [1, 1]} : vector<64x16xf32> to vector<8x16xf32>
    %203 = vector.extract_strided_slice %200 {offsets = [8, 0], sizes = [8, 16], strides = [1, 1]} : vector<64x16xf32> to vector<8x16xf32>
    %cst_67 = arith.constant 7.500000e-01 : f32
    %204 = vector.broadcast %cst_67 : f32 to vector<8x16xf32>
    %205 = arith.mulf %204, %202 : vector<8x16xf32>
    %cst_68 = arith.constant 2.500000e-01 : f32
    %206 = vector.broadcast %cst_68 : f32 to vector<8x16xf32>
    %207 = arith.mulf %206, %203 : vector<8x16xf32>
    %208 = arith.addf %205, %207 : vector<8x16xf32>
    %209 = vector.extract_strided_slice %200 {offsets = [0, 0], sizes = [8, 16], strides = [1, 1]} : vector<64x16xf32> to vector<8x16xf32>
    %210 = vector.extract_strided_slice %200 {offsets = [8, 0], sizes = [8, 16], strides = [1, 1]} : vector<64x16xf32> to vector<8x16xf32>
    %cst_69 = arith.constant 2.500000e-01 : f32
    %211 = vector.broadcast %cst_69 : f32 to vector<8x16xf32>
    %212 = arith.mulf %211, %209 : vector<8x16xf32>
    %cst_70 = arith.constant 7.500000e-01 : f32
    %213 = vector.broadcast %cst_70 : f32 to vector<8x16xf32>
    %214 = arith.mulf %213, %210 : vector<8x16xf32>
    %215 = arith.addf %212, %214 : vector<8x16xf32>
    %216 = vector.extract_strided_slice %200 {offsets = [8, 0], sizes = [8, 16], strides = [1, 1]} : vector<64x16xf32> to vector<8x16xf32>
    %217 = vector.extract_strided_slice %200 {offsets = [16, 0], sizes = [8, 16], strides = [1, 1]} : vector<64x16xf32> to vector<8x16xf32>
    %cst_71 = arith.constant 7.500000e-01 : f32
    %218 = vector.broadcast %cst_71 : f32 to vector<8x16xf32>
    %219 = arith.mulf %218, %216 : vector<8x16xf32>
    %cst_72 = arith.constant 2.500000e-01 : f32
    %220 = vector.broadcast %cst_72 : f32 to vector<8x16xf32>
    %221 = arith.mulf %220, %217 : vector<8x16xf32>
    %222 = arith.addf %219, %221 : vector<8x16xf32>
    %223 = vector.extract_strided_slice %200 {offsets = [8, 0], sizes = [8, 16], strides = [1, 1]} : vector<64x16xf32> to vector<8x16xf32>
    %224 = vector.extract_strided_slice %200 {offsets = [16, 0], sizes = [8, 16], strides = [1, 1]} : vector<64x16xf32> to vector<8x16xf32>
    %cst_73 = arith.constant 2.500000e-01 : f32
    %225 = vector.broadcast %cst_73 : f32 to vector<8x16xf32>
    %226 = arith.mulf %225, %223 : vector<8x16xf32>
    %cst_74 = arith.constant 7.500000e-01 : f32
    %227 = vector.broadcast %cst_74 : f32 to vector<8x16xf32>
    %228 = arith.mulf %227, %224 : vector<8x16xf32>
    %229 = arith.addf %226, %228 : vector<8x16xf32>
    %230 = vector.extract_strided_slice %200 {offsets = [16, 0], sizes = [8, 16], strides = [1, 1]} : vector<64x16xf32> to vector<8x16xf32>
    %231 = vector.extract_strided_slice %200 {offsets = [24, 0], sizes = [8, 16], strides = [1, 1]} : vector<64x16xf32> to vector<8x16xf32>
    %cst_75 = arith.constant 7.500000e-01 : f32
    %232 = vector.broadcast %cst_75 : f32 to vector<8x16xf32>
    %233 = arith.mulf %232, %230 : vector<8x16xf32>
    %cst_76 = arith.constant 2.500000e-01 : f32
    %234 = vector.broadcast %cst_76 : f32 to vector<8x16xf32>
    %235 = arith.mulf %234, %231 : vector<8x16xf32>
    %236 = arith.addf %233, %235 : vector<8x16xf32>
    %237 = vector.extract_strided_slice %200 {offsets = [16, 0], sizes = [8, 16], strides = [1, 1]} : vector<64x16xf32> to vector<8x16xf32>
    %238 = vector.extract_strided_slice %200 {offsets = [24, 0], sizes = [8, 16], strides = [1, 1]} : vector<64x16xf32> to vector<8x16xf32>
    %cst_77 = arith.constant 2.500000e-01 : f32
    %239 = vector.broadcast %cst_77 : f32 to vector<8x16xf32>
    %240 = arith.mulf %239, %237 : vector<8x16xf32>
    %cst_78 = arith.constant 7.500000e-01 : f32
    %241 = vector.broadcast %cst_78 : f32 to vector<8x16xf32>
    %242 = arith.mulf %241, %238 : vector<8x16xf32>
    %243 = arith.addf %240, %242 : vector<8x16xf32>
    %244 = vector.extract_strided_slice %200 {offsets = [24, 0], sizes = [8, 16], strides = [1, 1]} : vector<64x16xf32> to vector<8x16xf32>
    %245 = vector.extract_strided_slice %200 {offsets = [32, 0], sizes = [8, 16], strides = [1, 1]} : vector<64x16xf32> to vector<8x16xf32>
    %cst_79 = arith.constant 7.500000e-01 : f32
    %246 = vector.broadcast %cst_79 : f32 to vector<8x16xf32>
    %247 = arith.mulf %246, %244 : vector<8x16xf32>
    %cst_80 = arith.constant 2.500000e-01 : f32
    %248 = vector.broadcast %cst_80 : f32 to vector<8x16xf32>
    %249 = arith.mulf %248, %245 : vector<8x16xf32>
    %250 = arith.addf %247, %249 : vector<8x16xf32>
    %251 = vector.extract_strided_slice %200 {offsets = [24, 0], sizes = [8, 16], strides = [1, 1]} : vector<64x16xf32> to vector<8x16xf32>
    %252 = vector.extract_strided_slice %200 {offsets = [32, 0], sizes = [8, 16], strides = [1, 1]} : vector<64x16xf32> to vector<8x16xf32>
    %cst_81 = arith.constant 2.500000e-01 : f32
    %253 = vector.broadcast %cst_81 : f32 to vector<8x16xf32>
    %254 = arith.mulf %253, %251 : vector<8x16xf32>
    %cst_82 = arith.constant 7.500000e-01 : f32
    %255 = vector.broadcast %cst_82 : f32 to vector<8x16xf32>
    %256 = arith.mulf %255, %252 : vector<8x16xf32>
    %257 = arith.addf %254, %256 : vector<8x16xf32>
    %258 = vector.extract_strided_slice %200 {offsets = [32, 0], sizes = [8, 16], strides = [1, 1]} : vector<64x16xf32> to vector<8x16xf32>
    %259 = vector.extract_strided_slice %200 {offsets = [40, 0], sizes = [8, 16], strides = [1, 1]} : vector<64x16xf32> to vector<8x16xf32>
    %cst_83 = arith.constant 7.500000e-01 : f32
    %260 = vector.broadcast %cst_83 : f32 to vector<8x16xf32>
    %261 = arith.mulf %260, %258 : vector<8x16xf32>
    %cst_84 = arith.constant 2.500000e-01 : f32
    %262 = vector.broadcast %cst_84 : f32 to vector<8x16xf32>
    %263 = arith.mulf %262, %259 : vector<8x16xf32>
    %264 = arith.addf %261, %263 : vector<8x16xf32>
    %265 = vector.extract_strided_slice %200 {offsets = [32, 0], sizes = [8, 16], strides = [1, 1]} : vector<64x16xf32> to vector<8x16xf32>
    %266 = vector.extract_strided_slice %200 {offsets = [40, 0], sizes = [8, 16], strides = [1, 1]} : vector<64x16xf32> to vector<8x16xf32>
    %cst_85 = arith.constant 2.500000e-01 : f32
    %267 = vector.broadcast %cst_85 : f32 to vector<8x16xf32>
    %268 = arith.mulf %267, %265 : vector<8x16xf32>
    %cst_86 = arith.constant 7.500000e-01 : f32
    %269 = vector.broadcast %cst_86 : f32 to vector<8x16xf32>
    %270 = arith.mulf %269, %266 : vector<8x16xf32>
    %271 = arith.addf %268, %270 : vector<8x16xf32>
    %272 = vector.extract_strided_slice %200 {offsets = [40, 0], sizes = [8, 16], strides = [1, 1]} : vector<64x16xf32> to vector<8x16xf32>
    %273 = vector.extract_strided_slice %200 {offsets = [48, 0], sizes = [8, 16], strides = [1, 1]} : vector<64x16xf32> to vector<8x16xf32>
    %cst_87 = arith.constant 7.500000e-01 : f32
    %274 = vector.broadcast %cst_87 : f32 to vector<8x16xf32>
    %275 = arith.mulf %274, %272 : vector<8x16xf32>
    %cst_88 = arith.constant 2.500000e-01 : f32
    %276 = vector.broadcast %cst_88 : f32 to vector<8x16xf32>
    %277 = arith.mulf %276, %273 : vector<8x16xf32>
    %278 = arith.addf %275, %277 : vector<8x16xf32>
    %279 = vector.extract_strided_slice %200 {offsets = [40, 0], sizes = [8, 16], strides = [1, 1]} : vector<64x16xf32> to vector<8x16xf32>
    %280 = vector.extract_strided_slice %200 {offsets = [48, 0], sizes = [8, 16], strides = [1, 1]} : vector<64x16xf32> to vector<8x16xf32>
    %cst_89 = arith.constant 2.500000e-01 : f32
    %281 = vector.broadcast %cst_89 : f32 to vector<8x16xf32>
    %282 = arith.mulf %281, %279 : vector<8x16xf32>
    %cst_90 = arith.constant 7.500000e-01 : f32
    %283 = vector.broadcast %cst_90 : f32 to vector<8x16xf32>
    %284 = arith.mulf %283, %280 : vector<8x16xf32>
    %285 = arith.addf %282, %284 : vector<8x16xf32>
    %286 = vector.extract_strided_slice %200 {offsets = [48, 0], sizes = [8, 16], strides = [1, 1]} : vector<64x16xf32> to vector<8x16xf32>
    %287 = vector.extract_strided_slice %200 {offsets = [56, 0], sizes = [8, 16], strides = [1, 1]} : vector<64x16xf32> to vector<8x16xf32>
    %cst_91 = arith.constant 7.500000e-01 : f32
    %288 = vector.broadcast %cst_91 : f32 to vector<8x16xf32>
    %289 = arith.mulf %288, %286 : vector<8x16xf32>
    %cst_92 = arith.constant 2.500000e-01 : f32
    %290 = vector.broadcast %cst_92 : f32 to vector<8x16xf32>
    %291 = arith.mulf %290, %287 : vector<8x16xf32>
    %292 = arith.addf %289, %291 : vector<8x16xf32>
    %293 = vector.extract_strided_slice %200 {offsets = [48, 0], sizes = [8, 16], strides = [1, 1]} : vector<64x16xf32> to vector<8x16xf32>
    %294 = vector.extract_strided_slice %200 {offsets = [56, 0], sizes = [8, 16], strides = [1, 1]} : vector<64x16xf32> to vector<8x16xf32>
    %cst_93 = arith.constant 2.500000e-01 : f32
    %295 = vector.broadcast %cst_93 : f32 to vector<8x16xf32>
    %296 = arith.mulf %295, %293 : vector<8x16xf32>
    %cst_94 = arith.constant 7.500000e-01 : f32
    %297 = vector.broadcast %cst_94 : f32 to vector<8x16xf32>
    %298 = arith.mulf %297, %294 : vector<8x16xf32>
    %299 = arith.addf %296, %298 : vector<8x16xf32>
    %300 = vector.extract_strided_slice %200 {offsets = [56, 0], sizes = [8, 16], strides = [1, 1]} : vector<64x16xf32> to vector<8x16xf32>
    %301 = tpu.concatenate %201, %208, %215, %222, %229, %236, %243, %250, %257, %264, %271, %278, %285, %292, %299, %300 in 1 : vector<8x16xf32>, vector<8x16xf32>, vector<8x16xf32>, vector<8x16xf32>, vector<8x16xf32>, vector<8x16xf32>, vector<8x16xf32>, vector<8x16xf32>, vector<8x16xf32>, vector<8x16xf32>, vector<8x16xf32>, vector<8x16xf32>, vector<8x16xf32>, vector<8x16xf32>, vector<8x16xf32>, vector<8x16xf32> -> vector<8x256xf32>
    %302 = arith.addf %92, %301 : vector<8x256xf32>
    %c0_95 = arith.constant 0 : index
    %c0_96 = arith.constant 0 : index
    %c0_97 = arith.constant 0 : index
    %c0_98 = arith.constant 0 : index
    %303 = vector.load %arg5[%c0_95, %c0_96, %c0_97, %c0_98] : memref<3x9x8x8xf32, #tpu.memory_space<vmem>>, vector<1x9x8x8xf32>
    %304 = vector.shape_cast %303 : vector<1x9x8x8xf32> to vector<9x8x8xf32>
    %c2 = arith.constant 2 : index
    %c0_99 = arith.constant 0 : index
    %c0_100 = arith.constant 0 : index
    %305 = vector.load %arg6[%c2, %c0_99, %c0_100] : memref<5x8x1xf32, #tpu.memory_space<vmem>>, vector<1x8x1xf32>
    %306 = vector.shape_cast %305 : vector<1x8x1xf32> to vector<8x1xf32>
    %c1_i32_101 = arith.constant 1 : i32
    %307 = tpu.dynamic_rotate %302 by %c1_i32_101 dim 1 : vector<8x256xf32>, i32 -> vector<8x256xf32>
    %cst_102 = arith.constant 0.000000e+00 : f32
    %308 = vector.shape_cast %18 : vector<1x256xi1> to vector<1x256xi1>
    %309 = vector.broadcast %308 : vector<1x256xi1> to vector<8x256xi1>
    %310 = vector.broadcast %cst_102 : f32 to vector<8x256xf32>
    %311 = arith.select %309, %307, %310 : vector<8x256xi1>, vector<8x256xf32>
    %c255_i32_103 = arith.constant 255 : i32
    %312 = tpu.dynamic_rotate %302 by %c255_i32_103 dim 1 : vector<8x256xf32>, i32 -> vector<8x256xf32>
    %cst_104 = arith.constant 0.000000e+00 : f32
    %313 = vector.shape_cast %20 : vector<1x256xi1> to vector<1x256xi1>
    %314 = vector.broadcast %313 : vector<1x256xi1> to vector<8x256xi1>
    %315 = vector.broadcast %cst_104 : f32 to vector<8x256xf32>
    %316 = arith.select %314, %312, %315 : vector<8x256xi1>, vector<8x256xf32>
    %cst_105 = arith.constant 0.000000e+00 : f32
    %317 = vector.broadcast %cst_105 : f32 to vector<8x16xf32>
    %318 = vector.extract_strided_slice %311 {offsets = [0, 0], sizes = [8, 240], strides = [1, 1]} : vector<8x256xf32> to vector<8x240xf32>
    %319 = tpu.concatenate %317, %318 in 1 : vector<8x16xf32>, vector<8x240xf32> -> vector<8x256xf32>
    %320 = vector.extract_strided_slice %304 {offsets = [0, 0, 0], sizes = [1, 8, 8], strides = [1, 1, 1]} : vector<9x8x8xf32> to vector<1x8x8xf32>
    %321 = vector.shape_cast %320 : vector<1x8x8xf32> to vector<8x8xf32>
    %cst_106 = arith.constant dense<0.000000e+00> : vector<8x256xf32>
    %322 = tpu.matmul %321, %319, %cst_106 {dimension_numbers = #tpu.dot_dimension_numbers<[1], [0], [0], [1], [0, 0, 1, 1], [], []>} : vector<8x8xf32>, vector<8x256xf32>, vector<8x256xf32> -> vector<8x256xf32>
    %cst_107 = arith.constant 0.000000e+00 : f32
    %323 = vector.broadcast %cst_107 : f32 to vector<8x16xf32>
    %324 = vector.extract_strided_slice %302 {offsets = [0, 0], sizes = [8, 240], strides = [1, 1]} : vector<8x256xf32> to vector<8x240xf32>
    %325 = tpu.concatenate %323, %324 in 1 : vector<8x16xf32>, vector<8x240xf32> -> vector<8x256xf32>
    %326 = vector.extract_strided_slice %304 {offsets = [1, 0, 0], sizes = [1, 8, 8], strides = [1, 1, 1]} : vector<9x8x8xf32> to vector<1x8x8xf32>
    %327 = vector.shape_cast %326 : vector<1x8x8xf32> to vector<8x8xf32>
    %cst_108 = arith.constant dense<0.000000e+00> : vector<8x256xf32>
    %328 = tpu.matmul %327, %325, %cst_108 {dimension_numbers = #tpu.dot_dimension_numbers<[1], [0], [0], [1], [0, 0, 1, 1], [], []>} : vector<8x8xf32>, vector<8x256xf32>, vector<8x256xf32> -> vector<8x256xf32>
    %329 = arith.addf %322, %328 : vector<8x256xf32>
    %cst_109 = arith.constant 0.000000e+00 : f32
    %330 = vector.broadcast %cst_109 : f32 to vector<8x16xf32>
    %331 = vector.extract_strided_slice %316 {offsets = [0, 0], sizes = [8, 240], strides = [1, 1]} : vector<8x256xf32> to vector<8x240xf32>
    %332 = tpu.concatenate %330, %331 in 1 : vector<8x16xf32>, vector<8x240xf32> -> vector<8x256xf32>
    %333 = vector.extract_strided_slice %304 {offsets = [2, 0, 0], sizes = [1, 8, 8], strides = [1, 1, 1]} : vector<9x8x8xf32> to vector<1x8x8xf32>
    %334 = vector.shape_cast %333 : vector<1x8x8xf32> to vector<8x8xf32>
    %cst_110 = arith.constant dense<0.000000e+00> : vector<8x256xf32>
    %335 = tpu.matmul %334, %332, %cst_110 {dimension_numbers = #tpu.dot_dimension_numbers<[1], [0], [0], [1], [0, 0, 1, 1], [], []>} : vector<8x8xf32>, vector<8x256xf32>, vector<8x256xf32> -> vector<8x256xf32>
    %336 = arith.addf %329, %335 : vector<8x256xf32>
    %337 = vector.extract_strided_slice %304 {offsets = [3, 0, 0], sizes = [1, 8, 8], strides = [1, 1, 1]} : vector<9x8x8xf32> to vector<1x8x8xf32>
    %338 = vector.shape_cast %337 : vector<1x8x8xf32> to vector<8x8xf32>
    %cst_111 = arith.constant dense<0.000000e+00> : vector<8x256xf32>
    %339 = tpu.matmul %338, %311, %cst_111 {dimension_numbers = #tpu.dot_dimension_numbers<[1], [0], [0], [1], [0, 0, 1, 1], [], []>} : vector<8x8xf32>, vector<8x256xf32>, vector<8x256xf32> -> vector<8x256xf32>
    %340 = arith.addf %336, %339 : vector<8x256xf32>
    %341 = vector.extract_strided_slice %304 {offsets = [4, 0, 0], sizes = [1, 8, 8], strides = [1, 1, 1]} : vector<9x8x8xf32> to vector<1x8x8xf32>
    %342 = vector.shape_cast %341 : vector<1x8x8xf32> to vector<8x8xf32>
    %cst_112 = arith.constant dense<0.000000e+00> : vector<8x256xf32>
    %343 = tpu.matmul %342, %302, %cst_112 {dimension_numbers = #tpu.dot_dimension_numbers<[1], [0], [0], [1], [0, 0, 1, 1], [], []>} : vector<8x8xf32>, vector<8x256xf32>, vector<8x256xf32> -> vector<8x256xf32>
    %344 = arith.addf %340, %343 : vector<8x256xf32>
    %345 = vector.extract_strided_slice %304 {offsets = [5, 0, 0], sizes = [1, 8, 8], strides = [1, 1, 1]} : vector<9x8x8xf32> to vector<1x8x8xf32>
    %346 = vector.shape_cast %345 : vector<1x8x8xf32> to vector<8x8xf32>
    %cst_113 = arith.constant dense<0.000000e+00> : vector<8x256xf32>
    %347 = tpu.matmul %346, %316, %cst_113 {dimension_numbers = #tpu.dot_dimension_numbers<[1], [0], [0], [1], [0, 0, 1, 1], [], []>} : vector<8x8xf32>, vector<8x256xf32>, vector<8x256xf32> -> vector<8x256xf32>
    %348 = arith.addf %344, %347 : vector<8x256xf32>
    %349 = vector.extract_strided_slice %311 {offsets = [0, 16], sizes = [8, 240], strides = [1, 1]} : vector<8x256xf32> to vector<8x240xf32>
    %cst_114 = arith.constant 0.000000e+00 : f32
    %350 = vector.broadcast %cst_114 : f32 to vector<8x16xf32>
    %351 = tpu.concatenate %349, %350 in 1 : vector<8x240xf32>, vector<8x16xf32> -> vector<8x256xf32>
    %352 = vector.extract_strided_slice %304 {offsets = [6, 0, 0], sizes = [1, 8, 8], strides = [1, 1, 1]} : vector<9x8x8xf32> to vector<1x8x8xf32>
    %353 = vector.shape_cast %352 : vector<1x8x8xf32> to vector<8x8xf32>
    %cst_115 = arith.constant dense<0.000000e+00> : vector<8x256xf32>
    %354 = tpu.matmul %353, %351, %cst_115 {dimension_numbers = #tpu.dot_dimension_numbers<[1], [0], [0], [1], [0, 0, 1, 1], [], []>} : vector<8x8xf32>, vector<8x256xf32>, vector<8x256xf32> -> vector<8x256xf32>
    %355 = arith.addf %348, %354 : vector<8x256xf32>
    %356 = vector.extract_strided_slice %302 {offsets = [0, 16], sizes = [8, 240], strides = [1, 1]} : vector<8x256xf32> to vector<8x240xf32>
    %cst_116 = arith.constant 0.000000e+00 : f32
    %357 = vector.broadcast %cst_116 : f32 to vector<8x16xf32>
    %358 = tpu.concatenate %356, %357 in 1 : vector<8x240xf32>, vector<8x16xf32> -> vector<8x256xf32>
    %359 = vector.extract_strided_slice %304 {offsets = [7, 0, 0], sizes = [1, 8, 8], strides = [1, 1, 1]} : vector<9x8x8xf32> to vector<1x8x8xf32>
    %360 = vector.shape_cast %359 : vector<1x8x8xf32> to vector<8x8xf32>
    %cst_117 = arith.constant dense<0.000000e+00> : vector<8x256xf32>
    %361 = tpu.matmul %360, %358, %cst_117 {dimension_numbers = #tpu.dot_dimension_numbers<[1], [0], [0], [1], [0, 0, 1, 1], [], []>} : vector<8x8xf32>, vector<8x256xf32>, vector<8x256xf32> -> vector<8x256xf32>
    %362 = arith.addf %355, %361 : vector<8x256xf32>
    %363 = vector.extract_strided_slice %316 {offsets = [0, 16], sizes = [8, 240], strides = [1, 1]} : vector<8x256xf32> to vector<8x240xf32>
    %cst_118 = arith.constant 0.000000e+00 : f32
    %364 = vector.broadcast %cst_118 : f32 to vector<8x16xf32>
    %365 = tpu.concatenate %363, %364 in 1 : vector<8x240xf32>, vector<8x16xf32> -> vector<8x256xf32>
    %366 = vector.extract_strided_slice %304 {offsets = [8, 0, 0], sizes = [1, 8, 8], strides = [1, 1, 1]} : vector<9x8x8xf32> to vector<1x8x8xf32>
    %367 = vector.shape_cast %366 : vector<1x8x8xf32> to vector<8x8xf32>
    %cst_119 = arith.constant dense<0.000000e+00> : vector<8x256xf32>
    %368 = tpu.matmul %367, %365, %cst_119 {dimension_numbers = #tpu.dot_dimension_numbers<[1], [0], [0], [1], [0, 0, 1, 1], [], []>} : vector<8x8xf32>, vector<8x256xf32>, vector<8x256xf32> -> vector<8x256xf32>
    %369 = arith.addf %362, %368 : vector<8x256xf32>
    %370 = vector.broadcast %306 : vector<8x1xf32> to vector<8x256xf32>
    %371 = arith.addf %369, %370 : vector<8x256xf32>
    %cst_120 = arith.constant 0.000000e+00 : f32
    %372 = vector.broadcast %cst_120 : f32 to vector<8x256xf32>
    %373 = arith.maximumf %371, %372 : vector<8x256xf32>
    %c1_121 = arith.constant 1 : index
    %c0_122 = arith.constant 0 : index
    %c0_123 = arith.constant 0 : index
    %c0_124 = arith.constant 0 : index
    %374 = vector.load %arg5[%c1_121, %c0_122, %c0_123, %c0_124] : memref<3x9x8x8xf32, #tpu.memory_space<vmem>>, vector<1x9x8x8xf32>
    %375 = vector.shape_cast %374 : vector<1x9x8x8xf32> to vector<9x8x8xf32>
    %c3 = arith.constant 3 : index
    %c0_125 = arith.constant 0 : index
    %c0_126 = arith.constant 0 : index
    %376 = vector.load %arg6[%c3, %c0_125, %c0_126] : memref<5x8x1xf32, #tpu.memory_space<vmem>>, vector<1x8x1xf32>
    %377 = vector.shape_cast %376 : vector<1x8x1xf32> to vector<8x1xf32>
    %c1_i32_127 = arith.constant 1 : i32
    %378 = tpu.dynamic_rotate %373 by %c1_i32_127 dim 1 : vector<8x256xf32>, i32 -> vector<8x256xf32>
    %cst_128 = arith.constant 0.000000e+00 : f32
    %379 = vector.shape_cast %18 : vector<1x256xi1> to vector<1x256xi1>
    %380 = vector.broadcast %379 : vector<1x256xi1> to vector<8x256xi1>
    %381 = vector.broadcast %cst_128 : f32 to vector<8x256xf32>
    %382 = arith.select %380, %378, %381 : vector<8x256xi1>, vector<8x256xf32>
    %c255_i32_129 = arith.constant 255 : i32
    %383 = tpu.dynamic_rotate %373 by %c255_i32_129 dim 1 : vector<8x256xf32>, i32 -> vector<8x256xf32>
    %cst_130 = arith.constant 0.000000e+00 : f32
    %384 = vector.shape_cast %20 : vector<1x256xi1> to vector<1x256xi1>
    %385 = vector.broadcast %384 : vector<1x256xi1> to vector<8x256xi1>
    %386 = vector.broadcast %cst_130 : f32 to vector<8x256xf32>
    %387 = arith.select %385, %383, %386 : vector<8x256xi1>, vector<8x256xf32>
    %cst_131 = arith.constant 0.000000e+00 : f32
    %388 = vector.broadcast %cst_131 : f32 to vector<8x16xf32>
    %389 = vector.extract_strided_slice %382 {offsets = [0, 0], sizes = [8, 240], strides = [1, 1]} : vector<8x256xf32> to vector<8x240xf32>
    %390 = tpu.concatenate %388, %389 in 1 : vector<8x16xf32>, vector<8x240xf32> -> vector<8x256xf32>
    %391 = vector.extract_strided_slice %375 {offsets = [0, 0, 0], sizes = [1, 8, 8], strides = [1, 1, 1]} : vector<9x8x8xf32> to vector<1x8x8xf32>
    %392 = vector.shape_cast %391 : vector<1x8x8xf32> to vector<8x8xf32>
    %cst_132 = arith.constant dense<0.000000e+00> : vector<8x256xf32>
    %393 = tpu.matmul %392, %390, %cst_132 {dimension_numbers = #tpu.dot_dimension_numbers<[1], [0], [0], [1], [0, 0, 1, 1], [], []>} : vector<8x8xf32>, vector<8x256xf32>, vector<8x256xf32> -> vector<8x256xf32>
    %cst_133 = arith.constant 0.000000e+00 : f32
    %394 = vector.broadcast %cst_133 : f32 to vector<8x16xf32>
    %395 = vector.extract_strided_slice %373 {offsets = [0, 0], sizes = [8, 240], strides = [1, 1]} : vector<8x256xf32> to vector<8x240xf32>
    %396 = tpu.concatenate %394, %395 in 1 : vector<8x16xf32>, vector<8x240xf32> -> vector<8x256xf32>
    %397 = vector.extract_strided_slice %375 {offsets = [1, 0, 0], sizes = [1, 8, 8], strides = [1, 1, 1]} : vector<9x8x8xf32> to vector<1x8x8xf32>
    %398 = vector.shape_cast %397 : vector<1x8x8xf32> to vector<8x8xf32>
    %cst_134 = arith.constant dense<0.000000e+00> : vector<8x256xf32>
    %399 = tpu.matmul %398, %396, %cst_134 {dimension_numbers = #tpu.dot_dimension_numbers<[1], [0], [0], [1], [0, 0, 1, 1], [], []>} : vector<8x8xf32>, vector<8x256xf32>, vector<8x256xf32> -> vector<8x256xf32>
    %400 = arith.addf %393, %399 : vector<8x256xf32>
    %cst_135 = arith.constant 0.000000e+00 : f32
    %401 = vector.broadcast %cst_135 : f32 to vector<8x16xf32>
    %402 = vector.extract_strided_slice %387 {offsets = [0, 0], sizes = [8, 240], strides = [1, 1]} : vector<8x256xf32> to vector<8x240xf32>
    %403 = tpu.concatenate %401, %402 in 1 : vector<8x16xf32>, vector<8x240xf32> -> vector<8x256xf32>
    %404 = vector.extract_strided_slice %375 {offsets = [2, 0, 0], sizes = [1, 8, 8], strides = [1, 1, 1]} : vector<9x8x8xf32> to vector<1x8x8xf32>
    %405 = vector.shape_cast %404 : vector<1x8x8xf32> to vector<8x8xf32>
    %cst_136 = arith.constant dense<0.000000e+00> : vector<8x256xf32>
    %406 = tpu.matmul %405, %403, %cst_136 {dimension_numbers = #tpu.dot_dimension_numbers<[1], [0], [0], [1], [0, 0, 1, 1], [], []>} : vector<8x8xf32>, vector<8x256xf32>, vector<8x256xf32> -> vector<8x256xf32>
    %407 = arith.addf %400, %406 : vector<8x256xf32>
    %408 = vector.extract_strided_slice %375 {offsets = [3, 0, 0], sizes = [1, 8, 8], strides = [1, 1, 1]} : vector<9x8x8xf32> to vector<1x8x8xf32>
    %409 = vector.shape_cast %408 : vector<1x8x8xf32> to vector<8x8xf32>
    %cst_137 = arith.constant dense<0.000000e+00> : vector<8x256xf32>
    %410 = tpu.matmul %409, %382, %cst_137 {dimension_numbers = #tpu.dot_dimension_numbers<[1], [0], [0], [1], [0, 0, 1, 1], [], []>} : vector<8x8xf32>, vector<8x256xf32>, vector<8x256xf32> -> vector<8x256xf32>
    %411 = arith.addf %407, %410 : vector<8x256xf32>
    %412 = vector.extract_strided_slice %375 {offsets = [4, 0, 0], sizes = [1, 8, 8], strides = [1, 1, 1]} : vector<9x8x8xf32> to vector<1x8x8xf32>
    %413 = vector.shape_cast %412 : vector<1x8x8xf32> to vector<8x8xf32>
    %cst_138 = arith.constant dense<0.000000e+00> : vector<8x256xf32>
    %414 = tpu.matmul %413, %373, %cst_138 {dimension_numbers = #tpu.dot_dimension_numbers<[1], [0], [0], [1], [0, 0, 1, 1], [], []>} : vector<8x8xf32>, vector<8x256xf32>, vector<8x256xf32> -> vector<8x256xf32>
    %415 = arith.addf %411, %414 : vector<8x256xf32>
    %416 = vector.extract_strided_slice %375 {offsets = [5, 0, 0], sizes = [1, 8, 8], strides = [1, 1, 1]} : vector<9x8x8xf32> to vector<1x8x8xf32>
    %417 = vector.shape_cast %416 : vector<1x8x8xf32> to vector<8x8xf32>
    %cst_139 = arith.constant dense<0.000000e+00> : vector<8x256xf32>
    %418 = tpu.matmul %417, %387, %cst_139 {dimension_numbers = #tpu.dot_dimension_numbers<[1], [0], [0], [1], [0, 0, 1, 1], [], []>} : vector<8x8xf32>, vector<8x256xf32>, vector<8x256xf32> -> vector<8x256xf32>
    %419 = arith.addf %415, %418 : vector<8x256xf32>
    %420 = vector.extract_strided_slice %382 {offsets = [0, 16], sizes = [8, 240], strides = [1, 1]} : vector<8x256xf32> to vector<8x240xf32>
    %cst_140 = arith.constant 0.000000e+00 : f32
    %421 = vector.broadcast %cst_140 : f32 to vector<8x16xf32>
    %422 = tpu.concatenate %420, %421 in 1 : vector<8x240xf32>, vector<8x16xf32> -> vector<8x256xf32>
    %423 = vector.extract_strided_slice %375 {offsets = [6, 0, 0], sizes = [1, 8, 8], strides = [1, 1, 1]} : vector<9x8x8xf32> to vector<1x8x8xf32>
    %424 = vector.shape_cast %423 : vector<1x8x8xf32> to vector<8x8xf32>
    %cst_141 = arith.constant dense<0.000000e+00> : vector<8x256xf32>
    %425 = tpu.matmul %424, %422, %cst_141 {dimension_numbers = #tpu.dot_dimension_numbers<[1], [0], [0], [1], [0, 0, 1, 1], [], []>} : vector<8x8xf32>, vector<8x256xf32>, vector<8x256xf32> -> vector<8x256xf32>
    %426 = arith.addf %419, %425 : vector<8x256xf32>
    %427 = vector.extract_strided_slice %373 {offsets = [0, 16], sizes = [8, 240], strides = [1, 1]} : vector<8x256xf32> to vector<8x240xf32>
    %cst_142 = arith.constant 0.000000e+00 : f32
    %428 = vector.broadcast %cst_142 : f32 to vector<8x16xf32>
    %429 = tpu.concatenate %427, %428 in 1 : vector<8x240xf32>, vector<8x16xf32> -> vector<8x256xf32>
    %430 = vector.extract_strided_slice %375 {offsets = [7, 0, 0], sizes = [1, 8, 8], strides = [1, 1, 1]} : vector<9x8x8xf32> to vector<1x8x8xf32>
    %431 = vector.shape_cast %430 : vector<1x8x8xf32> to vector<8x8xf32>
    %cst_143 = arith.constant dense<0.000000e+00> : vector<8x256xf32>
    %432 = tpu.matmul %431, %429, %cst_143 {dimension_numbers = #tpu.dot_dimension_numbers<[1], [0], [0], [1], [0, 0, 1, 1], [], []>} : vector<8x8xf32>, vector<8x256xf32>, vector<8x256xf32> -> vector<8x256xf32>
    %433 = arith.addf %426, %432 : vector<8x256xf32>
    %434 = vector.extract_strided_slice %387 {offsets = [0, 16], sizes = [8, 240], strides = [1, 1]} : vector<8x256xf32> to vector<8x240xf32>
    %cst_144 = arith.constant 0.000000e+00 : f32
    %435 = vector.broadcast %cst_144 : f32 to vector<8x16xf32>
    %436 = tpu.concatenate %434, %435 in 1 : vector<8x240xf32>, vector<8x16xf32> -> vector<8x256xf32>
    %437 = vector.extract_strided_slice %375 {offsets = [8, 0, 0], sizes = [1, 8, 8], strides = [1, 1, 1]} : vector<9x8x8xf32> to vector<1x8x8xf32>
    %438 = vector.shape_cast %437 : vector<1x8x8xf32> to vector<8x8xf32>
    %cst_145 = arith.constant dense<0.000000e+00> : vector<8x256xf32>
    %439 = tpu.matmul %438, %436, %cst_145 {dimension_numbers = #tpu.dot_dimension_numbers<[1], [0], [0], [1], [0, 0, 1, 1], [], []>} : vector<8x8xf32>, vector<8x256xf32>, vector<8x256xf32> -> vector<8x256xf32>
    %440 = arith.addf %433, %439 : vector<8x256xf32>
    %441 = vector.broadcast %377 : vector<8x1xf32> to vector<8x256xf32>
    %442 = arith.addf %440, %441 : vector<8x256xf32>
    %cst_146 = arith.constant 0.000000e+00 : f32
    %443 = vector.broadcast %cst_146 : f32 to vector<8x256xf32>
    %444 = arith.maximumf %442, %443 : vector<8x256xf32>
    %c0_147 = arith.constant 0 : index
    %c0_148 = arith.constant 0 : index
    %445 = vector.load %arg10[%c0_147, %c0_148] : memref<16x32xf32, #tpu.memory_space<vmem>>, vector<16x32xf32>
    %446 = vector.extract_strided_slice %444 {offsets = [0, 0], sizes = [8, 16], strides = [1, 1]} : vector<8x256xf32> to vector<8x16xf32>
    %447 = vector.extract_strided_slice %444 {offsets = [0, 16], sizes = [8, 16], strides = [1, 1]} : vector<8x256xf32> to vector<8x16xf32>
    %448 = vector.extract_strided_slice %444 {offsets = [0, 32], sizes = [8, 16], strides = [1, 1]} : vector<8x256xf32> to vector<8x16xf32>
    %449 = vector.extract_strided_slice %444 {offsets = [0, 48], sizes = [8, 16], strides = [1, 1]} : vector<8x256xf32> to vector<8x16xf32>
    %450 = vector.extract_strided_slice %444 {offsets = [0, 64], sizes = [8, 16], strides = [1, 1]} : vector<8x256xf32> to vector<8x16xf32>
    %451 = vector.extract_strided_slice %444 {offsets = [0, 80], sizes = [8, 16], strides = [1, 1]} : vector<8x256xf32> to vector<8x16xf32>
    %452 = vector.extract_strided_slice %444 {offsets = [0, 96], sizes = [8, 16], strides = [1, 1]} : vector<8x256xf32> to vector<8x16xf32>
    %453 = vector.extract_strided_slice %444 {offsets = [0, 112], sizes = [8, 16], strides = [1, 1]} : vector<8x256xf32> to vector<8x16xf32>
    %454 = vector.extract_strided_slice %444 {offsets = [0, 128], sizes = [8, 16], strides = [1, 1]} : vector<8x256xf32> to vector<8x16xf32>
    %455 = vector.extract_strided_slice %444 {offsets = [0, 144], sizes = [8, 16], strides = [1, 1]} : vector<8x256xf32> to vector<8x16xf32>
    %456 = vector.extract_strided_slice %444 {offsets = [0, 160], sizes = [8, 16], strides = [1, 1]} : vector<8x256xf32> to vector<8x16xf32>
    %457 = vector.extract_strided_slice %444 {offsets = [0, 176], sizes = [8, 16], strides = [1, 1]} : vector<8x256xf32> to vector<8x16xf32>
    %458 = vector.extract_strided_slice %444 {offsets = [0, 192], sizes = [8, 16], strides = [1, 1]} : vector<8x256xf32> to vector<8x16xf32>
    %459 = vector.extract_strided_slice %444 {offsets = [0, 208], sizes = [8, 16], strides = [1, 1]} : vector<8x256xf32> to vector<8x16xf32>
    %460 = vector.extract_strided_slice %444 {offsets = [0, 224], sizes = [8, 16], strides = [1, 1]} : vector<8x256xf32> to vector<8x16xf32>
    %461 = vector.extract_strided_slice %444 {offsets = [0, 240], sizes = [8, 16], strides = [1, 1]} : vector<8x256xf32> to vector<8x16xf32>
    %462 = tpu.concatenate %446, %447, %448, %449, %450, %451, %452, %453, %454, %455, %456, %457, %458, %459, %460, %461 in 0 : vector<8x16xf32>, vector<8x16xf32>, vector<8x16xf32>, vector<8x16xf32>, vector<8x16xf32>, vector<8x16xf32>, vector<8x16xf32>, vector<8x16xf32>, vector<8x16xf32>, vector<8x16xf32>, vector<8x16xf32>, vector<8x16xf32>, vector<8x16xf32>, vector<8x16xf32>, vector<8x16xf32>, vector<8x16xf32> -> vector<128x16xf32>
    %cst_149 = arith.constant dense<0.000000e+00> : vector<128x32xf32>
    %463 = tpu.matmul %462, %445, %cst_149 {dimension_numbers = #tpu.dot_dimension_numbers<[1], [0], [0], [1], [0, 0, 1, 1], [], []>} : vector<128x16xf32>, vector<16x32xf32>, vector<128x32xf32> -> vector<128x32xf32>
    %464 = vector.extract_strided_slice %463 {offsets = [0, 0], sizes = [8, 32], strides = [1, 1]} : vector<128x32xf32> to vector<8x32xf32>
    %465 = vector.extract_strided_slice %463 {offsets = [0, 0], sizes = [8, 32], strides = [1, 1]} : vector<128x32xf32> to vector<8x32xf32>
    %466 = vector.extract_strided_slice %463 {offsets = [8, 0], sizes = [8, 32], strides = [1, 1]} : vector<128x32xf32> to vector<8x32xf32>
    %cst_150 = arith.constant 7.500000e-01 : f32
    %467 = vector.broadcast %cst_150 : f32 to vector<8x32xf32>
    %468 = arith.mulf %467, %465 : vector<8x32xf32>
    %cst_151 = arith.constant 2.500000e-01 : f32
    %469 = vector.broadcast %cst_151 : f32 to vector<8x32xf32>
    %470 = arith.mulf %469, %466 : vector<8x32xf32>
    %471 = arith.addf %468, %470 : vector<8x32xf32>
    %472 = vector.extract_strided_slice %463 {offsets = [0, 0], sizes = [8, 32], strides = [1, 1]} : vector<128x32xf32> to vector<8x32xf32>
    %473 = vector.extract_strided_slice %463 {offsets = [8, 0], sizes = [8, 32], strides = [1, 1]} : vector<128x32xf32> to vector<8x32xf32>
    %cst_152 = arith.constant 2.500000e-01 : f32
    %474 = vector.broadcast %cst_152 : f32 to vector<8x32xf32>
    %475 = arith.mulf %474, %472 : vector<8x32xf32>
    %cst_153 = arith.constant 7.500000e-01 : f32
    %476 = vector.broadcast %cst_153 : f32 to vector<8x32xf32>
    %477 = arith.mulf %476, %473 : vector<8x32xf32>
    %478 = arith.addf %475, %477 : vector<8x32xf32>
    %479 = vector.extract_strided_slice %463 {offsets = [8, 0], sizes = [8, 32], strides = [1, 1]} : vector<128x32xf32> to vector<8x32xf32>
    %480 = vector.extract_strided_slice %463 {offsets = [16, 0], sizes = [8, 32], strides = [1, 1]} : vector<128x32xf32> to vector<8x32xf32>
    %cst_154 = arith.constant 7.500000e-01 : f32
    %481 = vector.broadcast %cst_154 : f32 to vector<8x32xf32>
    %482 = arith.mulf %481, %479 : vector<8x32xf32>
    %cst_155 = arith.constant 2.500000e-01 : f32
    %483 = vector.broadcast %cst_155 : f32 to vector<8x32xf32>
    %484 = arith.mulf %483, %480 : vector<8x32xf32>
    %485 = arith.addf %482, %484 : vector<8x32xf32>
    %486 = vector.extract_strided_slice %463 {offsets = [8, 0], sizes = [8, 32], strides = [1, 1]} : vector<128x32xf32> to vector<8x32xf32>
    %487 = vector.extract_strided_slice %463 {offsets = [16, 0], sizes = [8, 32], strides = [1, 1]} : vector<128x32xf32> to vector<8x32xf32>
    %cst_156 = arith.constant 2.500000e-01 : f32
    %488 = vector.broadcast %cst_156 : f32 to vector<8x32xf32>
    %489 = arith.mulf %488, %486 : vector<8x32xf32>
    %cst_157 = arith.constant 7.500000e-01 : f32
    %490 = vector.broadcast %cst_157 : f32 to vector<8x32xf32>
    %491 = arith.mulf %490, %487 : vector<8x32xf32>
    %492 = arith.addf %489, %491 : vector<8x32xf32>
    %493 = vector.extract_strided_slice %463 {offsets = [16, 0], sizes = [8, 32], strides = [1, 1]} : vector<128x32xf32> to vector<8x32xf32>
    %494 = vector.extract_strided_slice %463 {offsets = [24, 0], sizes = [8, 32], strides = [1, 1]} : vector<128x32xf32> to vector<8x32xf32>
    %cst_158 = arith.constant 7.500000e-01 : f32
    %495 = vector.broadcast %cst_158 : f32 to vector<8x32xf32>
    %496 = arith.mulf %495, %493 : vector<8x32xf32>
    %cst_159 = arith.constant 2.500000e-01 : f32
    %497 = vector.broadcast %cst_159 : f32 to vector<8x32xf32>
    %498 = arith.mulf %497, %494 : vector<8x32xf32>
    %499 = arith.addf %496, %498 : vector<8x32xf32>
    %500 = vector.extract_strided_slice %463 {offsets = [16, 0], sizes = [8, 32], strides = [1, 1]} : vector<128x32xf32> to vector<8x32xf32>
    %501 = vector.extract_strided_slice %463 {offsets = [24, 0], sizes = [8, 32], strides = [1, 1]} : vector<128x32xf32> to vector<8x32xf32>
    %cst_160 = arith.constant 2.500000e-01 : f32
    %502 = vector.broadcast %cst_160 : f32 to vector<8x32xf32>
    %503 = arith.mulf %502, %500 : vector<8x32xf32>
    %cst_161 = arith.constant 7.500000e-01 : f32
    %504 = vector.broadcast %cst_161 : f32 to vector<8x32xf32>
    %505 = arith.mulf %504, %501 : vector<8x32xf32>
    %506 = arith.addf %503, %505 : vector<8x32xf32>
    %507 = vector.extract_strided_slice %463 {offsets = [24, 0], sizes = [8, 32], strides = [1, 1]} : vector<128x32xf32> to vector<8x32xf32>
    %508 = vector.extract_strided_slice %463 {offsets = [32, 0], sizes = [8, 32], strides = [1, 1]} : vector<128x32xf32> to vector<8x32xf32>
    %cst_162 = arith.constant 7.500000e-01 : f32
    %509 = vector.broadcast %cst_162 : f32 to vector<8x32xf32>
    %510 = arith.mulf %509, %507 : vector<8x32xf32>
    %cst_163 = arith.constant 2.500000e-01 : f32
    %511 = vector.broadcast %cst_163 : f32 to vector<8x32xf32>
    %512 = arith.mulf %511, %508 : vector<8x32xf32>
    %513 = arith.addf %510, %512 : vector<8x32xf32>
    %514 = vector.extract_strided_slice %463 {offsets = [24, 0], sizes = [8, 32], strides = [1, 1]} : vector<128x32xf32> to vector<8x32xf32>
    %515 = vector.extract_strided_slice %463 {offsets = [32, 0], sizes = [8, 32], strides = [1, 1]} : vector<128x32xf32> to vector<8x32xf32>
    %cst_164 = arith.constant 2.500000e-01 : f32
    %516 = vector.broadcast %cst_164 : f32 to vector<8x32xf32>
    %517 = arith.mulf %516, %514 : vector<8x32xf32>
    %cst_165 = arith.constant 7.500000e-01 : f32
    %518 = vector.broadcast %cst_165 : f32 to vector<8x32xf32>
    %519 = arith.mulf %518, %515 : vector<8x32xf32>
    %520 = arith.addf %517, %519 : vector<8x32xf32>
    %521 = vector.extract_strided_slice %463 {offsets = [32, 0], sizes = [8, 32], strides = [1, 1]} : vector<128x32xf32> to vector<8x32xf32>
    %522 = vector.extract_strided_slice %463 {offsets = [40, 0], sizes = [8, 32], strides = [1, 1]} : vector<128x32xf32> to vector<8x32xf32>
    %cst_166 = arith.constant 7.500000e-01 : f32
    %523 = vector.broadcast %cst_166 : f32 to vector<8x32xf32>
    %524 = arith.mulf %523, %521 : vector<8x32xf32>
    %cst_167 = arith.constant 2.500000e-01 : f32
    %525 = vector.broadcast %cst_167 : f32 to vector<8x32xf32>
    %526 = arith.mulf %525, %522 : vector<8x32xf32>
    %527 = arith.addf %524, %526 : vector<8x32xf32>
    %528 = vector.extract_strided_slice %463 {offsets = [32, 0], sizes = [8, 32], strides = [1, 1]} : vector<128x32xf32> to vector<8x32xf32>
    %529 = vector.extract_strided_slice %463 {offsets = [40, 0], sizes = [8, 32], strides = [1, 1]} : vector<128x32xf32> to vector<8x32xf32>
    %cst_168 = arith.constant 2.500000e-01 : f32
    %530 = vector.broadcast %cst_168 : f32 to vector<8x32xf32>
    %531 = arith.mulf %530, %528 : vector<8x32xf32>
    %cst_169 = arith.constant 7.500000e-01 : f32
    %532 = vector.broadcast %cst_169 : f32 to vector<8x32xf32>
    %533 = arith.mulf %532, %529 : vector<8x32xf32>
    %534 = arith.addf %531, %533 : vector<8x32xf32>
    %535 = vector.extract_strided_slice %463 {offsets = [40, 0], sizes = [8, 32], strides = [1, 1]} : vector<128x32xf32> to vector<8x32xf32>
    %536 = vector.extract_strided_slice %463 {offsets = [48, 0], sizes = [8, 32], strides = [1, 1]} : vector<128x32xf32> to vector<8x32xf32>
    %cst_170 = arith.constant 7.500000e-01 : f32
    %537 = vector.broadcast %cst_170 : f32 to vector<8x32xf32>
    %538 = arith.mulf %537, %535 : vector<8x32xf32>
    %cst_171 = arith.constant 2.500000e-01 : f32
    %539 = vector.broadcast %cst_171 : f32 to vector<8x32xf32>
    %540 = arith.mulf %539, %536 : vector<8x32xf32>
    %541 = arith.addf %538, %540 : vector<8x32xf32>
    %542 = vector.extract_strided_slice %463 {offsets = [40, 0], sizes = [8, 32], strides = [1, 1]} : vector<128x32xf32> to vector<8x32xf32>
    %543 = vector.extract_strided_slice %463 {offsets = [48, 0], sizes = [8, 32], strides = [1, 1]} : vector<128x32xf32> to vector<8x32xf32>
    %cst_172 = arith.constant 2.500000e-01 : f32
    %544 = vector.broadcast %cst_172 : f32 to vector<8x32xf32>
    %545 = arith.mulf %544, %542 : vector<8x32xf32>
    %cst_173 = arith.constant 7.500000e-01 : f32
    %546 = vector.broadcast %cst_173 : f32 to vector<8x32xf32>
    %547 = arith.mulf %546, %543 : vector<8x32xf32>
    %548 = arith.addf %545, %547 : vector<8x32xf32>
    %549 = vector.extract_strided_slice %463 {offsets = [48, 0], sizes = [8, 32], strides = [1, 1]} : vector<128x32xf32> to vector<8x32xf32>
    %550 = vector.extract_strided_slice %463 {offsets = [56, 0], sizes = [8, 32], strides = [1, 1]} : vector<128x32xf32> to vector<8x32xf32>
    %cst_174 = arith.constant 7.500000e-01 : f32
    %551 = vector.broadcast %cst_174 : f32 to vector<8x32xf32>
    %552 = arith.mulf %551, %549 : vector<8x32xf32>
    %cst_175 = arith.constant 2.500000e-01 : f32
    %553 = vector.broadcast %cst_175 : f32 to vector<8x32xf32>
    %554 = arith.mulf %553, %550 : vector<8x32xf32>
    %555 = arith.addf %552, %554 : vector<8x32xf32>
    %556 = vector.extract_strided_slice %463 {offsets = [48, 0], sizes = [8, 32], strides = [1, 1]} : vector<128x32xf32> to vector<8x32xf32>
    %557 = vector.extract_strided_slice %463 {offsets = [56, 0], sizes = [8, 32], strides = [1, 1]} : vector<128x32xf32> to vector<8x32xf32>
    %cst_176 = arith.constant 2.500000e-01 : f32
    %558 = vector.broadcast %cst_176 : f32 to vector<8x32xf32>
    %559 = arith.mulf %558, %556 : vector<8x32xf32>
    %cst_177 = arith.constant 7.500000e-01 : f32
    %560 = vector.broadcast %cst_177 : f32 to vector<8x32xf32>
    %561 = arith.mulf %560, %557 : vector<8x32xf32>
    %562 = arith.addf %559, %561 : vector<8x32xf32>
    %563 = vector.extract_strided_slice %463 {offsets = [56, 0], sizes = [8, 32], strides = [1, 1]} : vector<128x32xf32> to vector<8x32xf32>
    %564 = vector.extract_strided_slice %463 {offsets = [64, 0], sizes = [8, 32], strides = [1, 1]} : vector<128x32xf32> to vector<8x32xf32>
    %cst_178 = arith.constant 7.500000e-01 : f32
    %565 = vector.broadcast %cst_178 : f32 to vector<8x32xf32>
    %566 = arith.mulf %565, %563 : vector<8x32xf32>
    %cst_179 = arith.constant 2.500000e-01 : f32
    %567 = vector.broadcast %cst_179 : f32 to vector<8x32xf32>
    %568 = arith.mulf %567, %564 : vector<8x32xf32>
    %569 = arith.addf %566, %568 : vector<8x32xf32>
    %570 = vector.extract_strided_slice %463 {offsets = [56, 0], sizes = [8, 32], strides = [1, 1]} : vector<128x32xf32> to vector<8x32xf32>
    %571 = vector.extract_strided_slice %463 {offsets = [64, 0], sizes = [8, 32], strides = [1, 1]} : vector<128x32xf32> to vector<8x32xf32>
    %cst_180 = arith.constant 2.500000e-01 : f32
    %572 = vector.broadcast %cst_180 : f32 to vector<8x32xf32>
    %573 = arith.mulf %572, %570 : vector<8x32xf32>
    %cst_181 = arith.constant 7.500000e-01 : f32
    %574 = vector.broadcast %cst_181 : f32 to vector<8x32xf32>
    %575 = arith.mulf %574, %571 : vector<8x32xf32>
    %576 = arith.addf %573, %575 : vector<8x32xf32>
    %577 = vector.extract_strided_slice %463 {offsets = [64, 0], sizes = [8, 32], strides = [1, 1]} : vector<128x32xf32> to vector<8x32xf32>
    %578 = vector.extract_strided_slice %463 {offsets = [72, 0], sizes = [8, 32], strides = [1, 1]} : vector<128x32xf32> to vector<8x32xf32>
    %cst_182 = arith.constant 7.500000e-01 : f32
    %579 = vector.broadcast %cst_182 : f32 to vector<8x32xf32>
    %580 = arith.mulf %579, %577 : vector<8x32xf32>
    %cst_183 = arith.constant 2.500000e-01 : f32
    %581 = vector.broadcast %cst_183 : f32 to vector<8x32xf32>
    %582 = arith.mulf %581, %578 : vector<8x32xf32>
    %583 = arith.addf %580, %582 : vector<8x32xf32>
    %584 = vector.extract_strided_slice %463 {offsets = [64, 0], sizes = [8, 32], strides = [1, 1]} : vector<128x32xf32> to vector<8x32xf32>
    %585 = vector.extract_strided_slice %463 {offsets = [72, 0], sizes = [8, 32], strides = [1, 1]} : vector<128x32xf32> to vector<8x32xf32>
    %cst_184 = arith.constant 2.500000e-01 : f32
    %586 = vector.broadcast %cst_184 : f32 to vector<8x32xf32>
    %587 = arith.mulf %586, %584 : vector<8x32xf32>
    %cst_185 = arith.constant 7.500000e-01 : f32
    %588 = vector.broadcast %cst_185 : f32 to vector<8x32xf32>
    %589 = arith.mulf %588, %585 : vector<8x32xf32>
    %590 = arith.addf %587, %589 : vector<8x32xf32>
    %591 = vector.extract_strided_slice %463 {offsets = [72, 0], sizes = [8, 32], strides = [1, 1]} : vector<128x32xf32> to vector<8x32xf32>
    %592 = vector.extract_strided_slice %463 {offsets = [80, 0], sizes = [8, 32], strides = [1, 1]} : vector<128x32xf32> to vector<8x32xf32>
    %cst_186 = arith.constant 7.500000e-01 : f32
    %593 = vector.broadcast %cst_186 : f32 to vector<8x32xf32>
    %594 = arith.mulf %593, %591 : vector<8x32xf32>
    %cst_187 = arith.constant 2.500000e-01 : f32
    %595 = vector.broadcast %cst_187 : f32 to vector<8x32xf32>
    %596 = arith.mulf %595, %592 : vector<8x32xf32>
    %597 = arith.addf %594, %596 : vector<8x32xf32>
    %598 = vector.extract_strided_slice %463 {offsets = [72, 0], sizes = [8, 32], strides = [1, 1]} : vector<128x32xf32> to vector<8x32xf32>
    %599 = vector.extract_strided_slice %463 {offsets = [80, 0], sizes = [8, 32], strides = [1, 1]} : vector<128x32xf32> to vector<8x32xf32>
    %cst_188 = arith.constant 2.500000e-01 : f32
    %600 = vector.broadcast %cst_188 : f32 to vector<8x32xf32>
    %601 = arith.mulf %600, %598 : vector<8x32xf32>
    %cst_189 = arith.constant 7.500000e-01 : f32
    %602 = vector.broadcast %cst_189 : f32 to vector<8x32xf32>
    %603 = arith.mulf %602, %599 : vector<8x32xf32>
    %604 = arith.addf %601, %603 : vector<8x32xf32>
    %605 = vector.extract_strided_slice %463 {offsets = [80, 0], sizes = [8, 32], strides = [1, 1]} : vector<128x32xf32> to vector<8x32xf32>
    %606 = vector.extract_strided_slice %463 {offsets = [88, 0], sizes = [8, 32], strides = [1, 1]} : vector<128x32xf32> to vector<8x32xf32>
    %cst_190 = arith.constant 7.500000e-01 : f32
    %607 = vector.broadcast %cst_190 : f32 to vector<8x32xf32>
    %608 = arith.mulf %607, %605 : vector<8x32xf32>
    %cst_191 = arith.constant 2.500000e-01 : f32
    %609 = vector.broadcast %cst_191 : f32 to vector<8x32xf32>
    %610 = arith.mulf %609, %606 : vector<8x32xf32>
    %611 = arith.addf %608, %610 : vector<8x32xf32>
    %612 = vector.extract_strided_slice %463 {offsets = [80, 0], sizes = [8, 32], strides = [1, 1]} : vector<128x32xf32> to vector<8x32xf32>
    %613 = vector.extract_strided_slice %463 {offsets = [88, 0], sizes = [8, 32], strides = [1, 1]} : vector<128x32xf32> to vector<8x32xf32>
    %cst_192 = arith.constant 2.500000e-01 : f32
    %614 = vector.broadcast %cst_192 : f32 to vector<8x32xf32>
    %615 = arith.mulf %614, %612 : vector<8x32xf32>
    %cst_193 = arith.constant 7.500000e-01 : f32
    %616 = vector.broadcast %cst_193 : f32 to vector<8x32xf32>
    %617 = arith.mulf %616, %613 : vector<8x32xf32>
    %618 = arith.addf %615, %617 : vector<8x32xf32>
    %619 = vector.extract_strided_slice %463 {offsets = [88, 0], sizes = [8, 32], strides = [1, 1]} : vector<128x32xf32> to vector<8x32xf32>
    %620 = vector.extract_strided_slice %463 {offsets = [96, 0], sizes = [8, 32], strides = [1, 1]} : vector<128x32xf32> to vector<8x32xf32>
    %cst_194 = arith.constant 7.500000e-01 : f32
    %621 = vector.broadcast %cst_194 : f32 to vector<8x32xf32>
    %622 = arith.mulf %621, %619 : vector<8x32xf32>
    %cst_195 = arith.constant 2.500000e-01 : f32
    %623 = vector.broadcast %cst_195 : f32 to vector<8x32xf32>
    %624 = arith.mulf %623, %620 : vector<8x32xf32>
    %625 = arith.addf %622, %624 : vector<8x32xf32>
    %626 = vector.extract_strided_slice %463 {offsets = [88, 0], sizes = [8, 32], strides = [1, 1]} : vector<128x32xf32> to vector<8x32xf32>
    %627 = vector.extract_strided_slice %463 {offsets = [96, 0], sizes = [8, 32], strides = [1, 1]} : vector<128x32xf32> to vector<8x32xf32>
    %cst_196 = arith.constant 2.500000e-01 : f32
    %628 = vector.broadcast %cst_196 : f32 to vector<8x32xf32>
    %629 = arith.mulf %628, %626 : vector<8x32xf32>
    %cst_197 = arith.constant 7.500000e-01 : f32
    %630 = vector.broadcast %cst_197 : f32 to vector<8x32xf32>
    %631 = arith.mulf %630, %627 : vector<8x32xf32>
    %632 = arith.addf %629, %631 : vector<8x32xf32>
    %633 = vector.extract_strided_slice %463 {offsets = [96, 0], sizes = [8, 32], strides = [1, 1]} : vector<128x32xf32> to vector<8x32xf32>
    %634 = vector.extract_strided_slice %463 {offsets = [104, 0], sizes = [8, 32], strides = [1, 1]} : vector<128x32xf32> to vector<8x32xf32>
    %cst_198 = arith.constant 7.500000e-01 : f32
    %635 = vector.broadcast %cst_198 : f32 to vector<8x32xf32>
    %636 = arith.mulf %635, %633 : vector<8x32xf32>
    %cst_199 = arith.constant 2.500000e-01 : f32
    %637 = vector.broadcast %cst_199 : f32 to vector<8x32xf32>
    %638 = arith.mulf %637, %634 : vector<8x32xf32>
    %639 = arith.addf %636, %638 : vector<8x32xf32>
    %640 = vector.extract_strided_slice %463 {offsets = [96, 0], sizes = [8, 32], strides = [1, 1]} : vector<128x32xf32> to vector<8x32xf32>
    %641 = vector.extract_strided_slice %463 {offsets = [104, 0], sizes = [8, 32], strides = [1, 1]} : vector<128x32xf32> to vector<8x32xf32>
    %cst_200 = arith.constant 2.500000e-01 : f32
    %642 = vector.broadcast %cst_200 : f32 to vector<8x32xf32>
    %643 = arith.mulf %642, %640 : vector<8x32xf32>
    %cst_201 = arith.constant 7.500000e-01 : f32
    %644 = vector.broadcast %cst_201 : f32 to vector<8x32xf32>
    %645 = arith.mulf %644, %641 : vector<8x32xf32>
    %646 = arith.addf %643, %645 : vector<8x32xf32>
    %647 = vector.extract_strided_slice %463 {offsets = [104, 0], sizes = [8, 32], strides = [1, 1]} : vector<128x32xf32> to vector<8x32xf32>
    %648 = vector.extract_strided_slice %463 {offsets = [112, 0], sizes = [8, 32], strides = [1, 1]} : vector<128x32xf32> to vector<8x32xf32>
    %cst_202 = arith.constant 7.500000e-01 : f32
    %649 = vector.broadcast %cst_202 : f32 to vector<8x32xf32>
    %650 = arith.mulf %649, %647 : vector<8x32xf32>
    %cst_203 = arith.constant 2.500000e-01 : f32
    %651 = vector.broadcast %cst_203 : f32 to vector<8x32xf32>
    %652 = arith.mulf %651, %648 : vector<8x32xf32>
    %653 = arith.addf %650, %652 : vector<8x32xf32>
    %654 = vector.extract_strided_slice %463 {offsets = [104, 0], sizes = [8, 32], strides = [1, 1]} : vector<128x32xf32> to vector<8x32xf32>
    %655 = vector.extract_strided_slice %463 {offsets = [112, 0], sizes = [8, 32], strides = [1, 1]} : vector<128x32xf32> to vector<8x32xf32>
    %cst_204 = arith.constant 2.500000e-01 : f32
    %656 = vector.broadcast %cst_204 : f32 to vector<8x32xf32>
    %657 = arith.mulf %656, %654 : vector<8x32xf32>
    %cst_205 = arith.constant 7.500000e-01 : f32
    %658 = vector.broadcast %cst_205 : f32 to vector<8x32xf32>
    %659 = arith.mulf %658, %655 : vector<8x32xf32>
    %660 = arith.addf %657, %659 : vector<8x32xf32>
    %661 = vector.extract_strided_slice %463 {offsets = [112, 0], sizes = [8, 32], strides = [1, 1]} : vector<128x32xf32> to vector<8x32xf32>
    %662 = vector.extract_strided_slice %463 {offsets = [120, 0], sizes = [8, 32], strides = [1, 1]} : vector<128x32xf32> to vector<8x32xf32>
    %cst_206 = arith.constant 7.500000e-01 : f32
    %663 = vector.broadcast %cst_206 : f32 to vector<8x32xf32>
    %664 = arith.mulf %663, %661 : vector<8x32xf32>
    %cst_207 = arith.constant 2.500000e-01 : f32
    %665 = vector.broadcast %cst_207 : f32 to vector<8x32xf32>
    %666 = arith.mulf %665, %662 : vector<8x32xf32>
    %667 = arith.addf %664, %666 : vector<8x32xf32>
    %668 = vector.extract_strided_slice %463 {offsets = [112, 0], sizes = [8, 32], strides = [1, 1]} : vector<128x32xf32> to vector<8x32xf32>
    %669 = vector.extract_strided_slice %463 {offsets = [120, 0], sizes = [8, 32], strides = [1, 1]} : vector<128x32xf32> to vector<8x32xf32>
    %cst_208 = arith.constant 2.500000e-01 : f32
    %670 = vector.broadcast %cst_208 : f32 to vector<8x32xf32>
    %671 = arith.mulf %670, %668 : vector<8x32xf32>
    %cst_209 = arith.constant 7.500000e-01 : f32
    %672 = vector.broadcast %cst_209 : f32 to vector<8x32xf32>
    %673 = arith.mulf %672, %669 : vector<8x32xf32>
    %674 = arith.addf %671, %673 : vector<8x32xf32>
    %675 = vector.extract_strided_slice %463 {offsets = [120, 0], sizes = [8, 32], strides = [1, 1]} : vector<128x32xf32> to vector<8x32xf32>
    %676 = tpu.concatenate %464, %471, %478, %485, %492, %499, %506, %513, %520, %527, %534, %541, %548, %555, %562, %569 in 1 : vector<8x32xf32>, vector<8x32xf32>, vector<8x32xf32>, vector<8x32xf32>, vector<8x32xf32>, vector<8x32xf32>, vector<8x32xf32>, vector<8x32xf32>, vector<8x32xf32>, vector<8x32xf32>, vector<8x32xf32>, vector<8x32xf32>, vector<8x32xf32>, vector<8x32xf32>, vector<8x32xf32>, vector<8x32xf32> -> vector<8x512xf32>
    %677 = tpu.concatenate %576, %583, %590, %597, %604, %611, %618, %625, %632, %639, %646, %653, %660, %667, %674, %675 in 1 : vector<8x32xf32>, vector<8x32xf32>, vector<8x32xf32>, vector<8x32xf32>, vector<8x32xf32>, vector<8x32xf32>, vector<8x32xf32>, vector<8x32xf32>, vector<8x32xf32>, vector<8x32xf32>, vector<8x32xf32>, vector<8x32xf32>, vector<8x32xf32>, vector<8x32xf32>, vector<8x32xf32>, vector<8x32xf32> -> vector<8x512xf32>
    %678 = tpu.concatenate %676, %677 in 1 : vector<8x512xf32>, vector<8x512xf32> -> vector<8x1024xf32>
    %679 = tpu.iota {dimensions = array<i32: 1>} : vector<1x1024xi32>
    %c32_i32 = arith.constant 32 : i32
    %c0_i32_210 = arith.constant 0 : i32
    %680 = arith.cmpi eq, %c32_i32, %c0_i32_210 : i32
    %c1_i32_211 = arith.constant 1 : i32
    %681 = arith.select %680, %c1_i32_211, %c32_i32 : i32
    %682 = vector.broadcast %681 : i32 to vector<1x1024xi32>
    %683 = arith.remsi %679, %682 : vector<1x1024xi32>
    %c0_i32_212 = arith.constant 0 : i32
    %684 = vector.broadcast %c0_i32_212 : i32 to vector<1x1024xi32>
    %685 = arith.cmpi ne, %683, %684 : vector<1x1024xi32>
    %c0_i32_213 = arith.constant 0 : i32
    %686 = vector.broadcast %c0_i32_213 : i32 to vector<1x1024xi32>
    %687 = arith.cmpi slt, %683, %686 : vector<1x1024xi32>
    %c0_i32_214 = arith.constant 0 : i32
    %688 = arith.cmpi slt, %681, %c0_i32_214 : i32
    %689 = vector.broadcast %688 : i1 to vector<1x1024xi1>
    %690 = vector.broadcast %689 : vector<1x1024xi1> to vector<1x1024xi1>
    %691 = arith.xori %687, %690 : vector<1x1024xi1>
    %692 = arith.andi %691, %685 : vector<1x1024xi1>
    %693 = vector.broadcast %681 : i32 to vector<1x1024xi32>
    %694 = arith.addi %683, %693 : vector<1x1024xi32>
    %695 = arith.select %692, %694, %683 : vector<1x1024xi1>, vector<1x1024xi32>
    %c1_i32_215 = arith.constant 1 : i32
    %696 = vector.broadcast %c1_i32_215 : i32 to vector<1x1024xi32>
    %697 = arith.cmpi sge, %695, %696 : vector<1x1024xi32>
    %c30_i32 = arith.constant 30 : i32
    %698 = vector.broadcast %c30_i32 : i32 to vector<1x1024xi32>
    %699 = arith.cmpi sle, %695, %698 : vector<1x1024xi32>
    %c2_216 = arith.constant 2 : index
    %c0_217 = arith.constant 0 : index
    %c0_218 = arith.constant 0 : index
    %c0_219 = arith.constant 0 : index
    %700 = vector.load %arg5[%c2_216, %c0_217, %c0_218, %c0_219] : memref<3x9x8x8xf32, #tpu.memory_space<vmem>>, vector<1x9x8x8xf32>
    %701 = vector.shape_cast %700 : vector<1x9x8x8xf32> to vector<9x8x8xf32>
    %c4 = arith.constant 4 : index
    %c0_220 = arith.constant 0 : index
    %c0_221 = arith.constant 0 : index
    %702 = vector.load %arg6[%c4, %c0_220, %c0_221] : memref<5x8x1xf32, #tpu.memory_space<vmem>>, vector<1x8x1xf32>
    %703 = vector.shape_cast %702 : vector<1x8x1xf32> to vector<8x1xf32>
    %c1_i32_222 = arith.constant 1 : i32
    %704 = tpu.dynamic_rotate %678 by %c1_i32_222 dim 1 : vector<8x1024xf32>, i32 -> vector<8x1024xf32>
    %cst_223 = arith.constant 0.000000e+00 : f32
    %705 = vector.shape_cast %697 : vector<1x1024xi1> to vector<1x1024xi1>
    %706 = vector.broadcast %705 : vector<1x1024xi1> to vector<8x1024xi1>
    %707 = vector.broadcast %cst_223 : f32 to vector<8x1024xf32>
    %708 = arith.select %706, %704, %707 : vector<8x1024xi1>, vector<8x1024xf32>
    %c1023_i32 = arith.constant 1023 : i32
    %709 = tpu.dynamic_rotate %678 by %c1023_i32 dim 1 : vector<8x1024xf32>, i32 -> vector<8x1024xf32>
    %cst_224 = arith.constant 0.000000e+00 : f32
    %710 = vector.shape_cast %699 : vector<1x1024xi1> to vector<1x1024xi1>
    %711 = vector.broadcast %710 : vector<1x1024xi1> to vector<8x1024xi1>
    %712 = vector.broadcast %cst_224 : f32 to vector<8x1024xf32>
    %713 = arith.select %711, %709, %712 : vector<8x1024xi1>, vector<8x1024xf32>
    %cst_225 = arith.constant 0.000000e+00 : f32
    %714 = vector.broadcast %cst_225 : f32 to vector<8x32xf32>
    %715 = vector.extract_strided_slice %708 {offsets = [0, 0], sizes = [8, 992], strides = [1, 1]} : vector<8x1024xf32> to vector<8x992xf32>
    %716 = tpu.concatenate %714, %715 in 1 : vector<8x32xf32>, vector<8x992xf32> -> vector<8x1024xf32>
    %717 = vector.extract_strided_slice %701 {offsets = [0, 0, 0], sizes = [1, 8, 8], strides = [1, 1, 1]} : vector<9x8x8xf32> to vector<1x8x8xf32>
    %718 = vector.shape_cast %717 : vector<1x8x8xf32> to vector<8x8xf32>
    %cst_226 = arith.constant dense<0.000000e+00> : vector<8x1024xf32>
    %719 = tpu.matmul %718, %716, %cst_226 {dimension_numbers = #tpu.dot_dimension_numbers<[1], [0], [0], [1], [0, 0, 1, 1], [], []>} : vector<8x8xf32>, vector<8x1024xf32>, vector<8x1024xf32> -> vector<8x1024xf32>
    %cst_227 = arith.constant 0.000000e+00 : f32
    %720 = vector.broadcast %cst_227 : f32 to vector<8x32xf32>
    %721 = vector.extract_strided_slice %678 {offsets = [0, 0], sizes = [8, 992], strides = [1, 1]} : vector<8x1024xf32> to vector<8x992xf32>
    %722 = tpu.concatenate %720, %721 in 1 : vector<8x32xf32>, vector<8x992xf32> -> vector<8x1024xf32>
    %723 = vector.extract_strided_slice %701 {offsets = [1, 0, 0], sizes = [1, 8, 8], strides = [1, 1, 1]} : vector<9x8x8xf32> to vector<1x8x8xf32>
    %724 = vector.shape_cast %723 : vector<1x8x8xf32> to vector<8x8xf32>
    %cst_228 = arith.constant dense<0.000000e+00> : vector<8x1024xf32>
    %725 = tpu.matmul %724, %722, %cst_228 {dimension_numbers = #tpu.dot_dimension_numbers<[1], [0], [0], [1], [0, 0, 1, 1], [], []>} : vector<8x8xf32>, vector<8x1024xf32>, vector<8x1024xf32> -> vector<8x1024xf32>
    %726 = arith.addf %719, %725 : vector<8x1024xf32>
    %cst_229 = arith.constant 0.000000e+00 : f32
    %727 = vector.broadcast %cst_229 : f32 to vector<8x32xf32>
    %728 = vector.extract_strided_slice %713 {offsets = [0, 0], sizes = [8, 992], strides = [1, 1]} : vector<8x1024xf32> to vector<8x992xf32>
    %729 = tpu.concatenate %727, %728 in 1 : vector<8x32xf32>, vector<8x992xf32> -> vector<8x1024xf32>
    %730 = vector.extract_strided_slice %701 {offsets = [2, 0, 0], sizes = [1, 8, 8], strides = [1, 1, 1]} : vector<9x8x8xf32> to vector<1x8x8xf32>
    %731 = vector.shape_cast %730 : vector<1x8x8xf32> to vector<8x8xf32>
    %cst_230 = arith.constant dense<0.000000e+00> : vector<8x1024xf32>
    %732 = tpu.matmul %731, %729, %cst_230 {dimension_numbers = #tpu.dot_dimension_numbers<[1], [0], [0], [1], [0, 0, 1, 1], [], []>} : vector<8x8xf32>, vector<8x1024xf32>, vector<8x1024xf32> -> vector<8x1024xf32>
    %733 = arith.addf %726, %732 : vector<8x1024xf32>
    %734 = vector.extract_strided_slice %701 {offsets = [3, 0, 0], sizes = [1, 8, 8], strides = [1, 1, 1]} : vector<9x8x8xf32> to vector<1x8x8xf32>
    %735 = vector.shape_cast %734 : vector<1x8x8xf32> to vector<8x8xf32>
    %cst_231 = arith.constant dense<0.000000e+00> : vector<8x1024xf32>
    %736 = tpu.matmul %735, %708, %cst_231 {dimension_numbers = #tpu.dot_dimension_numbers<[1], [0], [0], [1], [0, 0, 1, 1], [], []>} : vector<8x8xf32>, vector<8x1024xf32>, vector<8x1024xf32> -> vector<8x1024xf32>
    %737 = arith.addf %733, %736 : vector<8x1024xf32>
    %738 = vector.extract_strided_slice %701 {offsets = [4, 0, 0], sizes = [1, 8, 8], strides = [1, 1, 1]} : vector<9x8x8xf32> to vector<1x8x8xf32>
    %739 = vector.shape_cast %738 : vector<1x8x8xf32> to vector<8x8xf32>
    %cst_232 = arith.constant dense<0.000000e+00> : vector<8x1024xf32>
    %740 = tpu.matmul %739, %678, %cst_232 {dimension_numbers = #tpu.dot_dimension_numbers<[1], [0], [0], [1], [0, 0, 1, 1], [], []>} : vector<8x8xf32>, vector<8x1024xf32>, vector<8x1024xf32> -> vector<8x1024xf32>
    %741 = arith.addf %737, %740 : vector<8x1024xf32>
    %742 = vector.extract_strided_slice %701 {offsets = [5, 0, 0], sizes = [1, 8, 8], strides = [1, 1, 1]} : vector<9x8x8xf32> to vector<1x8x8xf32>
    %743 = vector.shape_cast %742 : vector<1x8x8xf32> to vector<8x8xf32>
    %cst_233 = arith.constant dense<0.000000e+00> : vector<8x1024xf32>
    %744 = tpu.matmul %743, %713, %cst_233 {dimension_numbers = #tpu.dot_dimension_numbers<[1], [0], [0], [1], [0, 0, 1, 1], [], []>} : vector<8x8xf32>, vector<8x1024xf32>, vector<8x1024xf32> -> vector<8x1024xf32>
    %745 = arith.addf %741, %744 : vector<8x1024xf32>
    %746 = vector.extract_strided_slice %708 {offsets = [0, 32], sizes = [8, 992], strides = [1, 1]} : vector<8x1024xf32> to vector<8x992xf32>
    %cst_234 = arith.constant 0.000000e+00 : f32
    %747 = vector.broadcast %cst_234 : f32 to vector<8x32xf32>
    %748 = tpu.concatenate %746, %747 in 1 : vector<8x992xf32>, vector<8x32xf32> -> vector<8x1024xf32>
    %749 = vector.extract_strided_slice %701 {offsets = [6, 0, 0], sizes = [1, 8, 8], strides = [1, 1, 1]} : vector<9x8x8xf32> to vector<1x8x8xf32>
    %750 = vector.shape_cast %749 : vector<1x8x8xf32> to vector<8x8xf32>
    %cst_235 = arith.constant dense<0.000000e+00> : vector<8x1024xf32>
    %751 = tpu.matmul %750, %748, %cst_235 {dimension_numbers = #tpu.dot_dimension_numbers<[1], [0], [0], [1], [0, 0, 1, 1], [], []>} : vector<8x8xf32>, vector<8x1024xf32>, vector<8x1024xf32> -> vector<8x1024xf32>
    %752 = arith.addf %745, %751 : vector<8x1024xf32>
    %753 = vector.extract_strided_slice %678 {offsets = [0, 32], sizes = [8, 992], strides = [1, 1]} : vector<8x1024xf32> to vector<8x992xf32>
    %cst_236 = arith.constant 0.000000e+00 : f32
    %754 = vector.broadcast %cst_236 : f32 to vector<8x32xf32>
    %755 = tpu.concatenate %753, %754 in 1 : vector<8x992xf32>, vector<8x32xf32> -> vector<8x1024xf32>
    %756 = vector.extract_strided_slice %701 {offsets = [7, 0, 0], sizes = [1, 8, 8], strides = [1, 1, 1]} : vector<9x8x8xf32> to vector<1x8x8xf32>
    %757 = vector.shape_cast %756 : vector<1x8x8xf32> to vector<8x8xf32>
    %cst_237 = arith.constant dense<0.000000e+00> : vector<8x1024xf32>
    %758 = tpu.matmul %757, %755, %cst_237 {dimension_numbers = #tpu.dot_dimension_numbers<[1], [0], [0], [1], [0, 0, 1, 1], [], []>} : vector<8x8xf32>, vector<8x1024xf32>, vector<8x1024xf32> -> vector<8x1024xf32>
    %759 = arith.addf %752, %758 : vector<8x1024xf32>
    %760 = vector.extract_strided_slice %713 {offsets = [0, 32], sizes = [8, 992], strides = [1, 1]} : vector<8x1024xf32> to vector<8x992xf32>
    %cst_238 = arith.constant 0.000000e+00 : f32
    %761 = vector.broadcast %cst_238 : f32 to vector<8x32xf32>
    %762 = tpu.concatenate %760, %761 in 1 : vector<8x992xf32>, vector<8x32xf32> -> vector<8x1024xf32>
    %763 = vector.extract_strided_slice %701 {offsets = [8, 0, 0], sizes = [1, 8, 8], strides = [1, 1, 1]} : vector<9x8x8xf32> to vector<1x8x8xf32>
    %764 = vector.shape_cast %763 : vector<1x8x8xf32> to vector<8x8xf32>
    %cst_239 = arith.constant dense<0.000000e+00> : vector<8x1024xf32>
    %765 = tpu.matmul %764, %762, %cst_239 {dimension_numbers = #tpu.dot_dimension_numbers<[1], [0], [0], [1], [0, 0, 1, 1], [], []>} : vector<8x8xf32>, vector<8x1024xf32>, vector<8x1024xf32> -> vector<8x1024xf32>
    %766 = arith.addf %759, %765 : vector<8x1024xf32>
    %767 = vector.broadcast %703 : vector<8x1xf32> to vector<8x1024xf32>
    %768 = arith.addf %766, %767 : vector<8x1024xf32>
    %cst_240 = arith.constant 0.000000e+00 : f32
    %769 = vector.broadcast %cst_240 : f32 to vector<8x1024xf32>
    %770 = arith.maximumf %768, %769 : vector<8x1024xf32>
    %c0_241 = arith.constant 0 : index
    %c0_242 = arith.constant 0 : index
    %771 = vector.load %arg7[%c0_241, %c0_242] : memref<5x8xf32, #tpu.memory_space<vmem>>, vector<5x8xf32>
    %cst_243 = arith.constant dense<0.000000e+00> : vector<5x1024xf32>
    %772 = tpu.matmul %771, %770, %cst_243 {dimension_numbers = #tpu.dot_dimension_numbers<[1], [0], [0], [1], [0, 0, 1, 1], [], []>} : vector<5x8xf32>, vector<8x1024xf32>, vector<5x1024xf32> -> vector<5x1024xf32>
    %c0_244 = arith.constant 0 : index
    %c0_245 = arith.constant 0 : index
    %773 = vector.load %arg8[%c0_244, %c0_245] : memref<5x1xf32, #tpu.memory_space<vmem>>, vector<5x1xf32>
    %774 = vector.broadcast %773 : vector<5x1xf32> to vector<5x1024xf32>
    %775 = arith.addf %772, %774 : vector<5x1024xf32>
    %c0_246 = arith.constant 0 : index
    %c0_247 = arith.constant 0 : index
    %c0_248 = arith.constant 0 : index
    %776 = vector.load %arg11[%c0_246, %c0_247, %c0_248] : memref<1x5x1024xf32, #tpu.memory_space<vmem>>, vector<1x5x1024xf32>
    %777 = vector.shape_cast %776 : vector<1x5x1024xf32> to vector<5x1024xf32>
    %778 = vector.shape_cast %775 : vector<5x1024xf32> to vector<1x5x1024xf32>
    tpu.vector_store %arg11[%c0_246, %c0_247, %c0_248], %778 {strides = array<i32>} : memref<1x5x1024xf32, #tpu.memory_space<vmem>>, vector<1x5x1024xf32>,
    return
  }
  func.func @transform_0(%arg0: i32) -> (i32, i32, i32) {
    %c0_i32 = arith.constant 0 : i32
    %c0_i32_0 = arith.constant 0 : i32
    %c0_i32_1 = arith.constant 0 : i32
    return %arg0, %c0_i32, %c0_i32_0 : i32, i32, i32
  }
  func.func @transform_1(%arg0: i32) -> (i32, i32, i32) {
    %c0_i32 = arith.constant 0 : i32
    %c0_i32_0 = arith.constant 0 : i32
    %c0_i32_1 = arith.constant 0 : i32
    return %arg0, %c0_i32, %c0_i32_0 : i32, i32, i32
  }
  func.func @transform_2(%arg0: i32) -> (i32, i32, i32) {
    %c0_i32 = arith.constant 0 : i32
    %c0_i32_0 = arith.constant 0 : i32
    %c0_i32_1 = arith.constant 0 : i32
    %c0_i32_2 = arith.constant 0 : i32
    return %c0_i32, %c0_i32_0, %c0_i32_1 : i32, i32, i32
  }
  func.func @transform_3(%arg0: i32) -> (i32, i32, i32) {
    %c0_i32 = arith.constant 0 : i32
    %c0_i32_0 = arith.constant 0 : i32
    %c0_i32_1 = arith.constant 0 : i32
    %c0_i32_2 = arith.constant 0 : i32
    return %c0_i32, %c0_i32_0, %c0_i32_1 : i32, i32, i32
  }
  func.func @transform_4(%arg0: i32) -> (i32, i32, i32, i32) {
    %c0_i32 = arith.constant 0 : i32
    %c0_i32_0 = arith.constant 0 : i32
    %c0_i32_1 = arith.constant 0 : i32
    %c0_i32_2 = arith.constant 0 : i32
    %c0_i32_3 = arith.constant 0 : i32
    return %c0_i32, %c0_i32_0, %c0_i32_1, %c0_i32_2 : i32, i32, i32, i32
  }
  func.func @transform_5(%arg0: i32) -> (i32, i32, i32) {
    %c0_i32 = arith.constant 0 : i32
    %c0_i32_0 = arith.constant 0 : i32
    %c0_i32_1 = arith.constant 0 : i32
    %c0_i32_2 = arith.constant 0 : i32
    return %c0_i32, %c0_i32_0, %c0_i32_1 : i32, i32, i32
  }
  func.func @transform_6(%arg0: i32) -> (i32, i32) {
    %c0_i32 = arith.constant 0 : i32
    %c0_i32_0 = arith.constant 0 : i32
    %c0_i32_1 = arith.constant 0 : i32
    return %c0_i32, %c0_i32_0 : i32, i32
  }
  func.func @transform_7(%arg0: i32) -> (i32, i32) {
    %c0_i32 = arith.constant 0 : i32
    %c0_i32_0 = arith.constant 0 : i32
    %c0_i32_1 = arith.constant 0 : i32
    return %c0_i32, %c0_i32_0 : i32, i32
  }
  func.func @transform_8(%arg0: i32) -> (i32, i32) {
    %c0_i32 = arith.constant 0 : i32
    %c0_i32_0 = arith.constant 0 : i32
    %c0_i32_1 = arith.constant 0 : i32
    return %c0_i32, %c0_i32_0 : i32, i32
  }
  func.func @transform_9(%arg0: i32) -> (i32, i32) {
    %c0_i32 = arith.constant 0 : i32
    %c0_i32_0 = arith.constant 0 : i32
    %c0_i32_1 = arith.constant 0 : i32
    return %c0_i32, %c0_i32_0 : i32, i32
  }
  func.func @transform_10(%arg0: i32) -> (i32, i32, i32) {
    %c0_i32 = arith.constant 0 : i32
    %c0_i32_0 = arith.constant 0 : i32
    %c0_i32_1 = arith.constant 0 : i32
    return %arg0, %c0_i32, %c0_i32_0 : i32, i32, i32
  }
}

</mosaic_0001>

<bundles_post_ra>
// kernel: tpu_custom_call.1
= control target key start
LH: loop header
LB: loop body
LE: loop exit
PB: predicated region body
PF: predicated region fallthrough
CT: control target
= control target key end

     0   :  { %s5480_s13 = smov 0   ;;  %s6910_s0 = inlined_call_operand.vmem [shape: f32[2,4,256], index: 0, kind: input, shape index: {}]   ;;  %s6911_s1 = inlined_call_operand.vmem [shape: f32[2,6,64], index: 1, kind: input, shape index: {}]   ;;  %s6912_s2 = inlined_call_operand.vmem [shape: f32[9,8,4], index: 2, kind: input, shape index: {}]   ;;  %s6913_s3 = inlined_call_operand.vmem [shape: f32[9,8,6], index: 3, kind: input, shape index: {}]   ;;  %s6914_s4 = inlined_call_operand.vmem [shape: f32[3,9,8,8], index: 4, kind: input, shape index: {}]   ;;  %s6915_s5 = inlined_call_operand.vmem [shape: f32[5,8,1], index: 5, kind: input, shape index: {}]   ;;  %s6916_s6 = inlined_call_operand.vmem [shape: f32[5,8], index: 6, kind: input, shape index: {}]   ;;  %s6917_s7 = inlined_call_operand.vmem [shape: f32[5,1], index: 7, kind: input, shape index: {}]   ;;  %s6918_s8 = inlined_call_operand.vmem [shape: f32[8,16], index: 8, kind: input, shape index: {}]   ;;  %s6919_s9 = inlined_call_operand.vmem [shape: f32[16,32], index: 9, kind: input, shape index: {}]   ;;  %s6920_s10 = inlined_call_operand.vmem [shape: f32[2,5,1024], index: 10, kind: output, shape index: {}]  }
   0x1 LB: > { %s4990_s14 = sadd.s32 4294967295, %s5408_s13   ;;  %p4994_p0 = scmp.ge.s32.totalorder %s5408_s13, 1  ;;  %s5408_s13 = sphi %s5480_s13, %s20_s13  }
   0x2   : > { %p321_p1 = scmp.lt.s32.totalorder %s5408_s13, 3 }
   0x4   : > { %p322_p2 = pnand %p4994_p0, %p321_p1 }
   0x6   : > { %325 = sbr.rel (%p322_p2) target bundleno = 2854 (0xb26), region = 60 }
   0xb   : > { %p363_p3 = scmp.lt.s32.totalorder %s4990_s14, 1  ;;  %s5410_s22 = smov 1   ;;  %v377_v11 = vlaneseq  ;;  %vm1005_vm6 = vcmask 515072   ;;  %vm997_vm8 = vcmask 7168   ;;  %vm462_vm10 = vcmask 130048   ;;  %v409_v42 = vld [vmem:[%s6912_s2] sm:$0xff] }
   0xc   : > { %s5411_s23 = smov 127   ;;  %s5412_s24 = smov 16   ;;  %vm480_vm11 = vcmask 1043456   ;;  %vm476_vm12 = vcmask 31744   ;;  %v410_v45 = vld [vmem:[%s6912_s2 + $0x8] sm:$0xff]  ;;  %v412_v48 = vld [vmem:[%s6912_s2 + $0x18] sm:$0xff] }
   0xd   : > { %s7113_s14 = smov (!%p363_p3, %s4990_s14), 1  ;;  %s5413_s25 = smov 112   ;;  %v5513_v12 = vand.u32 127, %v377_v11  ;;  %v414_v49 = vld [vmem:[%s6912_s2 + $0x28] sm:$0xff]  ;;  %v411_v57 = vld [vmem:[%s6912_s2 + $0x10] sm:$0xff]  ;;  %vm787_vm13 = vcmask 916480  }
   0xe   : > { %s5269_s15 = sshll.u32 %s7113_s14, 3  ;;  %s5414_s26 = smov 120   ;;  %vm1024_vm14 = vcmask 1045504   ;;  %vm6926_vm15 = vcmask 64512   ;;  %v5104_v25 = vld [vmem:[%s6915_s5 + $0x18] sm:$0xff]  ;;  %v5102_v18 = vld [vmem:[%s6914_s4 + $0x80] sm:$0xff] }
   0xf   : > { %s367_s18 = scalar_lea.vmem %s6910_s0, %s5269_s15  ;;  %s371_s21 = scalar_lea.vmem %s6911_s1, %s5269_s15  ;;  %v5516_v13 = vadd.s32 128, %v5513_v12  ;;  %v384_v15 = vand.u32 15, %v5513_v12  ;;  %vm429_vm0 = vcmp.lt.s32.totalorder %v5513_v12, 1  ;;  %vm6927_vm3 = vcmp.lt.s32.totalorder %v5513_v12, 127 }
  0x10   : > { %v408_v0 = vld [vmem:[%s367_s18] sm:$0xff]  ;;  %v971_v33 = vand.u32 7, %v5513_v12  ;;  %s5415_s27 = smov 8   ;;  %s5417_s29 = smov 88  }
  0x11   : > { %v5497_v1 = vld [vmem:[%s371_s21] sm:$0x3f]  ;;  %420 = vst [vmem:[#allocation1] ss:$2 sm:$0xff] %v408_v0  ;;  %v391_v16 = vand.u32 15, %v5516_v13  ;;  %vm5521_vm1 = vcmp.ge.s32.totalorder %v384_v15, 1 }
  0x12   : > { %994 = vrot.lane.b32.xlu2 %v5497_v1, %s5410_s22  ;;  %vm5545_vm4 = vcmp.le.s32.totalorder %v384_v15, 14  ;;  %vm980_vm7 = vcmp.le.s32.totalorder %v971_v33, 6  ;;  %vm979_vm9 = vcmp.ge.s32.totalorder %v971_v33, 1  ;;  %s5418_s12 = smov 96   ;;  %s5419_s15 = smov 104  }
  0x13   : > { %vm5525_vm2 = vcmp.ge.s32.totalorder %v391_v16, 1  ;;  %vm5549_vm5 = vcmp.le.s32.totalorder %v391_v16, 14  ;;  %s5420_s16 = smov 72   ;;  %s5421_s17 = smov 80  }
  0x14   : > { %s5423_s18 = smov 48   ;;  %s5424_s19 = smov 64  }
  0x18   : > { %v421_v2 = vld.sshfl [vmem:[#allocation1] sm:$0xff pattern:$0x75316420]  ;;  %v422_v3 = vld.sshfl [vmem:[#allocation1 + $0x8] sm:$0xff pattern:$0x75316420] }
  0x19   : > { %425 = vrot.lane.b32.xlu0 %v421_v2, %s5410_s22  ;;  %438 = vst [vmem:[#allocation1] ss:$2 sm:$0xff] %v408_v0  ;;  %v413_v2 = vld [vmem:[%s6912_s2 + $0x20] sm:$0xff] }
  0x20   : > { %v439_v4 = vld.sshfl [vmem:[#allocation1] sm:$0xff pattern:$0x75316420]  ;;  %v440_v5 = vld.sshfl [vmem:[#allocation1 + $0x8] sm:$0xff pattern:$0x75316420] }
  0x21   : > { %427 = vrot.lane.b32.xlu0 %v422_v3, %s5410_s22  ;;  %443 = vrot.lane.b32.xlu1 %v439_v4, %s5411_s23  ;;  %466 = vst [vmem:[#allocation1] ss:$2 sm:$0xff] %v408_v0 }
  0x28   : > { %v468_v6 = vld.sshfl [vmem:[#allocation1 + $0x8] sm:$0xff pattern:$0x75316420]  ;;  %v467_v7 = vld.sshfl [vmem:[#allocation1] sm:$0xff pattern:$0x75316420] }
  0x29   : > { %445 = vrot.lane.b32.xlu1 %v440_v5, %s5411_s23  ;;  %1002 = vrot.lane.b32.xlu0 %v5497_v1, %s5411_s23  ;;  %682 = vst [vmem:[#allocation1] ss:$2 sm:$0xff] %v408_v0  ;;  %v416_v5 = vld [vmem:[%s6912_s2 + $0x38] sm:$0xff] }
  0x30   : > { %v5507_v8 = vld.sshfl [vmem:[#allocation1] sm:$0xff pattern:$0x75316420]  ;;  %v5509_v9 = vld.sshfl [vmem:[#allocation1 + $0x8] sm:$0xff pattern:$0x75316420] }
  0x31   : > { %471 = vrot.lane.b32.xlu0 %v468_v6, %s5412_s24  ;;  %841 = vst [vmem:[#allocation1] ss:$2 sm:$0xff] %v408_v0 }
  0x38   : > { %v842_v10 = vld.sshfl [vmem:[#allocation1] sm:$0xff pattern:$0x75316420]  ;;  %v843_v35 = vld.sshfl [vmem:[#allocation1 + $0x8] sm:$0xff pattern:$0x75316420] }
  0x39   : > { %844 = vrot.lane.b32.xlu0 %v842_v10, %s5413_s25  ;;  %v5416_v10 = vmov 0  }
  0x3a   : > { %5294 = vset.pattern.permute.xlu0 %v5416_v10  ;;  %5305 = vset.pattern.permute.xlu2 %v5416_v10 }
  0x3b   : > { %5401 = vset.pattern.permute.xlu1 %v5416_v10 }
  0x6c   : > { %v995_v37 = vpop.permute.xlu2 %994 }
  0x6d   : > { %v998_v38 = vsel %vm997_vm8, 0.0, %v995_v37  ;;  %v989_v37 = vld [vmem:[%s6913_s3 + $0x38] sm:$0xff]  ;;  %vm6928_vm8 = vcmask 261120  }
  0x6e   : > { %v5573_v39 = vsel %vm979_vm9, %v998_v38, 0.0  ;;  %vm1447_vm9 = vcmask 392192  }
  0x8b   : > { %v426_v14 = vpop.permute.xlu0 %425 }
  0x93   : > { %v428_v19 = vpop.permute.xlu0 %427  ;;  %v444_v20 = vpop.permute.xlu1 %443 }
  0x94   : > { %v431_v21 = vsel %vm429_vm0, %v428_v19, %v426_v14  ;;  %v430_v22 = vsel %vm429_vm0, %v426_v14, %v428_v19  ;;  %v415_v14 = vld [vmem:[%s6912_s2 + $0x30] sm:$0xff]  ;;  %v983_v19 = vld [vmem:[%s6913_s3 + $0x8] sm:$0xff] }
  0x95   : > { %v436_v23 = vsel %vm5521_vm1, %v431_v21, 0.0  ;;  %v5537_v24 = vsel %vm5525_vm2, %v430_v22, 0.0 }
  0x96   : > { %458 = vrot.lane.b32.xlu2 %v436_v23, %s5412_s24  ;;  %460 = vrot.lane.b32.xlu1 %v5537_v24, %s5412_s24 }
  0x97   : > { %785 = vrot.lane.b32.xlu0 %v5537_v24, %s5413_s25 }
  0x9b   : > { %v446_v27 = vpop.permute.xlu1 %445  ;;  %v1003_v32 = vpop.permute.xlu0 %1002 }
  0x9c   : > { %v448_v28 = vsel %vm6927_vm3, %v444_v20, %v446_v27  ;;  %v449_v29 = vsel %vm6927_vm3, %v446_v27, %v444_v20  ;;  %v1006_v34 = vsel %vm1005_vm6, %v1003_v32, 0.0  ;;  %vm1020_vm6 = vcmask 48128   ;;  %v985_v32 = vld [vmem:[%s6913_s3 + $0x18] sm:$0xff] }
  0x9d   : > { %v454_v30 = vsel %vm5545_vm4, %v448_v28, 0.0  ;;  %v455_v31 = vsel %vm5549_vm5, %v449_v29, 0.0  ;;  %v5565_v36 = vsel %vm980_vm7, %v1006_v34, 0.0  ;;  %vm1187_vm7 = vcmask 457728   ;;  %v982_v28 = vld [vmem:[%s6913_s3] sm:$0xff]  ;;  %v987_v34 = vld [vmem:[%s6913_s3 + $0x28] sm:$0xff] }
  0x9e   : > { %576 = vrot.lane.b32.xlu1 %v454_v30, %s5412_s24  ;;  %469 = vrot.lane.b32.xlu2 %v467_v7, %s5412_s24 }
  0x9f   : > { %903 = vrot.lane.b32.xlu0 %v455_v31, %s5413_s25 }
  0xa3   : > { %v472_v43 = vpop.permute.xlu0 %471 }
  0xa6   : > { %578 = vrot.lane.b32.xlu2 %v455_v31, %s5412_s24  ;;  %846 = vrot.lane.b32.xlu1 %v843_v35, %s5413_s25  ;;  %v990_v35 = vld [vmem:[%s6913_s3 + $0x40] sm:$0xff] }
  0xa7   : > { %1247 = vrot.lane.b32.xlu0 %v5565_v36, %s5414_s26 }
  0xab   : > { %v845_v51 = vpop.permute.xlu0 %844 }
  0xae   : > { %783 = vrot.lane.b32.xlu2 %v436_v23, %s5413_s25  ;;  %1016 = vrot.lane.b32.xlu1 %v5497_v1, %s5415_s27 }
  0xb6   : > { %901 = vrot.lane.b32.xlu2 %v454_v30, %s5413_s25  ;;  %1011 = vrot.lane.b32.xlu1 %v5573_v39, %s5415_s27 }
  0xbe   : > { %1184 = vrot.lane.b32.xlu1 %v5573_v39, %s5414_s26  ;;  %1075 = vrot.lane.b32.xlu2 %v5565_v36, %s5415_s27 }
  0xc6   : > { %1216 = vrot.lane.b32.xlu2 %v5497_v1, %s5414_s26 }
  0xf0   : > { %v459_v40 = vpop.permute.xlu2 %458 }
  0xf1   : > { %v465_v41 = vsel %vm462_vm10, 0.0, %v459_v40 }
  0xf2   : > { %5004 = vmatpush.msk.msra.mxu2 %vm480_vm11, %v465_v41 }
  0xf3   : > { %5005 = vmatmul.msk.f32.vlgmr.msra.gmra.mxu2 %vm476_vm12, %v409_v42 }
  0xf4   : > { %5012 = vmatpush.msk.msrb.mxu2 %vm480_vm11, %v436_v23 }
  0xf6   : > { %5020 = vmatpush.msk.msra.mxu2 %vm480_vm11, %v454_v30 }
  0xf8   : > { %v470_v44 = vpop.permute.xlu2 %469 }
  0xf9   : > { %v475_v46 = vsel %vm462_vm10, 0.0, %v470_v44  ;;  %v473_v47 = vsel %vm462_vm10, %v470_v44, %v472_v43 }
  0xfa   : > { %5000 = vmatpush.msk.msra.mxu0 %vm480_vm11, %v475_v46  ;;  %5002 = vmatpush.msk.msra.mxu1 %vm480_vm11, %v473_v47 }
  0xfb   : > { %5001 = vmatmul.msk.f32.vlgmr.msra.gmra.mxu0 %vm476_vm12, %v410_v45  ;;  %5003 = vmatmul.msk.f32.vlgmr.msra.gmra.mxu1 %vm476_vm12, %v410_v45 }
  0xfc   : > { %5013 = vmatmul.msk.f32.vlgmr.msrb.gmra.mxu2 %vm476_vm12, %v412_v48 }
 0x100   : > { %v579_v50 = vpop.permute.xlu2 %578 }
 0x104   : > { %5021 = vmatmul.msk.f32.vlgmr.msra.gmra.mxu2 %vm476_vm12, %v414_v49 }
 0x108   : > { %v461_v52 = vpop.permute.xlu1 %460  ;;  %v784_v54 = vpop.permute.xlu2 %783 }
 0x109   : > { %v463_v53 = vsel %vm462_vm10, %v459_v40, %v461_v52  ;;  %v786_v55 = vpop.permute.xlu0 %785 }
 0x10a   : > { %5006 = vmatpush.msk.msra.mxu3 %vm480_vm11, %v463_v53  ;;  %v788_v60 = vsel %vm787_vm13, %v784_v54, %v786_v55  ;;  %v790_v61 = vsel %vm787_vm13, %v786_v55, 0.0  ;;  %v1285_v53 = vld [vmem:[%s6918_s8] sm:$0xff] }
 0x10b   : > { %5007 = vmatmul.msk.f32.vlgmr.msra.gmra.mxu3 %vm476_vm12, %v409_v42 }
 0x10c   : > { %5014 = vmatpush.msk.msrb.mxu3 %vm480_vm11, %v5537_v24  ;;  %v417_v24 = vld [vmem:[%s6912_s2 + $0x40] sm:$0xff] }
 0x10e   : > { %5022 = vmatpush.msk.msra.mxu3 %vm480_vm11, %v455_v31  ;;  %v984_v31 = vld [vmem:[%s6913_s3 + $0x10] sm:$0xff] }
 0x110   : > { %v577_v56 = vpop.permute.xlu1 %576  ;;  %v902_v62 = vpop.permute.xlu2 %901 }
 0x111   : > { %v582_v58 = vsel %vm462_vm10, 0.0, %v577_v56  ;;  %v580_v59 = vsel %vm462_vm10, %v577_v56, %v579_v50  ;;  %v904_v63 = vpop.permute.xlu0 %903 }
 0x112   : > { %5008 = vmatpush.msk.msrb.mxu0 %vm480_vm11, %v582_v58  ;;  %5010 = vmatpush.msk.msrb.mxu1 %vm480_vm11, %v580_v59  ;;  %v905_v6 = vsel %vm787_vm13, %v902_v62, %v904_v63  ;;  %v907_v7 = vsel %vm787_vm13, %v904_v63, 0.0 }
 0x113   : > { %5009 = vmatmul.msk.f32.vlgmr.msrb.gmra.mxu0 %vm476_vm12, %v411_v57  ;;  %5011 = vmatmul.msk.f32.vlgmr.msrb.gmra.mxu1 %vm476_vm12, %v411_v57 }
 0x114   : > { %5015 = vmatmul.msk.f32.vlgmr.msrb.gmra.mxu3 %vm476_vm12, %v412_v48  ;;  %5016 = vmatpush.msk.msra.mxu0 %vm480_vm11, %v5507_v8  ;;  %v5036_v8 = vld [vmem:[%s6915_s5 + $0x8] sm:$0xff] }
 0x115   : > { %5018 = vmatpush.msk.msra.mxu1 %vm480_vm11, %v5509_v9  ;;  %1280 = vperm.xlu0 %5294, %v5036_v8  }
 0x116   : > { %5024 = vmatpush.msk.msrb.mxu0 %vm480_vm11, %v788_v60 }
 0x117   : > { %5026 = vmatpush.msk.msrb.mxu1 %vm480_vm11, %v790_v61 }
 0x118   : > { %v847_v0 = vpop.permute.xlu1 %846  ;;  %v1076_v9 = vpop.permute.xlu2 %1075 }
 0x119   : > { %v848_v3 = vsel %vm787_vm13, %v845_v51, %v847_v0  ;;  %v850_v4 = vsel %vm787_vm13, %v847_v0, 0.0  ;;  %v1248_v16 = vpop.permute.xlu0 %1247  ;;  %v1078_v20 = vsel %vm6926_vm15, 0.0, %v1076_v9 }
 0x11a   : > { %5028 = vmatpush.msk.msrb.mxu2 %vm480_vm11, %v848_v3  ;;  %5030 = vmatpush.msk.msrb.mxu3 %vm480_vm11, %v850_v4  ;;  %v1250_v21 = vsel %vm1187_vm7, %v1248_v16, 0.0  ;;  %v418_v16 = vld [vmem:[%s6915_s5] sm:$0xff] }
 0x11b   : > { %5017 = vmatmul.msk.f32.vlgmr.msra.gmra.mxu0 %vm476_vm12, %v413_v2  ;;  %5019 = vmatmul.msk.f32.vlgmr.msra.gmra.mxu1 %vm476_vm12, %v413_v2 }
 0x11c   : > { %5023 = vmatmul.msk.f32.vlgmr.msra.gmra.mxu3 %vm476_vm12, %v414_v49  ;;  %5032 = vmatpush.msk.msra.mxu0 %vm480_vm11, %v905_v6 }
 0x11d   : > { %5034 = vmatpush.msk.msra.mxu1 %vm480_vm11, %v907_v7  ;;  %5029 = vmatmul.msk.f32.vlgmr.msrb.gmra.mxu2 %vm476_vm12, %v416_v5  ;;  %vm1449_vm11 = vcmask 523264  }
 0x120   : > { %v1017_v11 = vpop.permute.xlu1 %1016  ;;  %v1217_v22 = vpop.permute.xlu2 %1216 }
 0x121   : > { %v1019_v15 = vsel %vm6926_vm15, 0.0, %v1017_v11  ;;  %v1219_v29 = vsel %vm1187_vm7, %v1217_v22, 0.0 }
 0x122   : > { %5037 = vmatpush.msk.msra.mxu2 %vm1024_vm14, %v1019_v15 }
 0x123   : > { %5025 = vmatmul.msk.f32.vlgmr.msrb.gmra.mxu0 %vm476_vm12, %v415_v14  ;;  %5027 = vmatmul.msk.f32.vlgmr.msrb.gmra.mxu1 %vm476_vm12, %v415_v14 }
 0x124   : > { %5031 = vmatmul.msk.f32.vlgmr.msrb.gmra.mxu3 %vm476_vm12, %v416_v5  ;;  %5041 = vmatpush.msk.msrb.mxu0 %vm1024_vm14, %v1078_v20 }
 0x125   : > { %5043 = vmatpush.msk.msrb.mxu1 %vm1024_vm14, %v5573_v39  ;;  %5038 = vmatmul.msk.f32.vlgmr.msra.gmra.mxu2 %vm1020_vm6, %v983_v19 }
 0x126   : > { %5045 = vmatpush.msk.msrb.mxu2 %vm1024_vm14, %v5497_v1  ;;  %v986_v1 = vld [vmem:[%s6913_s3 + $0x20] sm:$0xff] }
 0x128   : > { %5053 = vmatpush.msk.msra.mxu2 %vm1024_vm14, %v1250_v21  ;;  %v1012_v23 = vpop.permute.xlu1 %1011 }
 0x129   : > { %v1015_v27 = vsel %vm6926_vm15, 0.0, %v1012_v23 }
 0x12a   : > { %5039 = vmatpush.msk.msra.mxu3 %vm1024_vm14, %v1015_v27 }
 0x12b   : > { %5033 = vmatmul.msk.f32.vlgmr.msra.gmra.mxu0 %vm476_vm12, %v417_v24  ;;  %5035 = vmatmul.msk.f32.vlgmr.msra.gmra.mxu1 %vm476_vm12, %v417_v24  ;;  %vm1451_vm12 = vcmask 654336  }
 0x12c   : > { %5040 = vmatmul.msk.f32.vlgmr.msra.gmra.mxu3 %vm1020_vm6, %v982_v28  ;;  %5051 = vmatpush.msk.msra.mxu1 %vm1024_vm14, %v1219_v29 }
 0x12d   : > { %5047 = vmatpush.msk.msrb.mxu3 %vm1024_vm14, %v5565_v36  ;;  %5046 = vmatmul.msk.f32.vlgmr.msrb.gmra.mxu2 %vm1020_vm6, %v986_v1  ;;  %v988_v36 = vld [vmem:[%s6913_s3 + $0x30] sm:$0xff] }
 0x12f   : > { %1332 = vmatpush.msra.mxu3 %v1285_v53 }
 0x130   : > { %v1185_v30 = vpop.permute.xlu1 %1184 }
 0x131   : > { %v1188_v33 = vsel %vm1187_vm7, %v1185_v30, 0.0 }
 0x132   : > { %5049 = vmatpush.msk.msra.mxu0 %vm1024_vm14, %v1188_v33  ;;  %vm6921_vm14 = vcmask 785408  }
 0x133   : > { %5042 = vmatmul.msk.f32.vlgmr.msrb.gmra.mxu0 %vm1020_vm6, %v984_v31  ;;  %5044 = vmatmul.msk.f32.vlgmr.msrb.gmra.mxu1 %vm1020_vm6, %v985_v32 }
 0x134   : > { %5048 = vmatmul.msk.f32.vlgmr.msrb.gmra.mxu3 %vm1020_vm6, %v987_v34 }
 0x135   : > { %5054 = vmatmul.msk.f32.vlgmr.msra.gmra.mxu2 %vm1020_vm6, %v990_v35 }
 0x13b   : > { %5050 = vmatmul.msk.f32.vlgmr.msra.gmra.mxu0 %vm1020_vm6, %v988_v36  ;;  %5052 = vmatmul.msk.f32.vlgmr.msra.gmra.mxu1 %vm1020_vm6, %v989_v37  ;;  %vm5824_vm6 = vmneg %vm462_vm10 }
 0x176   : > { %v5717_v38 = vpop.f32.mrf.mxu2 }
 0x178   : > { %v5719_v39 = vpop.f32.mrf.mxu0  ;;  %v5721_v40 = vpop.f32.mrf.mxu1 }
 0x17f   : > { %v5723_v41 = vpop.f32.mrf.mxu2 }
 0x187   : > { %v5733_v46 = vpop.f32.mrf.mxu2  ;;  %v1281_v10 = vpop.permute.xlu0 %1280 }
 0x18e   : > { %v5725_v42 = vpop.f32.mrf.mxu3 }
 0x190   : > { %v5727_v43 = vpop.f32.mrf.mxu0  ;;  %v5729_v44 = vpop.f32.mrf.mxu1 }
 0x197   : > { %v5731_v45 = vpop.f32.mrf.mxu3 }
 0x198   : > { %v5735_v47 = vpop.f32.mrf.mxu0  ;;  %v5737_v48 = vpop.f32.mrf.mxu1 }
 0x19f   : > { %v5739_v49 = vpop.f32.mrf.mxu3 }
 0x1a0   : > { %v5741_v50 = vpop.f32.mrf.mxu0  ;;  %v5743_v51 = vpop.f32.mrf.mxu1 }
 0x1a1   : > { %v5745_v52 = vpop.f32.mrf.mxu2 }
 0x1a7   : > { %v5750_v54 = vpop.f32.mrf.mxu3 }
 0x1a8   : > { %v5752_v55 = vpop.f32.mrf.mxu0  ;;  %v5754_v56 = vpop.f32.mrf.mxu1 }
 0x1a9   : > { %v1045_v57 = vpop.f32.mrf.mxu2 }
 0x1af   : > { %v1071_v58 = vpop.f32.mrf.mxu3 }
 0x1b0   : > { %v1072_v59 = vadd.f32 %v1071_v58, %v1045_v57  ;;  %v1102_v60 = vpop.f32.mrf.mxu0  ;;  %v1128_v61 = vpop.f32.mrf.mxu1 }
 0x1b1   : > { %v1154_v62 = vpop.f32.mrf.mxu2 }
 0x1b2   : > { %v1105_v63 = vadd.f32 %v1102_v60, %v1072_v59 }
 0x1b4   : > { %v1131_v0 = vadd.f32 %v1128_v61, %v1105_v63 }
 0x1b6   : > { %v1157_v2 = vadd.f32 %v1154_v62, %v1131_v0 }
 0x1b7   : > { %v1180_v3 = vpop.f32.mrf.mxu3 }
 0x1b8   : > { %v1183_v4 = vadd.f32 %v1180_v3, %v1157_v2  ;;  %v1212_v5 = vpop.f32.mrf.mxu0  ;;  %v1243_v6 = vpop.f32.mrf.mxu1 }
 0x1b9   : > { %v1274_v8 = vpop.f32.mrf.mxu2 }
 0x1ba   : > { %v1215_v7 = vadd.f32 %v1212_v5, %v1183_v4 }
 0x1bc   : > { %v1246_v9 = vadd.f32 %v1243_v6, %v1215_v7 }
 0x1be   : > { %v1277_v11 = vadd.f32 %v1274_v8, %v1246_v9 }
 0x1c0   : > { %v1283_v14 = vadd.f32 %v1281_v10, %v1277_v11 }
 0x1c2   : > { %v1284_v15 = vmax.f32 %v1283_v14, 0.0 }
 0x1c4   : > { %1295 = vrot.lane.b32.xlu0 %v1284_v15, %s5417_s29  ;;  %1289 = vrot.lane.b32.xlu2 %v1284_v15, %s5413_s25 }
 0x1c5   : > { %1287 = vrot.lane.b32.xlu1 %v1284_v15, %s5414_s26  ;;  %5055 = vmatmul.msk.f32.vlgmr.msra.gmra.mxu3 %vm6926_vm15, %v1284_v15  ;;  %s5422_s26 = smov 32  }
 0x1cc   : > { %960 = vperm.xlu0 %5294, %v418_v16   ;;  %1293 = vrot.lane.b32.xlu2 %v1284_v15, %s5418_s12 }
 0x1cd   : > { %1291 = vrot.lane.b32.xlu1 %v1284_v15, %s5419_s15 }
 0x1d4   : > { %1299 = vrot.lane.b32.xlu2 %v1284_v15, %s5420_s16 }
 0x1d5   : > { %1297 = vrot.lane.b32.xlu1 %v1284_v15, %s5421_s17 }
 0x21e   : > { %v1290_v20 = vpop.permute.xlu2 %1289 }
 0x226   : > { %v1294_v22 = vpop.permute.xlu2 %1293 }
 0x22e   : > { %v1300_v27 = vpop.permute.xlu2 %1299 }
 0x236   : > { %v1296_v23 = vpop.permute.xlu0 %1295 }
 0x237   : > { %v1288_v19 = vpop.permute.xlu1 %1287 }
 0x238   : > { %5056 = vmatmul.msk.f32.gmra.mxu3 %vm6926_vm15, %v1288_v19 }
 0x23f   : > { %v1292_v21 = vpop.permute.xlu1 %1291 }
 0x240   : > { %5057 = vmatmul.msk.f32.gmra.mxu3 %vm6926_vm15, %v1290_v20 }
 0x247   : > { %v1298_v24 = vpop.permute.xlu1 %1297 }
 0x248   : > { %5058 = vmatmul.msk.f32.gmra.mxu3 %vm6926_vm15, %v1292_v21  ;;  %v5771_v28 = vpop.f32.mrf.mxu3 }
 0x249   : > { %v1358_v1 = vmul.f32 0.75, %v5771_v28  ;;  %v1361_v30 = vmul.f32 0.25, %v5771_v28 }
 0x250   : > { %5059 = vmatmul.msk.f32.gmra.mxu3 %vm6926_vm15, %v1294_v22 }
 0x258   : > { %5060 = vmatmul.msk.f32.gmra.mxu3 %vm6926_vm15, %v1296_v23 }
 0x260   : > { %5061 = vmatmul.msk.f32.gmra.mxu3 %vm6926_vm15, %v1298_v24 }
 0x268   : > { %5062 = vmatmul.msk.f32.gmra.mxu3 %vm6926_vm15, %v1300_v27  ;;  %v961_v27 = vpop.permute.xlu0 %960 }
 0x2bb   : > { %v1337_v29 = vpop.f32.mrf.mxu3 }
 0x2bc   : > { %v1359_v31 = vmul.f32 0.25, %v1337_v29  ;;  %v1362_v32 = vmul.f32 0.75, %v1337_v29 }
 0x2be   : > { %v1363_v33 = vadd.f32 %v1362_v32, %v1361_v30  ;;  %v1360_v34 = vadd.f32 %v1359_v31, %v1358_v1  ;;  %v572_v1 = vadd.f32 %v5725_v42, %v5721_v40 }
 0x2c0   : > { %1393 = vrot.lane.b32.xlu2 %v1363_v33, %s5422_s26  ;;  %1389 = vrot.lane.b32.xlu0 %v1360_v34, %s5412_s24 }
 0x2c3   : > { %v1340_v35 = vpop.f32.mrf.mxu3 }
 0x2c4   : > { %v1364_v36 = vmul.f32 0.25, %v1340_v35  ;;  %v1366_v53 = vmul.f32 0.75, %v1340_v35  ;;  %v552_v35 = vadd.f32 %v5717_v38, %v5719_v39 }
 0x2c6   : > { %v1365_v37 = vadd.f32 %v1364_v36, %v1362_v32  ;;  %v1367_v60 = vadd.f32 %v1366_v53, %v1359_v31  ;;  %v632_v32 = vadd.f32 %v5729_v44, %v572_v1 }
 0x2c8   : > { %1397 = vrot.lane.b32.xlu1 %v1365_v37, %s5423_s18  ;;  %v681_v33 = vadd.f32 %v5731_v45, %v632_v32 }
 0x2cb   : > { %v1343_v57 = vpop.f32.mrf.mxu3 }
 0x2cc   : > { %v1368_v58 = vmul.f32 0.25, %v1343_v57  ;;  %v1370_v59 = vmul.f32 0.75, %v1343_v57  ;;  %v733_v57 = vadd.f32 %v5737_v48, %v681_v33 }
 0x2ce   : > { %v1371_v61 = vadd.f32 %v1370_v59, %v1364_v36  ;;  %v1369_v62 = vadd.f32 %v1368_v58, %v1366_v53  ;;  %v631_v53 = vadd.f32 %v5727_v43, %v552_v35  ;;  %v1466_v35 = vld [vmem:[%s6914_s4 + $0x8] sm:$0xff] }
 0x2d0   : > { %1401 = vrot.lane.b32.xlu1 %v1367_v60, %s5424_s19  ;;  %1409 = vrot.lane.b32.xlu2 %v1371_v61, %s5418_s12  ;;  %v680_v40 = vadd.f32 %v5723_v41, %v631_v53 }
 0x2d1   : > { %1405 = vrot.lane.b32.xlu0 %v1369_v62, %s5421_s17 }
 0x2d3   : > { %v1346_v63 = vpop.f32.mrf.mxu3 }
 0x2d4   : > { %v1374_v0 = vmul.f32 0.75, %v1346_v63  ;;  %v1372_v4 = vmul.f32 0.25, %v1346_v63 }
 0x2d6   : > { %v1375_v2 = vadd.f32 %v1374_v0, %v1368_v58  ;;  %v1373_v23 = vadd.f32 %v1372_v4, %v1370_v59  ;;  %v782_v58 = vadd.f32 %v5739_v49, %v733_v57  ;;  %v732_v59 = vadd.f32 %v5735_v47, %v680_v40  ;;  %v1465_v57 = vld [vmem:[%s6914_s4] sm:$0xff] }
 0x2d8   : > { %v840_v44 = vadd.f32 %v5743_v51, %v782_v58  ;;  %v781_v43 = vadd.f32 %v5733_v46, %v732_v59  ;;  %v1468_v58 = vld [vmem:[%s6914_s4 + $0x18] sm:$0xff] }
 0x2da   : > { %v900_v38 = vadd.f32 %v5750_v54, %v840_v44  ;;  %v839_v49 = vadd.f32 %v5741_v50, %v781_v43 }
 0x2db   : > { %v1349_v3 = vpop.f32.mrf.mxu3 }
 0x2dc   : > { %v1376_v5 = vmul.f32 0.25, %v1349_v3  ;;  %v1378_v6 = vmul.f32 0.75, %v1349_v3  ;;  %v957_v41 = vadd.f32 %v5754_v56, %v900_v38  ;;  %v899_v54 = vadd.f32 %v5745_v52, %v839_v49 }
 0x2de   : > { %v1379_v7 = vadd.f32 %v1378_v6, %v1372_v4  ;;  %v1377_v8 = vadd.f32 %v1376_v5, %v1374_v0  ;;  %v964_v61 = vadd.f32 %v961_v27, %v957_v41  ;;  %v956_v56 = vadd.f32 %v5752_v55, %v899_v54  ;;  %v1471_v54 = vld [vmem:[%s6914_s4 + $0x30] sm:$0xff] }
 0x2e0   : > { %1421 = vrot.lane.b32.xlu0 %v1379_v7, %s5422_s26  ;;  %1417 = vrot.lane.b32.xlu1 %v1377_v8, %s5412_s24  ;;  %v966_v3 = vmax.f32 %v964_v61, 0.0  ;;  %v963_v52 = vadd.f32 %v961_v27, %v956_v56  ;;  %v1473_v56 = vld [vmem:[%s6914_s4 + $0x40] sm:$0xff] }
 0x2e3   : > { %v1352_v9 = vpop.f32.mrf.mxu3 }
 0x2e4   : > { %v1380_v10 = vmul.f32 0.25, %v1352_v9  ;;  %v1382_v14 = vmul.f32 0.75, %v1352_v9  ;;  %v965_v9 = vmax.f32 %v963_v52, 0.0 }
 0x2e6   : > { %v1381_v11 = vadd.f32 %v1380_v10, %v1378_v6  ;;  %v1383_v20 = vadd.f32 %v1382_v14, %v1376_v5 }
 0x2e8   : > { %1425 = vrot.lane.b32.xlu2 %v1381_v11, %s5423_s18 }
 0x2eb   : > { %v1355_v15 = vpop.f32.mrf.mxu3 }
 0x2ec   : > { %v1384_v16 = vmul.f32 0.25, %v1355_v15  ;;  %v1386_v19 = vmul.f32 0.75, %v1355_v15 }
 0x2ee   : > { %v1387_v21 = vadd.f32 %v1386_v19, %v1380_v10  ;;  %v1385_v22 = vadd.f32 %v1384_v16, %v1382_v14 }
 0x2f0   : > { %1429 = vrot.lane.b32.xlu2 %v1383_v20, %s5424_s19  ;;  %1437 = vrot.lane.b32.xlu0 %v1387_v21, %s5418_s12 }
 0x2f1   : > { %1433 = vrot.lane.b32.xlu1 %v1385_v22, %s5421_s17 }
 0x2f8   : > { %1441 = vrot.lane.b32.xlu2 %v1355_v15, %s5413_s25 }
 0x2f9   : > { %1413 = vrot.lane.b32.xlu1 %v1373_v23, %s5413_s25 }
 0x31a   : > { %v1394_v24 = vpop.permute.xlu2 %1393 }
 0x32a   : > { %v1410_v30 = vpop.permute.xlu2 %1409 }
 0x332   : > { %v1390_v31 = vpop.permute.xlu0 %1389 }
 0x333   : > { %v1444_v47 = vsel %vm462_vm10, %v5771_v28, %v1390_v31 }
 0x334   : > { %v1446_v63 = vsel %vm6928_vm8, %v1444_v47, %v1394_v24 }
 0x33a   : > { %v1398_v29 = vpop.permute.xlu1 %1397 }
 0x342   : > { %v1402_v34 = vpop.permute.xlu1 %1401  ;;  %v1426_v36 = vpop.permute.xlu2 %1425 }
 0x343   : > { %v1406_v37 = vpop.permute.xlu0 %1405 }
 0x34a   : > { %v1430_v39 = vpop.permute.xlu2 %1429 }
 0x352   : > { %v1418_v42 = vpop.permute.xlu1 %1417  ;;  %v1422_v45 = vpop.permute.xlu0 %1421 }
 0x353   : > { %v1456_v60 = vsel %vm462_vm10, %v1375_v2, %v1418_v42  ;;  %v1448_v2 = vsel %vm1447_vm9, %v1446_v63, %v1398_v29  ;;  %v1442_v4 = vpop.permute.xlu2 %1441  ;;  %v1470_v63 = vld [vmem:[%s6914_s4 + $0x28] sm:$0xff] }
 0x354   : > { %v1457_v48 = vsel %vm6928_vm8, %v1456_v60, %v1422_v45  ;;  %v1450_v28 = vsel %vm1449_vm11, %v1448_v2, %v1402_v34  ;;  %v1467_v45 = vld [vmem:[%s6914_s4 + $0x10] sm:$0xff] }
 0x355   : > { %v1458_v51 = vsel %vm1447_vm9, %v1457_v48, %v1426_v36  ;;  %v1452_v8 = vsel %vm1451_vm12, %v1450_v28, %v1406_v37 }
 0x356   : > { %v1459_v46 = vsel %vm1449_vm11, %v1458_v51, %v1430_v39  ;;  %v1454_v10 = vsel %vm6921_vm14, %v1452_v8, %v1410_v30  ;;  %v1469_v39 = vld [vmem:[%s6914_s4 + $0x20] sm:$0xff] }
 0x362   : > { %v1438_v62 = vpop.permute.xlu0 %1437 }
 0x363   : > { %v1434_v0 = vpop.permute.xlu1 %1433 }
 0x364   : > { %v1460_v50 = vsel %vm1451_vm12, %v1459_v46, %v1434_v0  ;;  %v1472_v0 = vld [vmem:[%s6914_s4 + $0x38] sm:$0xff] }
 0x365   : > { %v1461_v5 = vsel %vm6921_vm14, %v1460_v50, %v1438_v62  ;;  %v5063_v62 = vld [vmem:[%s6915_s5 + $0x10] sm:$0xff] }
 0x366   : > { %v1462_v6 = vsel %vm787_vm13, %v1461_v5, %v1442_v4 }
 0x367   : > { %v1464_v7 = vadd.f32 %v1462_v6, %v966_v3 }
 0x369   : > { %1478 = vrot.lane.b32.xlu1 %v1464_v7, %s5410_s22 }
 0x36b   : > { %v1414_v11 = vpop.permute.xlu1 %1413 }
 0x36c   : > { %v1455_v14 = vsel %vm787_vm13, %v1454_v10, %v1414_v11 }
 0x36d   : > { %v1463_v55 = vadd.f32 %v1455_v14, %v965_v9 }
 0x36f   : > { %1484 = vrot.lane.b32.xlu2 %v1463_v55, %s5411_s23  ;;  %1476 = vrot.lane.b32.xlu0 %v1463_v55, %s5410_s22 }
 0x377   : > { %1504 = vrot.lane.b32.xlu2 %v1463_v55, %s5412_s24  ;;  %1486 = vrot.lane.b32.xlu0 %v1464_v7, %s5411_s23 }
 0x3c9   : > { %v1485_v15 = vpop.permute.xlu2 %1484 }
 0x3d1   : > { %v1505_v19 = vpop.permute.xlu2 %1504 }
 0x3d2   : > { %5065 = vmatpush.msk.msrb.mxu0 %vm5824_vm6, %v1505_v19 }
 0x3d3   : > { %5066 = vmatmul.msk.f32.vlgmr.msrb.gmra.mxu0 %vm6926_vm15, %v1466_v35 }
 0x3db   : > { %v1479_v20 = vpop.permute.xlu1 %1478 }
 0x3e1   : > { %v1477_v21 = vpop.permute.xlu0 %1476 }
 0x3e2   : > { %v1480_v22 = vsel %vm429_vm0, %v1477_v21, %v1479_v20  ;;  %v1481_v23 = vsel %vm429_vm0, %v1479_v20, %v1477_v21 }
 0x3e3   : > { %v1482_v24 = vsel %vm5521_vm1, %v1481_v23, 0.0  ;;  %v1483_v27 = vsel %vm5525_vm2, %v1480_v22, 0.0 }
 0x3e4   : > { %1494 = vrot.lane.b32.xlu1 %v1482_v24, %s5412_s24  ;;  %1496 = vrot.lane.b32.xlu2 %v1483_v27, %s5412_s24  ;;  %v5300_v34 = vpack.i.bf16 %v1482_v24, %v1463_v55 }
 0x3e9   : > { %v1487_v29 = vpop.permute.xlu0 %1486 }
 0x3ea   : > { %v1489_v1 = vsel %vm6927_vm3, %v1487_v29, %v1485_v15  ;;  %v1488_v30 = vsel %vm6927_vm3, %v1485_v15, %v1487_v29 }
 0x3eb   : > { %v1491_v31 = vsel %vm5549_vm5, %v1489_v1, 0.0  ;;  %v1490_v32 = vsel %vm5545_vm4, %v1488_v30, 0.0 }
 0x3ec   : > { %v5295_v33 = vpack.i.bf16 %v1491_v31, %v1464_v7  ;;  %1790 = vrot.lane.b32.xlu2 %v1483_v27, %s5413_s25  ;;  %1600 = vrot.lane.b32.xlu1 %v1490_v32, %s5412_s24 }
 0x3ee   : > { %5296 = vrot.lane.b32.xlu0 %v5295_v33, %s5412_s24 }
 0x3f4   : > { %1843 = vrot.lane.b32.xlu1 %v1464_v7, %s5413_s25  ;;  %1949 = vperm.xlu2 %5305, %v5063_v62  }
 0x3f6   : > { %5301 = vrot.lane.b32.xlu0 %v5300_v34, %s5413_s25 }
 0x3fc   : > { %1894 = vrot.lane.b32.xlu1 %v1490_v32, %s5413_s25 }
 0x3fe   : > { %1896 = vrot.lane.b32.xlu0 %v1491_v31, %s5413_s25 }
 0x43e   : > { %v1497_v36 = vpop.permute.xlu2 %1496 }
 0x446   : > { %v1791_v41 = vpop.permute.xlu2 %1790 }
 0x450   : > { %v1532_v3 = vpop.f32.mrf.mxu0 }
 0x456   : > { %v1495_v37 = vpop.permute.xlu1 %1494 }
 0x457   : > { %v1498_v53 = vsel %vm462_vm10, %v1495_v37, %v1497_v36  ;;  %5069 = vmatpush.msk.msrb.mxu2 %vm5824_vm6, %v1495_v37  ;;  %v1950_v37 = vpop.permute.xlu2 %1949 }
 0x458   : > { %1593 = vmatpush.msra.mxu0 %v1498_v53  ;;  %5070 = vmatmul.msk.f32.vlgmr.msrb.gmra.mxu2 %vm6926_vm15, %v1465_v57 }
 0x459   : > { %5071 = vmatmul.msk.f32.vlgmr.msra.gmra.mxu0 %vm6926_vm15, %v1465_v57 }
 0x45a   : > { %5076 = vmatpush.msk.msrb.mxu0 %vm5521_vm1, %v1481_v23 }
 0x45c   : > { %1736 = vmatpush.msra.mxu0 %v1464_v7 }
 0x45e   : > { %v1601_v40 = vpop.permute.xlu1 %1600 }
 0x460   : > { %v5297_v42 = vpop.permute.xlu0 %5296 }
 0x461   : > { %v5299_v59 = vunpack.i.h.bf16 %v5297_v42  ;;  %v5298_v44 = vunpack.i.l.bf16 %v5297_v42  ;;  %5077 = vmatmul.msk.f32.vlgmr.msrb.gmra.mxu0 %vm6926_vm15, %v1468_v58 }
 0x463   : > { %v1508_v60 = vsel %vm462_vm10, %v1505_v19, %v5298_v44  ;;  %v1604_v38 = vsel %vm462_vm10, %v1601_v40, %v5299_v59 }
 0x464   : > { %1550 = vmatpush.msrb.mxu1 %v1508_v60  ;;  %1646 = vmatpush.msra.mxu2 %v1604_v38 }
 0x465   : > { %5067 = vmatmul.msk.f32.vlgmr.msrb.gmra.mxu1 %vm6926_vm15, %v1466_v35  ;;  %5075 = vmatmul.msk.f32.vlgmr.msra.gmra.mxu2 %vm6926_vm15, %v1467_v45 }
 0x466   : > { %5073 = vmatpush.msk.msra.mxu1 %vm5824_vm6, %v1601_v40  ;;  %1716 = vmatpush.msrb.mxu2 %v1463_v55  ;;  %v1844_v47 = vpop.permute.xlu1 %1843 }
 0x468   : > { %5078 = vmatpush.msk.msrb.mxu1 %vm5525_vm2, %v1480_v22  ;;  %5084 = vmatpush.msk.msra.mxu2 %vm5549_vm5, %v1489_v1  ;;  %v5302_v43 = vpop.permute.xlu0 %5301 }
 0x469   : > { %v5304_v48 = vunpack.i.h.bf16 %v5302_v43  ;;  %v5303_v49 = vunpack.i.l.bf16 %v5302_v43  ;;  %5081 = vmatmul.msk.f32.vlgmr.msra.gmra.mxu0 %vm6926_vm15, %v1469_v39 }
 0x46b   : > { %v1792_v51 = vsel %vm787_vm13, %v5304_v48, %v1791_v41  ;;  %v1845_v61 = vsel %vm787_vm13, %v5303_v49, %v1844_v47 }
 0x46c   : > { %1814 = vmatpush.msrb.mxu0 %v1792_v51 }
 0x46d   : > { %5074 = vmatmul.msk.f32.vlgmr.msra.gmra.mxu1 %vm6926_vm15, %v1467_v45  ;;  %5080 = vmatmul.msk.f32.vlgmr.msrb.gmra.mxu2 %vm6926_vm15, %v1469_v39 }
 0x46e   : > { %5082 = vmatpush.msk.msra.mxu1 %vm5545_vm4, %v1488_v30  ;;  %1867 = vmatpush.msrb.mxu2 %v1845_v61  ;;  %v1895_v2 = vpop.permute.xlu1 %1894 }
 0x46f   : > { %5090 = vmatpush.msk.msra.mxu0 %vm787_vm13, %v1844_v47 }
 0x470   : > { %v1897_v46 = vpop.permute.xlu0 %1896 }
 0x471   : > { %5086 = vmatmul.msk.f32.vlgmr.msrb.gmra.mxu0 %vm6926_vm15, %v1471_v54  ;;  %v1898_v50 = vsel %vm787_vm13, %v1895_v2, %v1897_v46  ;;  %v5096_v2 = vld [vmem:[%s6914_s4 + $0x50] sm:$0xff] }
 0x475   : > { %5079 = vmatmul.msk.f32.vlgmr.msrb.gmra.mxu1 %vm6926_vm15, %v1468_v58  ;;  %5085 = vmatmul.msk.f32.vlgmr.msra.gmra.mxu2 %vm6926_vm15, %v1470_v63 }
 0x476   : > { %5087 = vmatpush.msk.msrb.mxu1 %vm787_vm13, %v1791_v41  ;;  %5093 = vmatpush.msk.msra.mxu2 %vm787_vm13, %v1897_v46 }
 0x479   : > { %5091 = vmatmul.msk.f32.vlgmr.msra.gmra.mxu0 %vm6926_vm15, %v1472_v0 }
 0x47d   : > { %5083 = vmatmul.msk.f32.vlgmr.msra.gmra.mxu1 %vm6926_vm15, %v1470_v63  ;;  %5089 = vmatmul.msk.f32.vlgmr.msrb.gmra.mxu2 %vm6926_vm15, %v1472_v0 }
 0x47e   : > { %1920 = vmatpush.msra.mxu1 %v1898_v50  ;;  %v5098_v50 = vld [vmem:[%s6914_s4 + $0x60] sm:$0xff] }
 0x485   : > { %5088 = vmatmul.msk.f32.vlgmr.msrb.gmra.mxu1 %vm6926_vm15, %v1471_v54  ;;  %5094 = vmatmul.msk.f32.vlgmr.msra.gmra.mxu2 %vm6926_vm15, %v1473_v56 }
 0x48d   : > { %5092 = vmatmul.msk.f32.vlgmr.msra.gmra.mxu1 %vm6926_vm15, %v1473_v56  ;;  %v5100_v56 = vld [vmem:[%s6914_s4 + $0x70] sm:$0xff] }
 0x4d6   : > { %v1595_v4 = vpop.f32.mrf.mxu0 }
 0x4db   : > { %v1575_v28 = vpop.f32.mrf.mxu2 }
 0x4dc   : > { %v1576_v55 = vadd.f32 %v1575_v28, %v1532_v3 }
 0x4de   : > { %v1673_v6 = vpop.f32.mrf.mxu0 }
 0x4e2   : > { %v1552_v5 = vpop.f32.mrf.mxu1 }
 0x4e3   : > { %v1596_v11 = vadd.f32 %v1595_v4, %v1552_v5  ;;  %v5097_v5 = vld [vmem:[%s6914_s4 + $0x58] sm:$0xff] }
 0x4e6   : > { %v1738_v9 = vpop.f32.mrf.mxu0 }
 0x4e8   : > { %v1648_v52 = vpop.f32.mrf.mxu2 }
 0x4e9   : > { %v1652_v15 = vadd.f32 %v1648_v52, %v1596_v11  ;;  %v5099_v11 = vld [vmem:[%s6914_s4 + $0x68] sm:$0xff] }
 0x4ea   : > { %v1628_v7 = vpop.f32.mrf.mxu1 }
 0x4eb   : > { %v1651_v21 = vadd.f32 %v1628_v7, %v1576_v55 }
 0x4ed   : > { %v1696_v23 = vadd.f32 %v1673_v6, %v1651_v21  ;;  %v5095_v6 = vld [vmem:[%s6914_s4 + $0x48] sm:$0xff] }
 0x4ee   : > { %v1816_v20 = vpop.f32.mrf.mxu0 }
 0x4f0   : > { %v1718_v8 = vpop.f32.mrf.mxu2 }
 0x4f1   : > { %v1741_v29 = vadd.f32 %v1718_v8, %v1696_v23  ;;  %v5103_v23 = vld [vmem:[%s6914_s4 + $0x88] sm:$0xff] }
 0x4f2   : > { %v1693_v10 = vpop.f32.mrf.mxu1 }
 0x4f3   : > { %v1697_v22 = vadd.f32 %v1693_v10, %v1652_v15 }
 0x4f5   : > { %v1742_v24 = vadd.f32 %v1738_v9, %v1697_v22 }
 0x4f6   : > { %v1889_v33 = vpop.f32.mrf.mxu0 }
 0x4f8   : > { %v1783_v14 = vpop.f32.mrf.mxu2 }
 0x4f9   : > { %v1787_v1 = vadd.f32 %v1783_v14, %v1742_v24 }
 0x4fa   : > { %v1763_v19 = vpop.f32.mrf.mxu1 }
 0x4fb   : > { %v1786_v31 = vadd.f32 %v1763_v19, %v1741_v29  ;;  %v2449_v29 = vld [vmem:[%s6919_s9 + $0x8] sm:$0xff] }
 0x4fd   : > { %v1839_v34 = vadd.f32 %v1816_v20, %v1786_v31  ;;  %v5101_v20 = vld [vmem:[%s6914_s4 + $0x78] sm:$0xff] }
 0x500   : > { %v1869_v27 = vpop.f32.mrf.mxu2 }
 0x501   : > { %v1892_v53 = vadd.f32 %v1869_v27, %v1839_v34 }
 0x502   : > { %v1836_v30 = vpop.f32.mrf.mxu1 }
 0x503   : > { %v1840_v32 = vadd.f32 %v1836_v30, %v1787_v1  ;;  %v2448_v1 = vld [vmem:[%s6919_s9] sm:$0xff] }
 0x505   : > { %v1893_v35 = vadd.f32 %v1889_v33, %v1840_v32 }
 0x508   : > { %v1942_v36 = vpop.f32.mrf.mxu2 }
 0x509   : > { %v1946_v57 = vadd.f32 %v1942_v36, %v1893_v35 }
 0x50a   : > { %v1922_v58 = vpop.f32.mrf.mxu1 }
 0x50b   : > { %v1953_v40 = vadd.f32 %v1950_v37, %v1946_v57  ;;  %v1945_v42 = vadd.f32 %v1922_v58, %v1892_v53 }
 0x50d   : > { %v5924_v59 = vmax.f32 %v1953_v40, 0.0  ;;  %v1952_v44 = vadd.f32 %v1950_v37, %v1945_v42 }
 0x50f   : > { %v1954_v45 = vmax.f32 %v1952_v44, 0.0  ;;  %1978 = vrot.lane.b32.xlu1 %v5924_v59, %s5411_s23 }
 0x511   : > { %1968 = vrot.lane.b32.xlu2 %v1954_v45, %s5410_s22  ;;  %1976 = vrot.lane.b32.xlu0 %v1954_v45, %s5411_s23 }
 0x517   : > { %1996 = vrot.lane.b32.xlu1 %v1954_v45, %s5412_s24 }
 0x519   : > { %1998 = vrot.lane.b32.xlu2 %v5924_v59, %s5412_s24  ;;  %1970 = vrot.lane.b32.xlu0 %v5924_v59, %s5410_s22 }
 0x56b   : > { %v1969_v60 = vpop.permute.xlu2 %1968 }
 0x573   : > { %v1999_v49 = vpop.permute.xlu2 %1998 }
 0x581   : > { %v1979_v38 = vpop.permute.xlu1 %1978 }
 0x583   : > { %v1977_v39 = vpop.permute.xlu0 %1976 }
 0x584   : > { %v1980_v43 = vsel %vm6927_vm3, %v1977_v39, %v1979_v38  ;;  %v1981_v0 = vsel %vm6927_vm3, %v1979_v38, %v1977_v39 }
 0x585   : > { %v1982_v48 = vsel %vm5545_vm4, %v1980_v43, 0.0  ;;  %v1983_v17 = vsel %vm5549_vm5, %v1981_v0, 0.0 }
 0x586   : > { %2092 = vrot.lane.b32.xlu0 %v1982_v48, %s5412_s24 }
 0x589   : > { %v1997_v41 = vpop.permute.xlu1 %1996 }
 0x58a   : > { %v2000_v47 = vsel %vm462_vm10, %v1997_v41, %v1999_v49  ;;  %5106 = vmatpush.msk.msrb.mxu0 %vm5824_vm6, %v1997_v41 }
 0x58b   : > { %v1971_v51 = vpop.permute.xlu0 %1970  ;;  %2042 = vmatpush.msrb.mxu1 %v2000_v47  ;;  %5107 = vmatmul.msk.f32.vlgmr.msrb.gmra.mxu0 %vm6926_vm15, %v5096_v2 }
 0x58c   : > { %v1972_v61 = vsel %vm429_vm0, %v1969_v60, %v1971_v51  ;;  %v1973_v62 = vsel %vm429_vm0, %v1971_v51, %v1969_v60  ;;  %5108 = vmatmul.msk.f32.vlgmr.msrb.gmra.mxu1 %vm6926_vm15, %v5096_v2 }
 0x58d   : > { %5117 = vmatpush.msk.msrb.mxu3 %vm5521_vm1, %v1973_v62  ;;  %v1974_v54 = vsel %vm5521_vm1, %v1973_v62, 0.0  ;;  %v1975_v63 = vsel %vm5525_vm2, %v1972_v61, 0.0 }
 0x58e   : > { %v5306_v46 = vpack.i.bf16 %v1954_v45, %v1974_v54  ;;  %1986 = vrot.lane.b32.xlu1 %v1974_v54, %s5412_s24  ;;  %2282 = vrot.lane.b32.xlu0 %v1975_v63, %s5413_s25 }
 0x58f   : > { %5123 = vmatpush.msk.msra.mxu3 %vm5545_vm4, %v1980_v43 }
 0x590   : > { %5307 = vrot.lane.b32.xlu2 %v5306_v46, %s5413_s25  ;;  %5118 = vmatmul.msk.f32.vlgmr.msrb.gmra.mxu3 %vm6926_vm15, %v5098_v50 }
 0x596   : > { %2335 = vrot.lane.b32.xlu1 %v5924_v59, %s5413_s25  ;;  %2388 = vrot.lane.b32.xlu0 %v1983_v17, %s5413_s25 }
 0x598   : > { %2386 = vrot.lane.b32.xlu2 %v1982_v48, %s5413_s25  ;;  %5124 = vmatmul.msk.f32.vlgmr.msra.gmra.mxu3 %vm6926_vm15, %v5100_v56 }
 0x59e   : > { %2094 = vrot.lane.b32.xlu1 %v1983_v17, %s5412_s24  ;;  %2441 = vperm.xlu0 %5294, %v5104_v25  }
 0x5a0   : > { %1988 = vrot.lane.b32.xlu2 %v1975_v63, %s5412_s24 }
 0x5ea   : > { %v5308_v3 = vpop.permute.xlu2 %5307 }
 0x5eb   : > { %v5309_v52 = vunpack.i.l.bf16 %v5308_v3  ;;  %v5310_v16 = vunpack.i.h.bf16 %v5308_v3 }
 0x5f2   : > { %v2387_v28 = vpop.permute.xlu2 %2386 }
 0x5f8   : > { %v2093_v4 = vpop.permute.xlu0 %2092 }
 0x5f9   : > { %5114 = vmatpush.msk.msra.mxu1 %vm5824_vm6, %v2093_v4 }
 0x5fa   : > { %5115 = vmatmul.msk.f32.vlgmr.msra.gmra.mxu1 %vm6926_vm15, %v5097_v5  ;;  %v1989_v7 = vpop.permute.xlu2 %1988 }
 0x5fb   : > { %2208 = vmatpush.msrb.mxu1 %v1954_v45 }
 0x600   : > { %v1987_v8 = vpop.permute.xlu1 %1986  ;;  %v2283_v9 = vpop.permute.xlu0 %2282 }
 0x601   : > { %v1990_v10 = vsel %vm462_vm10, %v1987_v8, %v1989_v7  ;;  %5110 = vmatpush.msk.msrb.mxu2 %vm5824_vm6, %v1987_v8  ;;  %v2284_v14 = vsel %vm787_vm13, %v5309_v52, %v2283_v9 }
 0x602   : > { %5111 = vmatmul.msk.f32.vlgmr.msrb.gmra.mxu2 %vm6926_vm15, %v5095_v6  ;;  %2085 = vmatpush.msra.mxu0 %v1990_v10 }
 0x603   : > { %2306 = vmatpush.msra.mxu1 %v2284_v14  ;;  %5112 = vmatmul.msk.f32.vlgmr.msra.gmra.mxu0 %vm6926_vm15, %v5095_v6 }
 0x604   : > { %5119 = vmatpush.msk.msrb.mxu0 %vm5525_vm2, %v1972_v61  ;;  %5121 = vmatmul.msk.f32.vlgmr.msrb.gmra.mxu1 %vm6926_vm15, %v5099_v11 }
 0x606   : > { %5125 = vmatpush.msk.msra.mxu0 %vm5549_vm5, %v1981_v0 }
 0x608   : > { %v2336_v55 = vpop.permute.xlu1 %2335  ;;  %v2389_v15 = vpop.permute.xlu0 %2388 }
 0x609   : > { %v2337_v19 = vsel %vm787_vm13, %v5310_v16, %v2336_v55  ;;  %v2390_v21 = vsel %vm787_vm13, %v2387_v28, %v2389_v15  ;;  %v2044_v24 = vpop.f32.mrf.mxu1  ;;  %v2024_v32 = vpop.f32.mrf.mxu0 }
 0x60a   : > { %2359 = vmatpush.msrb.mxu3 %v2337_v19  ;;  %2412 = vmatpush.msrb.mxu1 %v2390_v21 }
 0x60b   : > { %5120 = vmatmul.msk.f32.vlgmr.msrb.gmra.mxu0 %vm6926_vm15, %v5098_v50  ;;  %5130 = vmatmul.msk.f32.vlgmr.msrb.gmra.mxu3 %vm6926_vm15, %v5102_v18 }
 0x60c   : > { %5131 = vmatpush.msk.msrb.mxu0 %vm787_vm13, %v2336_v55  ;;  %5127 = vmatmul.msk.f32.vlgmr.msra.gmra.mxu1 %vm6926_vm15, %v5101_v20 }
 0x60d   : > { %2526 = vmatpush.msra.mxu3 %v2449_v29 }
 0x60f   : > { %2527 = vmatpush.msra.mxu3 %v2448_v1 }
 0x610   : > { %v2095_v26 = vpop.permute.xlu1 %2094  ;;  %v2442_v38 = vpop.permute.xlu0 %2441 }
 0x611   : > { %v2096_v22 = vsel %vm462_vm10, %v2093_v4, %v2095_v26 }
 0x612   : > { %2138 = vmatpush.msra.mxu2 %v2096_v22 }
 0x613   : > { %5116 = vmatmul.msk.f32.vlgmr.msra.gmra.mxu2 %vm6926_vm15, %v5097_v5  ;;  %5126 = vmatmul.msk.f32.vlgmr.msra.gmra.mxu0 %vm6926_vm15, %v5100_v56  ;;  %v2165_v30 = vpop.f32.mrf.mxu3 }
 0x614   : > { %2228 = vmatpush.msrb.mxu2 %v5924_v59  ;;  %5133 = vmatmul.msk.f32.vlgmr.msrb.gmra.mxu1 %vm6926_vm15, %v5103_v23 }
 0x616   : > { %5128 = vmatpush.msk.msra.mxu2 %vm787_vm13, %v2283_v9 }
 0x61b   : > { %5122 = vmatmul.msk.f32.vlgmr.msrb.gmra.mxu2 %vm6926_vm15, %v5099_v11  ;;  %5132 = vmatmul.msk.f32.vlgmr.msrb.gmra.mxu0 %vm6926_vm15, %v5102_v18  ;;  %v2255_v35 = vpop.f32.mrf.mxu3 }
 0x61c   : > { %5134 = vmatpush.msk.msrb.mxu2 %vm787_vm13, %v2389_v15 }
 0x623   : > { %5129 = vmatmul.msk.f32.vlgmr.msra.gmra.mxu2 %vm6926_vm15, %v5101_v20 }
 0x62b   : > { %5135 = vmatmul.msk.f32.vlgmr.msrb.gmra.mxu2 %vm6926_vm15, %v5103_v23 }
 0x677   : > { %v2120_v27 = vpop.f32.mrf.mxu1 }
 0x680   : > { %v2087_v58 = vpop.f32.mrf.mxu0 }
 0x681   : > { %v2210_v31 = vpop.f32.mrf.mxu1  ;;  %v2088_v41 = vadd.f32 %v2087_v58, %v2044_v24 }
 0x685   : > { %v2067_v33 = vpop.f32.mrf.mxu2 }
 0x686   : > { %v2068_v34 = vadd.f32 %v2067_v33, %v2024_v32 }
 0x688   : > { %v2143_v36 = vadd.f32 %v2120_v27, %v2068_v34  ;;  %v2185_v48 = vpop.f32.mrf.mxu0 }
 0x689   : > { %v2308_v37 = vpop.f32.mrf.mxu1 }
 0x68a   : > { %v2188_v53 = vadd.f32 %v2165_v30, %v2143_v36 }
 0x68c   : > { %v2233_v57 = vadd.f32 %v2210_v31, %v2188_v53 }
 0x68e   : > { %v2278_v40 = vadd.f32 %v2255_v35, %v2233_v57  ;;  %v2361_v59 = vpop.f32.mrf.mxu3 }
 0x690   : > { %v2331_v42 = vadd.f32 %v2308_v37, %v2278_v40  ;;  %v2275_v61 = vpop.f32.mrf.mxu0 }
 0x691   : > { %v2414_v44 = vpop.f32.mrf.mxu1 }
 0x692   : > { %v2384_v45 = vadd.f32 %v2361_v59, %v2331_v42 }
 0x694   : > { %v2437_v60 = vadd.f32 %v2414_v44, %v2384_v45 }
 0x696   : > { %v2444_v39 = vadd.f32 %v2442_v38, %v2437_v60  ;;  %v2140_v43 = vpop.f32.mrf.mxu2 }
 0x697   : > { %v2144_v47 = vadd.f32 %v2140_v43, %v2088_v41 }
 0x698   : > { %v2446_v49 = vmax.f32 %v2444_v39, 0.0  ;;  %v2381_v17 = vpop.f32.mrf.mxu0 }
 0x699   : > { %v2189_v62 = vadd.f32 %v2185_v48, %v2144_v47 }
 0x69a   : > { %2455 = vrot.lane.b32.xlu0 %v2446_v49, %s5421_s17  ;;  %2453 = vrot.lane.b32.xlu2 %v2446_v49, %s5418_s12 }
 0x69b   : > { %2451 = vrot.lane.b32.xlu1 %v2446_v49, %s5413_s25  ;;  %5136 = vmatmul.msk.f32.vlgmr.msra.gmra.mxu3 %vm462_vm10, %v2446_v49 }
 0x69e   : > { %v2230_v51 = vpop.f32.mrf.mxu2 }
 0x69f   : > { %v2234_v54 = vadd.f32 %v2230_v51, %v2189_v62 }
 0x6a1   : > { %v2279_v46 = vadd.f32 %v2275_v61, %v2234_v54 }
 0x6a2   : > { %2461 = vrot.lane.b32.xlu0 %v2446_v49, %s5422_s26  ;;  %2459 = vrot.lane.b32.xlu2 %v2446_v49, %s5423_s18 }
 0x6a3   : > { %2457 = vrot.lane.b32.xlu1 %v2446_v49, %s5424_s19 }
 0x6a6   : > { %v2328_v63 = vpop.f32.mrf.mxu2 }
 0x6a7   : > { %v2332_v0 = vadd.f32 %v2328_v63, %v2279_v46 }
 0x6a9   : > { %v2385_v25 = vadd.f32 %v2381_v17, %v2332_v0 }
 0x6ab   : > { %2463 = vrot.lane.b32.xlu1 %v2446_v49, %s5412_s24 }
 0x6ae   : > { %v2434_v2 = vpop.f32.mrf.mxu2 }
 0x6af   : > { %v2438_v50 = vadd.f32 %v2434_v2, %v2385_v25 }
 0x6b1   : > { %v2445_v56 = vadd.f32 %v2442_v38, %v2438_v50 }
 0x6b3   : > { %v2447_v3 = vmax.f32 %v2445_v56, 0.0 }
 0x6b5   : > { %2470 = vrot.lane.b32.xlu1 %v2447_v3, %s5421_s17  ;;  %2468 = vrot.lane.b32.xlu0 %v2447_v3, %s5418_s12 }
 0x6b6   : > { %2466 = vrot.lane.b32.xlu2 %v2447_v3, %s5413_s25 }
 0x6bd   : > { %2476 = vrot.lane.b32.xlu1 %v2447_v3, %s5422_s26  ;;  %2474 = vrot.lane.b32.xlu0 %v2447_v3, %s5423_s18 }
 0x6be   : > { %2472 = vrot.lane.b32.xlu2 %v2447_v3, %s5424_s19 }
 0x6c6   : > { %2478 = vrot.lane.b32.xlu2 %v2447_v3, %s5412_s24 }
 0x6f4   : > { %v2454_v4 = vpop.permute.xlu2 %2453 }
 0x6fc   : > { %v2460_v52 = vpop.permute.xlu2 %2459 }
 0x70c   : > { %v2456_v5 = vpop.permute.xlu0 %2455 }
 0x70d   : > { %v2452_v28 = vpop.permute.xlu1 %2451 }
 0x70e   : > { %5137 = vmatmul.msk.f32.gmra.mxu3 %vm462_vm10, %v2452_v28 }
 0x710   : > { %v2467_v9 = vpop.permute.xlu2 %2466 }
 0x714   : > { %v2462_v7 = vpop.permute.xlu0 %2461 }
 0x715   : > { %v2458_v6 = vpop.permute.xlu1 %2457 }
 0x716   : > { %5138 = vmatmul.msk.f32.gmra.mxu3 %vm462_vm10, %v2454_v4 }
 0x718   : > { %v2473_v14 = vpop.permute.xlu2 %2472 }
 0x71d   : > { %v2464_v8 = vpop.permute.xlu1 %2463 }
 0x71e   : > { %5139 = vmatmul.msk.f32.gmra.mxu3 %vm462_vm10, %v2456_v5  ;;  %v6069_v19 = vpop.f32.mrf.mxu3 }
 0x71f   : > { %v2577_v21 = vmul.f32 0.75, %v6069_v19  ;;  %v2580_v18 = vmul.f32 0.25, %v6069_v19 }
 0x720   : > { %v2479_v15 = vpop.permute.xlu2 %2478 }
 0x726   : > { %5140 = vmatmul.msk.f32.gmra.mxu3 %vm462_vm10, %v2458_v6 }
 0x727   : > { %v2469_v10 = vpop.permute.xlu0 %2468  ;;  %v2471_v11 = vpop.permute.xlu1 %2470 }
 0x72e   : > { %5141 = vmatmul.msk.f32.gmra.mxu3 %vm462_vm10, %v2460_v52 }
 0x72f   : > { %v2475_v16 = vpop.permute.xlu0 %2474  ;;  %v2477_v55 = vpop.permute.xlu1 %2476 }
 0x736   : > { %5142 = vmatmul.msk.f32.gmra.mxu3 %vm462_vm10, %v2462_v7 }
 0x73e   : > { %5143 = vmatmul.msk.f32.gmra.mxu3 %vm462_vm10, %v2464_v8 }
 0x746   : > { %5144 = vmatmul.msk.f32.gmra.mxu3 %vm462_vm10, %v2447_v3 }
 0x74e   : > { %5145 = vmatmul.msk.f32.gmra.mxu3 %vm462_vm10, %v2467_v9 }
 0x756   : > { %5146 = vmatmul.msk.f32.gmra.mxu3 %vm462_vm10, %v2469_v10 }
 0x75e   : > { %5147 = vmatmul.msk.f32.gmra.mxu3 %vm462_vm10, %v2471_v11 }
 0x766   : > { %5148 = vmatmul.msk.f32.gmra.mxu3 %vm462_vm10, %v2473_v14 }
 0x76e   : > { %5149 = vmatmul.msk.f32.gmra.mxu3 %vm462_vm10, %v2475_v16 }
 0x776   : > { %5150 = vmatmul.msk.f32.gmra.mxu3 %vm462_vm10, %v2477_v55 }
 0x77e   : > { %5151 = vmatmul.msk.f32.gmra.mxu3 %vm462_vm10, %v2479_v15 }
 0x791   : > { %v2532_v20 = vpop.f32.mrf.mxu3 }
 0x792   : > { %v2578_v26 = vmul.f32 0.25, %v2532_v20  ;;  %v2581_v22 = vmul.f32 0.75, %v2532_v20 }
 0x794   : > { %v2579_v23 = vadd.f32 %v2578_v26, %v2577_v21  ;;  %v2582_v24 = vadd.f32 %v2581_v22, %v2580_v18 }
 0x796   : > { %2644 = vrot.lane.b32.xlu2 %v2582_v24, %s5424_s19  ;;  %2640 = vrot.lane.b32.xlu0 %v2579_v23, %s5422_s26 }
 0x799   : > { %v2535_v27 = vpop.f32.mrf.mxu3 }
 0x79a   : > { %v2583_v29 = vmul.f32 0.25, %v2535_v27  ;;  %v2585_v1 = vmul.f32 0.75, %v2535_v27 }
 0x79c   : > { %v2584_v30 = vadd.f32 %v2583_v29, %v2581_v22  ;;  %v6075_v31 = vadd.f32 %v2585_v1, %v2578_v26 }
 0x79e   : > { %2648 = vrot.lane.b32.xlu1 %v2584_v30, %s5418_s12 }
 0x7a1   : > { %v2538_v32 = vpop.f32.mrf.mxu3 }
 0x7a2   : > { %v2587_v33 = vmul.f32 0.25, %v2538_v32  ;;  %v2589_v35 = vmul.f32 0.75, %v2538_v32 }
 0x7a4   : > { %v2588_v34 = vadd.f32 %v2587_v33, %v2585_v1  ;;  %v2590_v53 = vadd.f32 %v2589_v35, %v2583_v29 }
 0x7a6   : > { %2652 = vrot.lane.b32.xlu0 %v2588_v34, %s5422_s26 }
 0x7a9   : > { %v2541_v36 = vpop.f32.mrf.mxu3 }
 0x7aa   : > { %v2593_v37 = vmul.f32 0.75, %v2541_v36  ;;  %v2591_v58 = vmul.f32 0.25, %v2541_v36 }
 0x7ac   : > { %v6079_v57 = vadd.f32 %v2593_v37, %v2587_v33  ;;  %v2592_v59 = vadd.f32 %v2591_v58, %v2589_v35 }
 0x7ae   : > { %2656 = vrot.lane.b32.xlu0 %v2590_v53, %s5424_s19 }
 0x7b1   : > { %v2544_v40 = vpop.f32.mrf.mxu3 }
 0x7b2   : > { %v2595_v42 = vmul.f32 0.25, %v2544_v40  ;;  %v2597_v45 = vmul.f32 0.75, %v2544_v40 }
 0x7b4   : > { %v2596_v44 = vadd.f32 %v2595_v42, %v2593_v37  ;;  %v2598_v39 = vadd.f32 %v2597_v45, %v2591_v58 }
 0x7b6   : > { %2660 = vrot.lane.b32.xlu0 %v2592_v59, %s5418_s12  ;;  %2664 = vrot.lane.b32.xlu1 %v2596_v44, %s5422_s26 }
 0x7b9   : > { %v2547_v60 = vpop.f32.mrf.mxu3 }
 0x7ba   : > { %v2601_v38 = vmul.f32 0.75, %v2547_v60  ;;  %v2599_v48 = vmul.f32 0.25, %v2547_v60 }
 0x7bc   : > { %v6084_v43 = vadd.f32 %v2601_v38, %v2595_v42  ;;  %v2600_v47 = vadd.f32 %v2599_v48, %v2597_v45 }
 0x7be   : > { %2668 = vrot.lane.b32.xlu1 %v2598_v39, %s5424_s19 }
 0x7c1   : > { %v2550_v49 = vpop.f32.mrf.mxu3 }
 0x7c2   : > { %v2603_v41 = vmul.f32 0.25, %v2550_v49  ;;  %v2605_v61 = vmul.f32 0.75, %v2550_v49 }
 0x7c4   : > { %v2604_v51 = vadd.f32 %v2603_v41, %v2601_v38  ;;  %v2606_v63 = vadd.f32 %v2605_v61, %v2599_v48 }
 0x7c6   : > { %2672 = vrot.lane.b32.xlu1 %v2600_v47, %s5418_s12  ;;  %2676 = vrot.lane.b32.xlu2 %v2604_v51, %s5422_s26 }
 0x7c9   : > { %v2553_v62 = vpop.f32.mrf.mxu3 }
 0x7ca   : > { %v2609_v54 = vmul.f32 0.75, %v2553_v62  ;;  %v2607_v0 = vmul.f32 0.25, %v2553_v62 }
 0x7cc   : > { %v6089_v46 = vadd.f32 %v2609_v54, %v2603_v41  ;;  %v2608_v2 = vadd.f32 %v2607_v0, %v2605_v61 }
 0x7ce   : > { %2680 = vrot.lane.b32.xlu2 %v2606_v63, %s5424_s19 }
 0x7d1   : > { %v2556_v17 = vpop.f32.mrf.mxu3 }
 0x7d2   : > { %v2611_v25 = vmul.f32 0.25, %v2556_v17  ;;  %v2613_v26 = vmul.f32 0.75, %v2556_v17 }
 0x7d4   : > { %v2612_v50 = vadd.f32 %v2611_v25, %v2609_v54  ;;  %v2614_v23 = vadd.f32 %v2613_v26, %v2607_v0 }
 0x7d6   : > { %2684 = vrot.lane.b32.xlu2 %v2608_v2, %s5418_s12  ;;  %2700 = vrot.lane.b32.xlu0 %v2612_v50, %s5422_s26 }
 0x7d9   : > { %v2559_v56 = vpop.f32.mrf.mxu3 }
 0x7da   : > { %v2617_v3 = vmul.f32 0.75, %v2559_v56  ;;  %v2615_v1 = vmul.f32 0.25, %v2559_v56 }
 0x7dc   : > { %v6094_v28 = vadd.f32 %v2617_v3, %v2611_v25  ;;  %v2616_v34 = vadd.f32 %v2615_v1, %v2613_v26 }
 0x7e1   : > { %v2562_v4 = vpop.f32.mrf.mxu3 }
 0x7e2   : > { %v2619_v6 = vmul.f32 0.25, %v2562_v4  ;;  %v2621_v30 = vmul.f32 0.75, %v2562_v4 }
 0x7e4   : > { %v2620_v24 = vadd.f32 %v2619_v6, %v2617_v3  ;;  %v2622_v35 = vadd.f32 %v2621_v30, %v2615_v1 }
 0x7e9   : > { %v2565_v5 = vpop.f32.mrf.mxu3 }
 0x7ea   : > { %v2625_v52 = vmul.f32 0.75, %v2565_v5  ;;  %v2623_v29 = vmul.f32 0.25, %v2565_v5 }
 0x7ec   : > { %v6096_v7 = vadd.f32 %v2625_v52, %v2619_v6  ;;  %v2624_v42 = vadd.f32 %v2623_v29, %v2621_v30 }
 0x7f0   : > { %v2645_v40 = vpop.permute.xlu2 %2644 }
 0x7f1   : > { %v2568_v8 = vpop.f32.mrf.mxu3 }
 0x7f2   : > { %v2627_v10 = vmul.f32 0.25, %v2568_v8  ;;  %v2629_v27 = vmul.f32 0.75, %v2568_v8 }
 0x7f4   : > { %v2628_v22 = vadd.f32 %v2627_v10, %v2625_v52  ;;  %v2630_v32 = vadd.f32 %v2629_v27, %v2623_v29 }
 0x7f9   : > { %v2571_v9 = vpop.f32.mrf.mxu3 }
 0x7fa   : > { %v2633_v11 = vmul.f32 0.75, %v2571_v9  ;;  %v2631_v55 = vmul.f32 0.25, %v2571_v9 }
 0x7fc   : > { %v2634_v14 = vadd.f32 %v2633_v11, %v2627_v10  ;;  %v2632_v36 = vadd.f32 %v2631_v55, %v2629_v27  ;;  %v6604_v27 = vld [vmem:[%s6914_s4 + $0xc0] sm:$0xff] }
 0x801   : > { %v2574_v16 = vpop.f32.mrf.mxu3 }
 0x802   : > { %v2635_v15 = vmul.f32 0.25, %v2574_v16  ;;  %v2637_v20 = vmul.f32 0.75, %v2574_v16  ;;  %2744 = vrot.lane.b32.xlu2 %v2574_v16, %s5418_s12 }
 0x804   : > { %v2638_v21 = vadd.f32 %v2637_v20, %v2631_v55  ;;  %v2636_v18 = vadd.f32 %v2635_v15, %v2633_v11 }
 0x806   : > { %2740 = vrot.lane.b32.xlu0 %v2638_v21, %s5424_s19  ;;  %2736 = vrot.lane.b32.xlu1 %v2636_v18, %s5422_s26 }
 0x808   : > { %v2641_v33 = vpop.permute.xlu0 %2640 }
 0x809   : > { %v2687_v53 = vsel %vm6928_vm8, %v6069_v19, %v2641_v33 }
 0x80a   : > { %2724 = vrot.lane.b32.xlu2 %v2628_v22, %s5422_s26  ;;  %v2688_v59 = vsel %vm1449_vm11, %v2687_v53, %v2645_v40  ;;  %v2760_v53 = vadd.s32 384, %v5513_v12 }
 0x80e   : > { %2704 = vrot.lane.b32.xlu0 %v2614_v23, %s5424_s19  ;;  %2712 = vrot.lane.b32.xlu1 %v2620_v24, %s5422_s26 }
 0x810   : > { %v2649_v58 = vpop.permute.xlu1 %2648 }
 0x811   : > { %v6112_v44 = vsel %vm6921_vm14, %v2688_v59, %v2649_v58  ;;  %v2790_v59 = vand.u32 31, %v2760_v53 }
 0x812   : > { %2728 = vrot.lane.b32.xlu2 %v2630_v32, %s5424_s19 }
 0x813   : > { %vm6244_vm4 = vcmp.ge.s32.totalorder %v2790_v59, 1  ;;  %vm6383_vm6 = vcmp.le.s32.totalorder %v2790_v59, 30 }
 0x816   : > { %2708 = vrot.lane.b32.xlu0 %v2616_v34, %s5418_s12  ;;  %2716 = vrot.lane.b32.xlu1 %v2622_v35, %s5424_s19  ;;  %v2769_v35 = vand.u32 31, %v5513_v12 }
 0x818   : > { %v2653_v37 = vpop.permute.xlu0 %2652  ;;  %vm6221_vm2 = vcmp.ge.s32.totalorder %v2769_v35, 1 }
 0x819   : > { %v2690_v60 = vsel %vm6928_vm8, %v6075_v31, %v2653_v37 }
 0x81a   : > { %2732 = vrot.lane.b32.xlu2 %v2632_v36, %s5418_s12 }
 0x81e   : > { %2720 = vrot.lane.b32.xlu1 %v2624_v42, %s5418_s12  ;;  %2889 = vrot.lane.b32.xlu0 %v6112_v44, %s5410_s22 }
 0x820   : > { %v2657_v45 = vpop.permute.xlu0 %2656  ;;  %v2677_v31 = vpop.permute.xlu2 %2676 }
 0x821   : > { %v2691_v19 = vsel %vm1449_vm11, %v2690_v60, %v2657_v45  ;;  %v2696_v6 = vsel %vm6928_vm8, %v6084_v43, %v2677_v31  ;;  %v6264_v31 = vadd.s32 640, %v5513_v12 }
 0x828   : > { %v2661_v38 = vpop.permute.xlu0 %2660  ;;  %v2665_v48 = vpop.permute.xlu1 %2664 }
 0x829   : > { %v6121_v39 = vsel %vm6921_vm14, %v2691_v19, %v2661_v38  ;;  %v2693_v41 = vsel %vm6928_vm8, %v6079_v57, %v2665_v48  ;;  %v2681_v62 = vpop.permute.xlu2 %2680 }
 0x82a   : > { %2891 = vrot.lane.b32.xlu2 %v6121_v39, %s5410_s22  ;;  %v2697_v52 = vsel %vm1449_vm11, %v2696_v6, %v2681_v62  ;;  %v6267_v62 = vadd.s32 768, %v5513_v12 }
 0x830   : > { %v2669_v49 = vpop.permute.xlu1 %2668 }
 0x831   : > { %v2694_v47 = vsel %vm1449_vm11, %v2693_v41, %v2669_v49  ;;  %v2685_v54 = vpop.permute.xlu2 %2684 }
 0x832   : > { %v6144_v8 = vsel %vm6921_vm14, %v2697_v52, %v2685_v54 }
 0x838   : > { %v2673_v51 = vpop.permute.xlu1 %2672 }
 0x839   : > { %v6129_v61 = vsel %vm6921_vm14, %v2694_v47, %v2673_v51 }
 0x83a   : > { %2893 = vrot.lane.b32.xlu0 %v6129_v61, %s5410_s22  ;;  %v5311_v26 = vpack.i.bf16 %v6129_v61, %v6121_v39 }
 0x848   : > { %v2701_v0 = vpop.permute.xlu0 %2700 }
 0x849   : > { %v2747_v9 = vsel %vm6928_vm8, %v6089_v46, %v2701_v0 }
 0x85c   : > { %v2745_v63 = vpop.permute.xlu2 %2744 }
 0x864   : > { %v2725_v17 = vpop.permute.xlu2 %2724 }
 0x865   : > { %v2753_v55 = vsel %vm6928_vm8, %v6096_v7, %v2725_v17  ;;  %v6922_v17 = vand.u32 31, %v6264_v31 }
 0x867   : > { %vm6287_vm10 = vcmp.ge.s32.totalorder %v6922_v17, 1 }
 0x86c   : > { %v2729_v3 = vpop.permute.xlu2 %2728 }
 0x86d   : > { %v2754_v15 = vsel %vm1449_vm11, %v2753_v55, %v2729_v3 }
 0x874   : > { %v2733_v10 = vpop.permute.xlu2 %2732 }
 0x875   : > { %v6160_v20 = vsel %vm6921_vm14, %v2754_v15, %v2733_v10 }
 0x878   : > { %v2741_v25 = vpop.permute.xlu0 %2740  ;;  %v2737_v2 = vpop.permute.xlu1 %2736 }
 0x879   : > { %v2756_v50 = vsel %vm6928_vm8, %v2634_v14, %v2737_v2 }
 0x87a   : > { %v2757_v57 = vsel %vm1449_vm11, %v2756_v50, %v2741_v25  ;;  %v6923_v25 = vand.u32 31, %v6267_v62 }
 0x87b   : > { %v6136_v56 = vsel %vm6921_vm14, %v2757_v57, %v2745_v63  ;;  %v2776_v63 = vand.u32 31, %v5516_v13  ;;  %v2761_v57 = vadd.s32 512, %v5513_v12 }
 0x87c   : > { %2903 = vrot.lane.b32.xlu1 %v6136_v56, %s5410_s22  ;;  %vm6293_vm13 = vcmp.ge.s32.totalorder %v6923_v25, 1  ;;  %v2764_v25 = vadd.s32 896, %v5513_v12 }
 0x87d   : > { %vm6276_vm5 = vcmp.ge.s32.totalorder %v2776_v63, 1  ;;  %vm6337_vm9 = vcmp.le.s32.totalorder %v2776_v63, 30 }
 0x880   : > { %v2705_v4 = vpop.permute.xlu0 %2704  ;;  %v2713_v5 = vpop.permute.xlu1 %2712 }
 0x881   : > { %v2748_v11 = vsel %vm1449_vm11, %v2747_v9, %v2705_v4  ;;  %v2750_v46 = vsel %vm6928_vm8, %v6094_v28, %v2713_v5  ;;  %v6190_v28 = vadd.s32 256, %v5513_v12 }
 0x883   : > { %v6924_v24 = vand.u32 31, %v6190_v28 }
 0x884   : > { %2895 = vrot.lane.b32.xlu1 %v6144_v8, %s5410_s22  ;;  %v2892_v29 = vpop.permute.xlu2 %2891 }
 0x885   : > { %vm6200_vm1 = vcmp.ge.s32.totalorder %v6924_v24, 1 }
 0x888   : > { %v2709_v14 = vpop.permute.xlu0 %2708  ;;  %v2717_v16 = vpop.permute.xlu1 %2716 }
 0x889   : > { %v6154_v43 = vsel %vm6921_vm14, %v2748_v11, %v2709_v14  ;;  %v2751_v21 = vsel %vm1449_vm11, %v2750_v46, %v2717_v16  ;;  %v2797_v16 = vand.u32 31, %v2761_v57  ;;  %vm6341_vm11 = vcmp.le.s32.totalorder %v2769_v35, 30 }
 0x88a   : > { %2897 = vrot.lane.b32.xlu2 %v6154_v43, %s5410_s22  ;;  %v6968_v57 = vmov 0 }
 0x88b   : > { %vm6329_vm7 = vcmp.ge.s32.totalorder %v2797_v16, 1  ;;  %vm6374_vm12 = vcmp.le.s32.totalorder %v2797_v16, 30  ;;  %v6969_v57 = vsel %vm6383_vm6, 4294967295, %v6968_v57 }
 0x88c   : > { %2901 = vrot.lane.b32.xlu1 %v6160_v20, %s5410_s22  ;;  %6970 = vst [vmem:[#allocation2_spill] sm:$0xff] %v6969_v57 }
 0x890   : > { %v2721_v7 = vpop.permute.xlu1 %2720  ;;  %v2890_v22 = vpop.permute.xlu0 %2889 }
 0x891   : > { %v6168_v18 = vsel %vm6921_vm14, %v2751_v21, %v2721_v7  ;;  %v6282_v50 = vsel %vm429_vm0, %v2890_v22, %v2892_v29  ;;  %v6962_v7 = vmov 0  ;;  %vm6388_vm14 = vmneg %vm6928_vm8 }
 0x892   : > { %2937 = vrot.lane.b32.xlu2 %v6112_v44, %s5411_s23  ;;  %2899 = vrot.lane.b32.xlu0 %v6168_v18, %s5410_s22  ;;  %v5316_v23 = vpack.i.bf16 %v6168_v18, %v6154_v43  ;;  %v6309_v52 = vsel %vm6276_vm5, %v6282_v50, 0.0  ;;  %v6963_v7 = vsel %vm6337_vm9, 4294967295, %v6962_v7 }
 0x894   : > { %2941 = vrot.lane.b32.xlu1 %v6129_v61, %s5411_s23 }
 0x89a   : > { %5312 = vrot.lane.b32.xlu2 %v5311_v26, %s5422_s26  ;;  %2939 = vrot.lane.b32.xlu0 %v6121_v39, %s5411_s23  ;;  %v6964_v26 = vmov 0 }
 0x89b   : > { %v6965_v26 = vsel %vm6341_vm11, 4294967295, %v6964_v26 }
 0x89c   : > { %2945 = vrot.lane.b32.xlu1 %v6154_v43, %s5411_s23 }
 0x8a2   : > { %2947 = vrot.lane.b32.xlu2 %v6168_v18, %s5411_s23  ;;  %2943 = vrot.lane.b32.xlu0 %v6144_v8, %s5411_s23 }
 0x8a4   : > { %3033 = vrot.lane.b32.xlu1 %v6112_v44, %s5422_s26 }
 0x8aa   : > { %2949 = vrot.lane.b32.xlu2 %v6160_v20, %s5411_s23  ;;  %5317 = vrot.lane.b32.xlu0 %v5316_v23, %s5422_s26 }
 0x8ac   : > { %v2894_v1 = vpop.permute.xlu0 %2893 }
 0x8ad   : > { %v6206_v30 = vsel %vm429_vm0, %v2892_v29, %v2894_v1 }
 0x8ae   : > { %v6211_v32 = vsel %vm6200_vm1, %v6206_v30, 0.0 }
 0x8af   : > { %v5321_v33 = vpack.i.bf16 %v6211_v32, %v6144_v8 }
 0x8b2   : > { %5322 = vrot.lane.b32.xlu2 %v5321_v33, %s5422_s26  ;;  %2951 = vrot.lane.b32.xlu0 %v6136_v56, %s5411_s23 }
 0x8e4   : > { %v2898_v34 = vpop.permute.xlu2 %2897 }
 0x8ec   : > { %v6219_v36 = vpop.permute.xlu2 %2937 }
 0x8ee   : > { %v6226_v58 = vpop.permute.xlu1 %2903 }
 0x8ef   : > { %v6231_v40 = vsel %vm429_vm0, %v6226_v58, %v2890_v22 }
 0x8f0   : > { %v6236_v42 = vsel %vm6221_vm2, %v6231_v40, 0.0 }
 0x8f1   : > { %2993 = vrot.lane.b32.xlu1 %v6236_v42, %s5422_s26 }
 0x8f4   : > { %v6240_v45 = vpop.permute.xlu2 %5312 }
 0x8f5   : > { %v5315_v60 = vunpack.i.h.bf16 %v6240_v45  ;;  %v5314_v19 = vunpack.i.l.bf16 %v6240_v45  ;;  %v6973_v45 = vand.u32 31, %v6190_v28  ;;  %v5156_v28 = vld [vmem:[%s6914_s4 + $0xb0] sm:$0xff] }
 0x8f6   : > { %v2896_v48 = vpop.permute.xlu1 %2895 }
 0x8f7   : > { %v6250_v49 = vsel %vm429_vm0, %v2894_v1, %v2896_v48  ;;  %v3050_v41 = vsel %vm6928_vm8, %v5314_v19, %v5315_v60  ;;  %v6335_v21 = vsel %vm429_vm0, %v2896_v48, %v2898_v34  ;;  %vm6420_vm15 = vcmp.le.s32.totalorder %v6973_v45, 30 }
 0x8f8   : > { %v6258_v47 = vsel %vm6244_vm4, %v6250_v49, 0.0  ;;  %3123 = vmatpush.msra.mxu2 %v3050_v41  ;;  %v2933_v1 = vsel %vm6329_vm7, %v6335_v21, 0.0 }
 0x8f9   : > { %v5326_v51 = vpack.i.bf16 %v6160_v20, %v6258_v47 }
 0x8fb   : > { %5327 = vrot.lane.b32.xlu0 %v5326_v51, %s5422_s26  ;;  %v6966_v51 = vmov 0 }
 0x8fc   : > { %v6269_v54 = vpop.permute.xlu2 %2947  ;;  %v6967_v51 = vsel %vm6374_vm12, 4294967295, %v6966_v51 }
 0x8fe   : > { %v6272_v0 = vpop.permute.xlu1 %2901 }
 0x904   : > { %v2900_v4 = vpop.permute.xlu0 %2899  ;;  %v6311_v9 = vpop.permute.xlu2 %2949 }
 0x905   : > { %v6299_v5 = vsel %vm429_vm0, %v2898_v34, %v2900_v4  ;;  %v6304_v6 = vsel %vm429_vm0, %v2900_v4, %v6272_v0 }
 0x906   : > { %v6316_v10 = vsel %vm6287_vm10, %v6299_v5, 0.0  ;;  %v6321_v11 = vsel %vm6293_vm13, %v6304_v6, 0.0  ;;  %v2942_v14 = vpop.permute.xlu1 %2941 }
 0x907   : > { %v5331_v55 = vpack.i.bf16 %v6316_v10, %v6136_v56  ;;  %v5336_v15 = vpack.i.bf16 %v6309_v52, %v6321_v11 }
 0x909   : > { %5332 = vrot.lane.b32.xlu1 %v5331_v55, %s5422_s26  ;;  %5337 = vrot.lane.b32.xlu2 %v5336_v15, %s5422_s26 }
 0x90c   : > { %v2940_v22 = vpop.permute.xlu0 %2939  ;;  %v6370_v48 = vpop.permute.xlu2 %5322 }
 0x90d   : > { %v6347_v23 = vsel %vm6927_vm3, %v2940_v22, %v2942_v14  ;;  %v6352_v29 = vsel %vm6927_vm3, %v6219_v36, %v2940_v22  ;;  %v5324_v41 = vunpack.i.l.bf16 %v6370_v48 }
 0x90e   : > { %v6360_v33 = vsel %vm6337_vm9, %v6347_v23, 0.0  ;;  %v2946_v34 = vpop.permute.xlu1 %2945  ;;  %v6365_v35 = vsel %vm6341_vm11, %v6352_v29, 0.0 }
 0x90f   : > { %v5341_v53 = vpack.i.bf16 %v2933_v1, %v6360_v33  ;;  %3399 = vrot.lane.b32.xlu0 %v6365_v35, %s5422_s26  ;;  %v6381_v63 = vsel %vm6927_vm3, %v2946_v34, %v6269_v54 }
 0x910   : > { %v2981_v15 = vsel %vm6374_vm12, %v6381_v63, 0.0 }
 0x911   : > { %5342 = vrot.lane.b32.xlu1 %v5341_v53, %s5422_s26 }
 0x914   : > { %v2944_v4 = vpop.permute.xlu0 %2943 }
 0x915   : > { %v6394_v16 = vsel %vm6927_vm3, %v2944_v4, %v2946_v34  ;;  %v3051_v34 = vsel %vm6928_vm8, %v5315_v60, %v5324_v41  ;;  %v6414_v57 = vsel %vm6927_vm3, %v2942_v14, %v2944_v4  ;;  %v6974_v60 = vmov 0 }
 0x916   : > { %v2980_v59 = vsel %vm6383_vm6, %v6394_v16, 0.0  ;;  %v3034_v22 = vpop.permute.xlu1 %3033  ;;  %v6975_v60 = vsel %vm6420_vm15, 4294967295, %v6974_v60  ;;  %v2979_v14 = vsel %vm6420_vm15, %v6414_v57, 0.0  ;;  %v6979_v4 = vmov 0 }
 0x917   : > { %v5346_v53 = vpack.i.bf16 %v2981_v15, %v2980_v59  ;;  %v3049_v17 = vsel %vm6928_vm8, %v3034_v22, %v5314_v19  ;;  %5163 = vmatpush.msk.msra.mxu0 %vm6388_vm14, %v3034_v22  ;;  %vm6983_vm15 = vcmp.lt.s32.totalorder %v5513_v12, 127  ;;  %v5366_v12 = vpack.i.bf16 %v6211_v32, %v6316_v10  ;;  %v4746_v10 = vld [vmem:[%s6917_s7] sm:$0x1f] }
 0x918   : > { %3103 = vmatpush.msra.mxu1 %v3049_v17  ;;  %v2818_v17 = vand.u32 31, %v2764_v25  ;;  %v6440_v25 = vsel %vm429_vm0, %v6272_v0, %v6226_v58  ;;  %vm6984_vm0 = vmmov %vm6983_vm15  ;;  %v5391_v32 = vpack.i.bf16 %v2980_v59, %v6360_v33  ;;  %v6535_v33 = vld [vmem:[%s6914_s4 + $0x90] sm:$0xff] }
 0x919   : > { %3143 = vmatpush.msrb.mxu0 %v3051_v34  ;;  %5347 = vrot.lane.b32.xlu2 %v5346_v53, %s5422_s26 }
 0x91a   : > { %vm6432_vm3 = vcmp.ge.s32.totalorder %v2818_v17, 1  ;;  %vm6448_vm6 = vcmp.le.s32.totalorder %v2818_v17, 30 }
 0x91c   : > { %v6410_v24 = vpop.permute.xlu0 %5317 }
 0x91d   : > { %v6931_v19 = vunpack.i.h.bf16 %v6410_v24  ;;  %v5319_v22 = vunpack.i.l.bf16 %v6410_v24 }
 0x91f   : > { %v3052_v53 = vsel %vm6928_vm8, %v5324_v41, %v5319_v22  ;;  %v3053_v34 = vsel %vm6928_vm8, %v5319_v22, %v6931_v19  ;;  %v6978_v41 = vand.u32 31, %v6267_v62  ;;  %v6981_v22 = vmov 0 }
 0x920   : > { %3163 = vmatpush.msrb.mxu1 %v3052_v53  ;;  %3183 = vmatpush.msrb.mxu2 %v3053_v34  ;;  %v6982_v22 = vsel %vm6448_vm6, 4294967295, %v6981_v22  ;;  %v2936_v62 = vsel %vm6432_vm3, %v6440_v25, 0.0  ;;  %v5361_v34 = vpack.i.bf16 %v2933_v1, %v6258_v47  ;;  %v6986_v19 = vand.u32 31, %v6264_v31 }
 0x921   : > { %3403 = vrot.lane.b32.xlu2 %v2979_v14, %s5422_s26  ;;  %vm6444_vm8 = vcmp.le.s32.totalorder %v6978_v41, 30  ;;  %v6987_v47 = vmov 0  ;;  %v5371_v1 = vpack.i.bf16 %v6121_v39, %v6112_v44  ;;  %v5381_v31 = vpack.i.bf16 %v6168_v18, %v6321_v11 }
 0x922   : > { %v6980_v4 = vsel %vm6444_vm8, 4294967295, %v6979_v4 }
 0x924   : > { %v2952_v45 = vpop.permute.xlu0 %2951 }
 0x925   : > { %v6455_v53 = vsel %vm6983_vm15, %v6311_v9, %v2952_v45  ;;  %v6460_v58 = vsel %vm6984_vm0, %v2952_v45, %v6219_v36  ;;  %v5356_v36 = vpack.i.bf16 %v6309_v52, %v6236_v42  ;;  %vm6985_vm15 = vmmov %vm6984_vm0  ;;  %vm6485_vm0 = vcmp.le.s32.totalorder %v6986_v19, 30  ;;  %v5153_v52 = vld [vmem:[%s6914_s4 + $0x98] sm:$0xff] }
 0x926   : > { %v2983_v0 = vsel %vm6444_vm8, %v6455_v53, 0.0  ;;  %v2984_v17 = vsel %vm6448_vm6, %v6460_v58, 0.0  ;;  %v6481_v45 = vsel %vm6985_vm15, %v6269_v54, %v6311_v9  ;;  %v6988_v47 = vsel %vm6485_vm0, 4294967295, %v6987_v47 }
 0x927   : > { %v5351_v41 = vpack.i.bf16 %v2983_v0, %v2936_v62  ;;  %3413 = vrot.lane.b32.xlu1 %v2984_v17, %s5422_s26  ;;  %v2982_v42 = vsel %vm6485_vm0, %v6481_v45, 0.0  ;;  %v5376_v54 = vpack.i.bf16 %v6154_v43, %v6144_v8  ;;  %vm6989_vm15 = vcmask 64512  }
 0x928   : > { %5166 = vmatmul.msk.f32.vlgmr.msra.gmra.mxu2 %vm6989_vm15, %v5153_v52  ;;  %vm6990_vm0 = vmmov %vm6989_vm15  ;;  %v5386_v9 = vpack.i.bf16 %v6365_v35, %v6129_v61  ;;  %v5396_v11 = vpack.i.bf16 %v2982_v42, %v6160_v20 }
 0x929   : > { %5352 = vrot.lane.b32.xlu0 %v5351_v41, %s5422_s26  ;;  %5362 = vrot.lane.b32.xlu2 %v5361_v34, %s5418_s12  ;;  %vm6991_vm8 = vmmov %vm6990_vm0 }
 0x92a   : > { %5164 = vmatmul.msk.f32.vlgmr.msra.gmra.mxu0 %vm6990_vm0, %v5153_v52  ;;  %5165 = vmatmul.msk.f32.vlgmr.msra.gmra.mxu1 %vm6991_vm8, %v5153_v52  ;;  %vm6992_vm6 = vmmov %vm6990_vm0 }
 0x92b   : > { %vm6993_vm12 = vmmov %vm6990_vm0 }
 0x92c   : > { %vm6994_vm15 = vmmov %vm6990_vm0 }
 0x92d   : > { %vm6995_vm8 = vmmov %vm6990_vm0 }
 0x92e   : > { %vm7001_vm11 = vmmov %vm6995_vm8 }
 0x92f   : > { %5357 = vrot.lane.b32.xlu1 %v5356_v36, %s5418_s12 }
 0x930   : > { %5169 = vmatmul.msk.f32.vlgmr.msrb.gmra.mxu2 %vm6992_vm6, %v5153_v52 }
 0x931   : > { %3409 = vrot.lane.b32.xlu0 %v2982_v42, %s5422_s26  ;;  %5372 = vrot.lane.b32.xlu2 %v5371_v1, %s5418_s12 }
 0x932   : > { %5167 = vmatmul.msk.f32.vlgmr.msrb.gmra.mxu0 %vm6993_vm12, %v5153_v52  ;;  %5168 = vmatmul.msk.f32.vlgmr.msrb.gmra.mxu1 %vm6994_vm15, %v5153_v52  ;;  %vm6997_vm12 = vcmask 261120   ;;  %vm7000_vm15 = vmmov %vm6995_vm8 }
 0x933   : > { %vm6998_vm6 = vmmov %vm6997_vm12 }
 0x934   : > { %vm6999_vm0 = vmmov %vm6998_vm6 }
 0x937   : > { %4129 = vrot.lane.b32.xlu1 %v2936_v62, %s5418_s12 }
 0x939   : > { %5367 = vrot.lane.b32.xlu0 %v5366_v12, %s5418_s12  ;;  %4332 = vrot.lane.b32.xlu2 %v6136_v56, %s5418_s12 }
 0x93f   : > { %5382 = vrot.lane.b32.xlu1 %v5381_v31, %s5418_s12 }
 0x941   : > { %5377 = vrot.lane.b32.xlu0 %v5376_v54, %s5418_s12  ;;  %4529 = vrot.lane.b32.xlu2 %v2981_v15, %s5418_s12 }
 0x947   : > { %5392 = vrot.lane.b32.xlu1 %v5391_v32, %s5418_s12 }
 0x949   : > { %5387 = vrot.lane.b32.xlu0 %v5386_v9, %s5418_s12  ;;  %4525 = vrot.lane.b32.xlu2 %v2979_v14, %s5418_s12  ;;  %v5325_v14 = vunpack.i.h.bf16 %v6370_v48 }
 0x94f   : > { %4535 = vrot.lane.b32.xlu1 %v2984_v17, %s5418_s12 }
 0x951   : > { %5397 = vrot.lane.b32.xlu0 %v5396_v11, %s5418_s12  ;;  %4749 = vperm.xlu2 %5305, %v4746_v10  }
 0x959   : > { %4533 = vrot.lane.b32.xlu0 %v2983_v0, %s5418_s12  ;;  %v6996_v0 = vunpack.i.h.bf16 %v6410_v24  ;;  %s5270_s12 = sshll.u32 %s7113_s14, 6 }
 0x95a   : > { %s376_s16 = scalar_lea.vmem %s6920_s10, %s5270_s12 }
 0x963   : > { %v2994_v35 = vpop.permute.xlu1 %2993  ;;  %v5338_v15 = vpop.permute.xlu2 %5337 }
 0x964   : > { %5173 = vmatpush.msk.msra.mxu2 %vm6388_vm14, %v2994_v35  ;;  %v5340_v59 = vunpack.i.h.bf16 %v5338_v15  ;;  %v5339_v48 = vunpack.i.l.bf16 %v5338_v15 }
 0x965   : > { %5174 = vmatmul.msk.f32.vlgmr.msra.gmra.mxu2 %vm6995_vm8, %v6535_v33 }
 0x966   : > { %v3009_v36 = vsel %vm6999_vm0, %v2994_v35, %v5340_v59 }
 0x96d   : > { %v5328_v19 = vpop.permute.xlu0 %5327 }
 0x96e   : > { %v5330_v62 = vunpack.i.h.bf16 %v5328_v19  ;;  %v5329_v17 = vunpack.i.l.bf16 %v5328_v19 }
 0x970   : > { %v3054_v34 = vsel %vm6997_vm12, %v6996_v0, %v5330_v62  ;;  %v3011_v41 = vsel %vm6998_vm6, %v5325_v14, %v5329_v17  ;;  %vm7002_vm12 = vmmov %vm6999_vm0 }
 0x971   : > { %3203 = vmatpush.msra.mxu0 %v3054_v34  ;;  %3306 = vmatpush.msrb.mxu2 %v3011_v41  ;;  %vm7003_vm6 = vmmov %vm6999_vm0 }
 0x972   : > { %5177 = vmatmul.msk.f32.vlgmr.msrb.gmra.mxu2 %vm7000_vm15, %v6535_v33  ;;  %5170 = vmatmul.msk.f32.vlgmr.msra.gmra.mxu0 %vm6995_vm8, %v5153_v52  ;;  %vm7004_vm0 = vmmov %vm6995_vm8 }
 0x973   : > { %3266 = vmatpush.msrb.mxu0 %v3009_v36  ;;  %vm7005_vm9 = vmmov %vm7003_vm6  ;;  %v5348_v32 = vpop.permute.xlu2 %5347 }
 0x974   : > { %v3010_v54 = vsel %vm7005_vm9, %v5340_v59, %v5325_v14  ;;  %vm7006_vm15 = vmmov %vm7004_vm0  ;;  %v5350_v10 = vunpack.i.h.bf16 %v5348_v32  ;;  %v5349_v11 = vunpack.i.l.bf16 %v5348_v32 }
 0x975   : > { %vm7008_vm8 = vmmov %vm7003_vm6 }
 0x976   : > { %vm7010_vm9 = vmmov %vm7004_vm0  ;;  %v3418_v59 = vsel %vm7003_vm6, %v5349_v11, %v5350_v10 }
 0x97a   : > { %5175 = vmatmul.msk.f32.vlgmr.msrb.gmra.mxu0 %vm7001_vm11, %v6535_v33  ;;  %vm7007_vm11 = vmmov %vm7003_vm6 }
 0x97b   : > { %v5333_v1 = vpop.permute.xlu1 %5332  ;;  %v3404_v14 = vpop.permute.xlu2 %3403 }
 0x97c   : > { %v5335_v24 = vunpack.i.h.bf16 %v5333_v1  ;;  %v5334_v42 = vunpack.i.l.bf16 %v5333_v1 }
 0x97e   : > { %v3055_v12 = vsel %vm7002_vm12, %v5330_v62, %v5334_v42  ;;  %v3014_v31 = vsel %vm7003_vm6, %v5335_v24, %v5339_v48  ;;  %vm7009_vm12 = vmmov %vm7003_vm6 }
 0x97f   : > { %3223 = vmatpush.msra.mxu1 %v3055_v12  ;;  %3366 = vmatpush.msra.mxu2 %v3014_v31 }
 0x980   : > { %5171 = vmatmul.msk.f32.vlgmr.msra.gmra.mxu1 %vm7004_vm0, %v5153_v52  ;;  %5180 = vmatmul.msk.f32.vlgmr.msra.gmra.mxu2 %vm7006_vm15, %v6535_v33  ;;  %v5154_v52 = vld [vmem:[%s6914_s4 + $0xa0] sm:$0xff]  ;;  %vm7011_vm15 = vmmov %vm7004_vm0 }
 0x981   : > { %3286 = vmatpush.msrb.mxu1 %v3010_v54  ;;  %v3400_v19 = vpop.permute.xlu0 %3399 }
 0x983   : > { %v5343_v9 = vpop.permute.xlu1 %5342  ;;  %v6583_v31 = vpop.permute.xlu2 %5362 }
 0x984   : > { %v5345_v35 = vunpack.i.h.bf16 %v5343_v9  ;;  %v5344_v15 = vunpack.i.l.bf16 %v5343_v9 }
 0x986   : > { %v3012_v62 = vsel %vm7007_vm11, %v5329_v17, %v5345_v35  ;;  %v3013_v0 = vsel %vm7008_vm8, %v5345_v35, %v5335_v24  ;;  %v3415_v34 = vsel %vm7009_vm12, %v3400_v19, %v5344_v15  ;;  %vm7012_vm11 = vmmov %vm7003_vm6 }
 0x987   : > { %3326 = vmatpush.msra.mxu0 %v3012_v62  ;;  %3346 = vmatpush.msra.mxu1 %v3013_v0  ;;  %v3417_v17 = vsel %vm7012_vm11, %v3404_v14, %v5349_v11  ;;  %vm7013_vm8 = vmmov %vm7004_vm0 }
 0x988   : > { %3469 = vmatpush.msrb.mxu2 %v3415_v34  ;;  %5176 = vmatmul.msk.f32.vlgmr.msrb.gmra.mxu1 %vm7010_vm9, %v6535_v33  ;;  %vm7014_vm12 = vmmov %vm7004_vm0 }
 0x989   : > { %5183 = vmatpush.msk.msrb.mxu1 %vm6388_vm14, %v3400_v19  ;;  %5185 = vmatmul.msk.f32.vlgmr.msrb.gmra.mxu2 %vm7004_vm0, %v5154_v52  ;;  %vm7015_vm9 = vmmov %vm7004_vm0  ;;  %v6679_v19 = vld [vmem:[%s6914_s4 + $0xc8] sm:$0xff] }
 0x98a   : > { %3529 = vmatpush.msra.mxu2 %v3418_v59  ;;  %5178 = vmatmul.msk.f32.vlgmr.msra.gmra.mxu0 %vm7011_vm15, %v6535_v33  ;;  %vm7016_vm14 = vmmov %vm7003_vm6 }
 0x98b   : > { %vm7017_vm15 = vmmov %vm7003_vm6  ;;  %v6626_v2 = vpop.permute.xlu2 %5372 }
 0x98c   : > { %v3416_v12 = vsel %vm7017_vm15, %v5344_v15, %v3404_v14  ;;  %vm7018_vm11 = vmmov %vm7004_vm0  ;;  %v5375_v37 = vunpack.i.h.bf16 %v6626_v2 }
 0x98d   : > { %vm7029_vm15 = vmmov %vm7004_vm0 }
 0x990   : > { %5179 = vmatmul.msk.f32.vlgmr.msra.gmra.mxu1 %vm7013_vm8, %v6535_v33  ;;  %vm7019_vm8 = vmmov %vm7004_vm0 }
 0x991   : > { %3509 = vmatpush.msra.mxu1 %v3417_v17  ;;  %5188 = vmatmul.msk.f32.vlgmr.msra.gmra.mxu2 %vm7014_vm12, %v5154_v52  ;;  %vm7020_vm12 = vmmov %vm7003_vm6 }
 0x993   : > { %v6683_v62 = vpop.permute.xlu2 %4332 }
 0x998   : > { %5184 = vmatmul.msk.f32.vlgmr.msrb.gmra.mxu1 %vm7015_vm9, %v5154_v52  ;;  %vm7021_vm9 = vmmov %vm7003_vm6 }
 0x999   : > { %v3414_v41 = vpop.permute.xlu1 %3413 }
 0x99b   : > { %v5353_v55 = vpop.permute.xlu0 %5352 }
 0x99c   : > { %v5355_v36 = vunpack.i.h.bf16 %v5353_v55  ;;  %v5354_v1 = vunpack.i.l.bf16 %v5353_v55 }
 0x99e   : > { %v3015_v24 = vsel %vm7016_vm14, %v5339_v48, %v5354_v1  ;;  %v3421_v42 = vsel %vm7003_vm6, %v5355_v36, %v3414_v41  ;;  %vm7022_vm14 = vcmask 785408   ;;  %vm7025_vm6 = vmmov %vm7004_vm0 }
 0x99f   : > { %3386 = vmatpush.msrb.mxu0 %v3015_v24  ;;  %3589 = vmatpush.msrb.mxu2 %v3421_v42 }
 0x9a0   : > { %5181 = vmatmul.msk.f32.vlgmr.msrb.gmra.mxu0 %vm7004_vm0, %v6535_v33  ;;  %5187 = vmatmul.msk.f32.vlgmr.msra.gmra.mxu1 %vm7018_vm11, %v5154_v52 }
 0x9a1   : > { %3489 = vmatpush.msra.mxu0 %v3416_v12  ;;  %5191 = vmatmul.msk.f32.vlgmr.msrb.gmra.mxu2 %vm7019_vm8, %v5154_v52  ;;  %v6586_v54 = vpop.permute.xlu1 %5357  ;;  %vm7033_vm8 = vmmov %vm7004_vm0 }
 0x9a2   : > { %5196 = vmatpush.msk.msra.mxu2 %vm6200_vm1, %v6206_v30  ;;  %v5360_v48 = vunpack.i.h.bf16 %v6586_v54  ;;  %v5359_v32 = vunpack.i.l.bf16 %v6586_v54  ;;  %v5155_v30 = vld [vmem:[%s6914_s4 + $0xa8] sm:$0xff]  ;;  %vm7023_vm1 = vmmov %vm7004_vm0 }
 0x9a3   : > { %v3410_v33 = vpop.permute.xlu0 %3409 }
 0x9a4   : > { %5202 = vmatpush.msk.msrb.mxu2 %vm6287_vm10, %v6299_v5  ;;  %v3419_v9 = vsel %vm7020_vm12, %v5350_v10, %v3410_v33  ;;  %v3420_v11 = vsel %vm7021_vm9, %v3410_v33, %v5355_v36  ;;  %v4131_v35 = vsel %vm7022_vm14, %v5359_v32, %v5360_v48  ;;  %vm7024_vm10 = vmmov %vm7004_vm0  ;;  %v5365_v5 = vunpack.i.h.bf16 %v6583_v31 }
 0x9a5   : > { %3549 = vmatpush.msrb.mxu0 %v3419_v9  ;;  %3569 = vmatpush.msrb.mxu1 %v3420_v11  ;;  %vm7034_vm12 = vmmov %vm7004_vm0 }
 0x9a6   : > { %4165 = vmatpush.msrb.mxu3 %v4131_v35  ;;  %vm7035_vm9 = vmmov %vm7004_vm0 }
 0x9a7   : > { %5194 = vmatpush.msk.msra.mxu1 %vm6276_vm5, %v6282_v50  ;;  %5232 = vmatmul.msk.f32.vlgmr.msrb.gmra.mxu3 %vm7023_vm1, %v6604_v27  ;;  %vm7027_vm5 = vmmov %vm7004_vm0  ;;  %v3105_v59 = vpop.f32.mrf.mxu1 }
 0x9a8   : > { %5186 = vmatmul.msk.f32.vlgmr.msra.gmra.mxu0 %vm7024_vm10, %v5154_v52  ;;  %5190 = vmatmul.msk.f32.vlgmr.msrb.gmra.mxu1 %vm7025_vm6, %v5154_v52  ;;  %vm7038_vm1 = vmmov %vm7004_vm0 }
 0x9a9   : > { %5192 = vmatpush.msk.msra.mxu0 %vm6221_vm2, %v6231_v40  ;;  %5197 = vmatmul.msk.f32.vlgmr.msra.gmra.mxu2 %vm7004_vm0, %v5155_v30  ;;  %v6620_v13 = vpop.permute.xlu1 %4129  ;;  %v5374_v40 = vunpack.i.l.bf16 %v6626_v2  ;;  %vm7026_vm2 = vmmov %vm7022_vm14 }
 0x9aa   : > { %5200 = vmatpush.msk.msrb.mxu1 %vm6329_vm7, %v6335_v21  ;;  %3791 = vmatpush.msra.mxu2 %v6112_v44  ;;  %vm7028_vm7 = vmmov %vm7004_vm0 }
 0x9ab   : > { %v6628_v50 = vpop.permute.xlu0 %5367  ;;  %vm7030_vm11 = vmmov %vm7026_vm2 }
 0x9ac   : > { %v5369_v10 = vunpack.i.l.bf16 %v6628_v50  ;;  %v4334_v21 = vsel %vm7030_vm11, %v5374_v40, %v5375_v37  ;;  %vm7037_vm14 = vmmov %vm7026_vm2 }
 0x9ad   : > { %vm7039_vm10 = vmmov %vm7004_vm0 }
 0x9ae   : > { %v4135_v46 = vsel %vm7026_vm2, %v5365_v5, %v5369_v10  ;;  %vm7040_vm6 = vmmov %vm7004_vm0 }
 0x9af   : > { %4245 = vmatpush.msra.mxu3 %v4135_v46  ;;  %vm7046_vm11 = vmmov %vm7038_vm1  ;;  %v6803_v1 = vpop.f32.mrf.mxu1 }
 0x9b0   : > { %5189 = vmatmul.msk.f32.vlgmr.msrb.gmra.mxu0 %vm7027_vm5, %v5154_v52  ;;  %5195 = vmatmul.msk.f32.vlgmr.msra.gmra.mxu1 %vm7028_vm7, %v5155_v30  ;;  %v6707_v52 = vpop.permute.xlu2 %4529  ;;  %vm7044_vm7 = vmmov %vm7038_vm1 }
 0x9b1   : > { %5198 = vmatpush.msk.msrb.mxu0 %vm6244_vm4, %v6250_v49  ;;  %5203 = vmatmul.msk.f32.vlgmr.msrb.gmra.mxu2 %vm7029_vm15, %v5155_v30  ;;  %v6645_v44 = vpop.permute.xlu1 %5382  ;;  %vm7031_vm4 = vmmov %vm7004_vm0 }
 0x9b2   : > { %5206 = vmatpush.msk.msra.mxu1 %vm6432_vm3, %v6440_v25  ;;  %3851 = vmatpush.msrb.mxu2 %v6144_v8  ;;  %v5385_v38 = vunpack.i.h.bf16 %v6645_v44  ;;  %vm7032_vm3 = vmmov %vm7026_vm2 }
 0x9b3   : > { %4368 = vmatpush.msrb.mxu3 %v4334_v21  ;;  %v6654_v15 = vpop.permute.xlu0 %5377  ;;  %vm7042_vm2 = vmmov %vm7038_vm1 }
 0x9b4   : > { %v5380_v49 = vunpack.i.h.bf16 %v6654_v15  ;;  %5236 = vmatmul.msk.f32.vlgmr.msra.gmra.mxu3 %vm7031_vm4, %v6604_v27  ;;  %vm7043_vm5 = vmmov %vm7032_vm3  ;;  %vm7047_vm4 = vnez %v6965_v26  ;;  %v7053_v26 = vld [vmem:[#allocation2_spill] sm:$0xff] }
 0x9b5   : > { %vm7045_vm15 = vmmov %vm7038_vm1 }
 0x9b6   : > { %v4338_v8 = vsel %vm7032_vm3, %v5380_v49, %v5385_v38  ;;  %vm7048_vm3 = vnez %v6967_v51  ;;  %v3085_v51 = vpop.f32.mrf.mxu0 }
 0x9b7   : > { %4448 = vmatpush.msra.mxu3 %v4338_v8 }
 0x9b8   : > { %5193 = vmatmul.msk.f32.vlgmr.msra.gmra.mxu0 %vm7033_vm8, %v5155_v30  ;;  %5201 = vmatmul.msk.f32.vlgmr.msrb.gmra.mxu1 %vm7034_vm12, %v5155_v30  ;;  %vm7049_vm8 = vmmov %vm7038_vm1  ;;  %v4526_v35 = vpop.permute.xlu2 %4525 }
 0x9b9   : > { %5204 = vmatpush.msk.msra.mxu0 %vm6293_vm13, %v6304_v6  ;;  %5208 = vmatmul.msk.f32.vlgmr.msra.gmra.mxu2 %vm7035_vm9, %v5156_v28  ;;  %v6674_v25 = vpop.permute.xlu1 %5392  ;;  %vm7036_vm13 = vmmov %vm7004_vm0  ;;  %vm7041_vm0 = vnez %v6963_v7  ;;  %v5161_v7 = vld [vmem:[%s6915_s5 + $0x20] sm:$0xff] }
 0x9ba   : > { %3831 = vmatpush.msrb.mxu1 %v6129_v61  ;;  %3911 = vmatpush.msra.mxu2 %v6160_v20  ;;  %v5394_v3 = vunpack.i.l.bf16 %v6674_v25  ;;  %vm7050_vm12 = vmmov %vm7038_vm1  ;;  %v5395_v24 = vunpack.i.h.bf16 %v6674_v25 }
 0x9bb   : > { %v6685_v0 = vpop.permute.xlu0 %5387  ;;  %4726 = vperm.xlu1 %5401, %v5161_v7   ;;  %vm7051_vm9 = vmmov %vm7038_vm1 }
 0x9bc   : > { %v5390_v6 = vunpack.i.h.bf16 %v6685_v0  ;;  %5241 = vmatmul.msk.f32.vlgmr.msrb.gmra.mxu3 %vm7036_vm13, %v6679_v19  ;;  %vm7052_vm13 = vmmov %vm7038_vm1  ;;  %v5389_v17 = vunpack.i.l.bf16 %v6685_v0 }
 0x9be   : > { %v4537_v34 = vsel %vm7037_vm14, %v5390_v6, %v5394_v3  ;;  %vm7054_vm14 = vnez %v7053_v26 }
 0x9bf   : > { %4571 = vmatpush.msrb.mxu3 %v4537_v34 }
 0x9c0   : > { %5199 = vmatmul.msk.f32.vlgmr.msrb.gmra.mxu0 %vm7038_vm1, %v5155_v30  ;;  %5207 = vmatmul.msk.f32.vlgmr.msra.gmra.mxu1 %vm7039_vm10, %v5155_v30  ;;  %vm7055_vm1 = vnez %v6982_v22  ;;  %vm7056_vm10 = vmmov %vm7042_vm2  ;;  %v3145_v22 = vpop.f32.mrf.mxu0 }
 0x9c1   : > { %3811 = vmatpush.msrb.mxu0 %v6121_v39  ;;  %5211 = vmatmul.msk.f32.vlgmr.msrb.gmra.mxu2 %vm7040_vm6, %v5156_v28  ;;  %vm7057_vm6 = vmmov %vm7042_vm2 }
 0x9c2   : > { %3891 = vmatpush.msra.mxu1 %v6168_v18  ;;  %5218 = vmatpush.msk.msrb.mxu2 %vm7041_vm0, %v6347_v23  ;;  %v6720_v18 = vld [vmem:[%s6914_s4 + $0xd0] sm:$0xff]  ;;  %v6748_v23 = vpop.f32.mrf.mxu2  ;;  %vm7058_vm0 = vmmov %vm7042_vm2 }
 0x9c3   : > { %v6702_v61 = vpop.permute.xlu0 %5397 }
 0x9c4   : > { %v5400_v20 = vunpack.i.h.bf16 %v6702_v61  ;;  %5245 = vmatmul.msk.f32.vlgmr.msra.gmra.mxu3 %vm7042_vm2, %v6679_v19  ;;  %vm7059_vm2 = vnez %v6975_v60  ;;  %v5384_v60 = vunpack.i.l.bf16 %v6645_v44  ;;  %v5399_v42 = vunpack.i.l.bf16 %v6702_v61 }
 0x9c6   : > { %v4541_v39 = vsel %vm7043_vm5, %v6707_v52, %v5400_v20  ;;  %vm7060_vm5 = vmmov %vm7058_vm0 }
 0x9c7   : > { %4651 = vmatpush.msra.mxu3 %v4541_v39 }
 0x9c8   : > { %5205 = vmatmul.msk.f32.vlgmr.msra.gmra.mxu0 %vm7044_vm7, %v5155_v30  ;;  %5210 = vmatmul.msk.f32.vlgmr.msrb.gmra.mxu1 %vm7045_vm15, %v5156_v28  ;;  %vm7061_vm7 = vcmask 785408   ;;  %vm7062_vm15 = vnez %v6980_v4  ;;  %v5379_v4 = vunpack.i.l.bf16 %v6654_v15 }
 0x9c9   : > { %3871 = vmatpush.msra.mxu0 %v6154_v43  ;;  %5214 = vmatmul.msk.f32.vlgmr.msra.gmra.mxu2 %vm7046_vm11, %v5156_v28  ;;  %v5157_v43 = vld [vmem:[%s6914_s4 + $0xb8] sm:$0xff]  ;;  %vm7063_vm11 = vmmov %vm7058_vm0 }
 0x9ca   : > { %5216 = vmatpush.msk.msrb.mxu1 %vm7047_vm4, %v6352_v29  ;;  %5224 = vmatpush.msk.msra.mxu2 %vm7048_vm3, %v6381_v63  ;;  %v5364_v29 = vunpack.i.l.bf16 %v6583_v31  ;;  %v5370_v63 = vunpack.i.h.bf16 %v6628_v50  ;;  %vm7064_vm4 = vmmov %vm7058_vm0  ;;  %vm7065_vm3 = vnez %v6988_v47 }
 0x9cc   : > { %5250 = vmatmul.msk.f32.vlgmr.msrb.gmra.mxu3 %vm7049_vm8, %v6720_v18  ;;  %vm7066_vm8 = vmmov %vm7058_vm0 }
 0x9d0   : > { %5209 = vmatmul.msk.f32.vlgmr.msrb.gmra.mxu0 %vm7050_vm12, %v5156_v28  ;;  %5213 = vmatmul.msk.f32.vlgmr.msra.gmra.mxu1 %vm7051_vm9, %v5156_v28  ;;  %vm7067_vm12 = vmmov %vm7061_vm7 }
 0x9d1   : > { %3931 = vmatpush.msrb.mxu0 %v6136_v56  ;;  %5219 = vmatmul.msk.f32.vlgmr.msrb.gmra.mxu2 %vm7052_vm13, %v5157_v43  ;;  %v4134_v56 = vsel %vm7061_vm7, %v5364_v29, %v5365_v5  ;;  %vm7068_vm9 = vmmov %vm7061_vm7 }
 0x9d2   : > { %5222 = vmatpush.msk.msra.mxu1 %vm7054_vm14, %v6394_v16  ;;  %5230 = vmatpush.msk.msrb.mxu2 %vm7055_vm1, %v6460_v58  ;;  %v6764_v16 = vpop.f32.mrf.mxu2  ;;  %vm7069_vm13 = vmmov %vm7058_vm0 }
 0x9d3   : > { %vm7070_vm14 = vmmov %vm7058_vm0 }
 0x9d4   : > { %5254 = vmatmul.msk.f32.vlgmr.msra.gmra.mxu3 %vm7056_vm10, %v6720_v18  ;;  %vm7071_vm1 = vmmov %vm7061_vm7 }
 0x9d5   : > { %vm7072_vm10 = vmmov %vm7058_vm0 }
 0x9d8   : > { %5212 = vmatmul.msk.f32.vlgmr.msra.gmra.mxu0 %vm7057_vm6, %v5156_v28  ;;  %5217 = vmatmul.msk.f32.vlgmr.msrb.gmra.mxu1 %vm7058_vm0, %v5157_v43  ;;  %vm7073_vm6 = vmmov %vm7071_vm1 }
 0x9d9   : > { %5220 = vmatpush.msk.msra.mxu0 %vm7059_vm2, %v6414_v57  ;;  %5225 = vmatmul.msk.f32.vlgmr.msra.gmra.mxu2 %vm7060_vm5, %v5157_v43  ;;  %v4133_v57 = vsel %vm7067_vm12, %v5370_v63, %v5364_v29  ;;  %vm7074_vm0 = vmmov %vm7071_vm1 }
 0x9da   : > { %5228 = vmatpush.msk.msrb.mxu1 %vm7062_vm15, %v6455_v53  ;;  %4225 = vmatpush.msra.mxu2 %v4134_v56  ;;  %v4132_v53 = vsel %vm7071_vm1, %v5360_v48, %v5370_v63  ;;  %v4337_v47 = vsel %vm7074_vm0, %v5379_v4, %v5380_v49  ;;  %vm7075_vm2 = vmmov %vm7064_vm4 }
 0x9db   : > { %vm7076_vm5 = vmmov %vm7075_vm2 }
 0x9dc   : > { %vm7077_vm7 = vmmov %vm7074_vm0 }
 0x9dd   : > { %v4136_v41 = vsel %vm7077_vm7, %v5369_v10, %v5384_v60  ;;  %vm7078_vm15 = vmmov %vm7075_vm2  ;;  %v4534_v10 = vpop.permute.xlu0 %4533 }
 0x9de   : > { %vm7083_vm12 = vmmov %vm7074_vm0 }
 0x9df   : > { %v4335_v54 = vsel %vm7083_vm12, %v5375_v37, %v5389_v17  ;;  %vm7087_vm1 = vmmov %vm7075_vm2 }
 0x9e0   : > { %5215 = vmatmul.msk.f32.vlgmr.msrb.gmra.mxu0 %vm7063_vm11, %v5156_v28  ;;  %5223 = vmatmul.msk.f32.vlgmr.msra.gmra.mxu1 %vm7064_vm4, %v5157_v43  ;;  %vm7079_vm11 = vmmov %vm7074_vm0 }
 0x9e1   : > { %5226 = vmatpush.msk.msrb.mxu0 %vm7065_vm3, %v6481_v45  ;;  %5231 = vmatmul.msk.f32.vlgmr.msrb.gmra.mxu2 %vm7066_vm8, %v5157_v43  ;;  %v4137_v45 = vsel %vm7073_vm6, %v5384_v60, %v6620_v13  ;;  %v4336_v36 = vsel %vm7079_vm11, %v5389_v17, %v5379_v4  ;;  %vm7080_vm4 = vmmov %vm7074_vm0 }
 0x9e2   : > { %4205 = vmatpush.msra.mxu1 %v4133_v57  ;;  %5239 = vmatpush.msk.msrb.mxu2 %vm7068_vm9, %v6620_v13  ;;  %vm7081_vm3 = vmmov %vm7075_vm2  ;;  %v4536_v13 = vpop.permute.xlu1 %4535 }
 0x9e3   : > { %vm7082_vm8 = vmmov %vm7075_vm2 }
 0x9e4   : > { %vm7084_vm9 = vmmov %vm7075_vm2 }
 0x9e5   : > { %vm7089_vm6 = vmmov %vm7074_vm0 }
 0x9e6   : > { %v4339_v30 = vsel %vm7089_vm6, %v5385_v38, %v5399_v42 }
 0x9e8   : > { %5221 = vmatmul.msk.f32.vlgmr.msra.gmra.mxu0 %vm7069_vm13, %v5157_v43  ;;  %5229 = vmatmul.msk.f32.vlgmr.msrb.gmra.mxu1 %vm7070_vm14, %v5157_v43  ;;  %v3248_v58 = vpop.f32.mrf.mxu2  ;;  %vm7085_vm13 = vmmov %vm7074_vm0 }
 0x9e9   : > { %4185 = vmatpush.msra.mxu0 %v4132_v53  ;;  %5235 = vmatmul.msk.f32.vlgmr.msra.gmra.mxu2 %vm7072_vm10, %v6604_v27  ;;  %v6789_v14 = vadd.f32 %v3248_v58, %v3085_v51  ;;  %v4340_v32 = vsel %vm7085_vm13, %v5399_v42, %v6683_v62  ;;  %vm7086_vm14 = vmmov %vm7074_vm0 }
 0x9ea   : > { %4285 = vmatpush.msrb.mxu1 %v4137_v45  ;;  %4428 = vmatpush.msra.mxu2 %v4337_v47  ;;  %v4540_v33 = vsel %vm7086_vm14, %v5395_v24, %v6707_v52  ;;  %vm7088_vm10 = vmmov %vm7087_vm1 }
 0x9eb   : > { %vm7090_vm0 = vmmov %vm7087_vm1 }
 0x9ec   : > { %vm7093_vm7 = vmmov %vm7090_vm0 }
 0x9ed   : > { %vm7099_vm12 = vmmov %vm7090_vm0 }
 0x9ee   : > { %vm7101_vm13 = vmmov %vm7090_vm0 }
 0x9ef   : > { %v3205_v55 = vpop.f32.mrf.mxu0  ;;  %vm7102_vm14 = vmmov %vm7090_vm0 }
 0x9f0   : > { %5227 = vmatmul.msk.f32.vlgmr.msrb.gmra.mxu0 %vm7075_vm2, %v5157_v43  ;;  %5234 = vmatmul.msk.f32.vlgmr.msra.gmra.mxu1 %vm7076_vm5, %v6604_v27  ;;  %vm7091_vm2 = vmmov %vm7080_vm4 }
 0x9f1   : > { %4265 = vmatpush.msrb.mxu0 %v4136_v41  ;;  %5240 = vmatmul.msk.f32.vlgmr.msrb.gmra.mxu2 %vm7078_vm15, %v6604_v27  ;;  %v4539_v2 = vsel %vm7091_vm2, %v4526_v35, %v5395_v24  ;;  %vm7092_vm5 = vmmov %vm7091_vm2 }
 0x9f2   : > { %4408 = vmatpush.msra.mxu1 %v4336_v36  ;;  %5248 = vmatpush.msk.msrb.mxu2 %vm7080_vm4, %v6683_v62  ;;  %vm7094_vm15 = vmmov %vm7090_vm0 }
 0x9f3   : > { %vm7095_vm11 = vmmov %vm7091_vm2 }
 0x9f4   : > { %v4538_v40 = vsel %vm7095_vm11, %v5394_v3, %v4526_v35  ;;  %vm7096_vm4 = vmmov %vm7091_vm2 }
 0x9f5   : > { %v3308_v12 = vpop.f32.mrf.mxu2  ;;  %v4543_v46 = vsel %vm7096_vm4, %v4534_v10, %v4536_v13  ;;  %vm7105_vm6 = vmmov %vm7090_vm0 }
 0x9f6   : > { %v3309_v31 = vadd.f32 %v3308_v12, %v3145_v22  ;;  %vm7110_vm11 = vmmov %vm7090_vm0 }
 0x9f7   : > { %v3268_v48 = vpop.f32.mrf.mxu0  ;;  %vm7111_vm4 = vmmov %vm7090_vm0 }
 0x9f8   : > { %5233 = vmatmul.msk.f32.vlgmr.msra.gmra.mxu0 %vm7081_vm3, %v6604_v27  ;;  %5238 = vmatmul.msk.f32.vlgmr.msrb.gmra.mxu1 %vm7082_vm8, %v6604_v27  ;;  %v3269_v9 = vadd.f32 %v3268_v48, %v3105_v59  ;;  %vm7097_vm3 = vmmov %vm7090_vm0 }
 0x9f9   : > { %4388 = vmatpush.msra.mxu0 %v4335_v54  ;;  %5244 = vmatmul.msk.f32.vlgmr.msra.gmra.mxu2 %vm7084_vm9, %v6679_v19  ;;  %vm7098_vm8 = vmmov %vm7091_vm2 }
 0x9fa   : > { %4488 = vmatpush.msrb.mxu1 %v4340_v32  ;;  %4631 = vmatpush.msra.mxu2 %v4540_v33  ;;  %v4542_v49 = vsel %vm7098_vm8, %v5400_v20, %v4534_v10  ;;  %vm7100_vm9 = vmmov %vm7090_vm0 }
 0x9fb   : > { %vm7106_vm2 = vmmov %vm7090_vm0 }
 0x9fd   : > { %v3225_v11 = vpop.f32.mrf.mxu1 }
 0xa00   : > { %5237 = vmatmul.msk.f32.vlgmr.msrb.gmra.mxu0 %vm7087_vm1, %v6604_v27  ;;  %5243 = vmatmul.msk.f32.vlgmr.msra.gmra.mxu1 %vm7088_vm10, %v6679_v19  ;;  %vm7103_vm1 = vmmov %vm7090_vm0 }
 0xa01   : > { %4468 = vmatpush.msrb.mxu0 %v4339_v30  ;;  %5249 = vmatmul.msk.f32.vlgmr.msrb.gmra.mxu2 %vm7090_vm0, %v6679_v19  ;;  %vm7104_vm10 = vmmov %vm7090_vm0 }
 0xa02   : > { %4611 = vmatpush.msra.mxu1 %v4539_v2  ;;  %5257 = vmatpush.msk.msrb.mxu2 %vm7092_vm5, %v4536_v13  ;;  %vm7107_vm5 = vmmov %vm7090_vm0 }
 0xa03   : > { %v3368_v50 = vpop.f32.mrf.mxu2 }
 0xa04   : > { %v3369_v5 = vadd.f32 %v3368_v50, %v3205_v55 }
 0xa05   : > { %v3288_v27 = vpop.f32.mrf.mxu1 }
 0xa06   : > { %v3289_v37 = vadd.f32 %v3288_v27, %v6748_v23 }
 0xa07   : > { %v3328_v8 = vpop.f32.mrf.mxu0 }
 0xa08   : > { %5242 = vmatmul.msk.f32.vlgmr.msra.gmra.mxu0 %vm7093_vm7, %v6679_v19  ;;  %5247 = vmatmul.msk.f32.vlgmr.msrb.gmra.mxu1 %vm7094_vm15, %v6679_v19  ;;  %v3329_v13 = vadd.f32 %v3328_v8, %v6803_v1  ;;  %vm7108_vm7 = vmmov %vm7090_vm0 }
 0xa09   : > { %4591 = vmatpush.msra.mxu0 %v4538_v40  ;;  %5253 = vmatmul.msk.f32.vlgmr.msra.gmra.mxu2 %vm7097_vm3, %v6720_v18  ;;  %vm7109_vm15 = vmmov %vm7090_vm0 }
 0xa0a   : > { %4691 = vmatpush.msrb.mxu1 %v4543_v46 }
 0xa0c   : > { %v3471_v21 = vpop.f32.mrf.mxu2 }
 0xa0d   : > { %v3348_v44 = vpop.f32.mrf.mxu1  ;;  %v3595_v38 = vadd.f32 %v3471_v21, %v3269_v9 }
 0xa0e   : > { %v3349_v15 = vadd.f32 %v3348_v44, %v6764_v16 }
 0xa10   : > { %5246 = vmatmul.msk.f32.vlgmr.msrb.gmra.mxu0 %vm7099_vm12, %v6679_v19  ;;  %5252 = vmatmul.msk.f32.vlgmr.msra.gmra.mxu1 %vm7100_vm9, %v6720_v18 }
 0xa11   : > { %4671 = vmatpush.msrb.mxu0 %v4542_v49  ;;  %5258 = vmatmul.msk.f32.vlgmr.msrb.gmra.mxu2 %vm7101_vm13, %v6720_v18 }
 0xa14   : > { %v3531_v25 = vpop.f32.mrf.mxu2 }
 0xa15   : > { %v3451_v28 = vpop.f32.mrf.mxu1  ;;  %v3598_v10 = vadd.f32 %v3531_v25, %v3329_v13  ;;  %v6874_v25 = vld [vmem:[%s6916_s6] sm:$0x1f] }
 0xa16   : > { %v3594_v9 = vadd.f32 %v3451_v28, %v6789_v14 }
 0xa18   : > { %5251 = vmatmul.msk.f32.vlgmr.msra.gmra.mxu0 %vm7102_vm14, %v6720_v18  ;;  %5256 = vmatmul.msk.f32.vlgmr.msrb.gmra.mxu1 %vm7103_vm1, %v6720_v18 }
 0xa1d   : > { %v3388_v62 = vpop.f32.mrf.mxu0  ;;  %v3511_v0 = vpop.f32.mrf.mxu1 }
 0xa1e   : > { %v3389_v3 = vadd.f32 %v3388_v62, %v3225_v11  ;;  %v3597_v19 = vadd.f32 %v3511_v0, %v3309_v31 }
 0xa20   : > { %5255 = vmatmul.msk.f32.vlgmr.msrb.gmra.mxu0 %vm7104_vm10, %v6720_v18 }
 0xa24   : > { %v3591_v6 = vpop.f32.mrf.mxu2 }
 0xa25   : > { %v3601_v34 = vadd.f32 %v3591_v6, %v3389_v3  ;;  %v3491_v61 = vpop.f32.mrf.mxu0  ;;  %v3571_v20 = vpop.f32.mrf.mxu1 }
 0xa26   : > { %v3596_v52 = vadd.f32 %v3491_v61, %v3289_v37  ;;  %v3600_v39 = vadd.f32 %v3571_v20, %v3369_v5 }
 0xa2a   : > { %v4167_v51 = vpop.f32.mrf.mxu3 }
 0xa2c   : > { %v3662_v7 = vpop.f32.mrf.mxu2 }
 0xa2d   : > { %v3767_v43 = vadd.f32 %v3662_v7, %v3596_v52  ;;  %v3551_v26 = vpop.f32.mrf.mxu0  ;;  %v3642_v23 = vpop.f32.mrf.mxu1 }
 0xa2e   : > { %v3599_v29 = vadd.f32 %v3551_v26, %v3349_v15  ;;  %v3766_v56 = vadd.f32 %v3642_v23, %v3595_v38  ;;  %v6868_v21 = vpop.permute.xlu1 %4726 }
 0xa34   : > { %v3722_v63 = vpop.f32.mrf.mxu2 }
 0xa35   : > { %v3770_v16 = vadd.f32 %v3722_v63, %v3599_v29  ;;  %v3622_v57 = vpop.f32.mrf.mxu0  ;;  %v3702_v60 = vpop.f32.mrf.mxu1 }
 0xa36   : > { %v3765_v11 = vadd.f32 %v3622_v57, %v3594_v9  ;;  %v3769_v40 = vadd.f32 %v3702_v60, %v3598_v10 }
 0xa37   : > { %v4247_v4 = vpop.f32.mrf.mxu3 }
 0xa3c   : > { %v3793_v22 = vpop.f32.mrf.mxu2 }
 0xa3d   : > { %v3682_v18 = vpop.f32.mrf.mxu0  ;;  %v3762_v53 = vpop.f32.mrf.mxu1  ;;  %v3936_v35 = vadd.f32 %v3793_v22, %v3765_v11 }
 0xa3e   : > { %v3768_v58 = vadd.f32 %v3682_v18, %v3597_v19  ;;  %v6858_v45 = vadd.f32 %v3762_v53, %v3601_v34 }
 0xa3f   : > { %v4370_v47 = vpop.f32.mrf.mxu3 }
 0xa44   : > { %v3853_v59 = vpop.f32.mrf.mxu2 }
 0xa45   : > { %v3939_v17 = vadd.f32 %v3853_v59, %v3768_v58  ;;  %v3742_v41 = vpop.f32.mrf.mxu0  ;;  %v3833_v55 = vpop.f32.mrf.mxu1 }
 0xa46   : > { %v3771_v36 = vadd.f32 %v3742_v41, %v3600_v39  ;;  %v3938_v24 = vadd.f32 %v3833_v55, %v3767_v43 }
 0xa47   : > { %v4450_v12 = vpop.f32.mrf.mxu3 }
 0xa4c   : > { %v3913_v42 = vpop.f32.mrf.mxu2 }
 0xa4d   : > { %v6860_v31 = vadd.f32 %v3913_v42, %v3771_v36  ;;  %v3813_v54 = vpop.f32.mrf.mxu0  ;;  %v3893_v48 = vpop.f32.mrf.mxu1 }
 0xa4e   : > { %v6862_v32 = vadd.f32 %v3813_v54, %v3766_v56  ;;  %v6864_v33 = vadd.f32 %v3893_v48, %v3770_v16 }
 0xa4f   : > { %v4573_v27 = vpop.f32.mrf.mxu3 }
 0xa54   : > { %v3984_v30 = vpop.f32.mrf.mxu2 }
 0xa55   : > { %v3873_v2 = vpop.f32.mrf.mxu0  ;;  %v3964_v50 = vpop.f32.mrf.mxu1  ;;  %v4108_v9 = vadd.f32 %v3984_v30, %v6862_v32 }
 0xa56   : > { %v4107_v5 = vadd.f32 %v3964_v50, %v3936_v35  ;;  %v3940_v44 = vadd.f32 %v3873_v2, %v3769_v40 }
 0xa57   : > { %v4653_v1 = vpop.f32.mrf.mxu3 }
 0xa58   : > { %v4310_v37 = vadd.f32 %v4167_v51, %v4107_v5 }
 0xa5a   : > { %v4513_v46 = vadd.f32 %v4370_v47, %v4310_v37 }
 0xa5c   : > { %v4716_v15 = vadd.f32 %v4573_v27, %v4513_v46  ;;  %v4044_v38 = vpop.f32.mrf.mxu2 }
 0xa5d   : > { %v4111_v49 = vadd.f32 %v4044_v38, %v3940_v44  ;;  %v3933_v14 = vpop.f32.mrf.mxu0  ;;  %v4024_v28 = vpop.f32.mrf.mxu1 }
 0xa5e   : > { %v4729_v62 = vadd.f32 %v6868_v21, %v4716_v15  ;;  %v3943_v41 = vadd.f32 %v3933_v14, %v6858_v45 }
 0xa5f   : > { %v4314_v0 = vadd.f32 %v4247_v4, %v4111_v49  ;;  %v4110_v4 = vadd.f32 %v4024_v28, %v3939_v17 }
 0xa60   : > { %v4737_v8 = vmax.f32 %v4729_v62, 0.0 }
 0xa61   : > { %v4517_v3 = vadd.f32 %v4450_v12, %v4314_v0 }
 0xa62   : > { %4770 = vmatpush.msrb.mxu3 %v4737_v8 }
 0xa63   : > { %v4720_v19 = vadd.f32 %v4653_v1, %v4517_v3  ;;  %5259 = vmatmul.msk.f32.vlgmr.msrb.gmra.mxu3 %vm7105_vm6, %v6874_v25 }
 0xa64   : > { %v4104_v6 = vpop.f32.mrf.mxu2 }
 0xa65   : > { %v4733_v34 = vadd.f32 %v6868_v21, %v4720_v19  ;;  %v4004_v61 = vpop.f32.mrf.mxu0  ;;  %v4084_v20 = vpop.f32.mrf.mxu1  ;;  %v4114_v54 = vadd.f32 %v4104_v6, %v3943_v41 }
 0xa66   : > { %v4109_v22 = vadd.f32 %v4004_v61, %v3938_v24  ;;  %v4113_v11 = vadd.f32 %v4084_v20, %v6860_v31  ;;  %v4750_v19 = vpop.permute.xlu2 %4749 }
 0xa67   : > { %v4741_v52 = vmax.f32 %v4733_v34, 0.0 }
 0xa69   : > { %4850 = vmatpush.msra.mxu3 %v4741_v52 }
 0xa6b   : > { %5263 = vmatmul.msk.f32.vlgmr.msra.gmra.mxu3 %vm7090_vm0, %v6874_v25 }
 0xa6c   : > { %v4227_v39 = vpop.f32.mrf.mxu2 }
 0xa6d   : > { %v4064_v7 = vpop.f32.mrf.mxu0  ;;  %v4207_v43 = vpop.f32.mrf.mxu1  ;;  %v4313_v18 = vadd.f32 %v4227_v39, %v4110_v4 }
 0xa6e   : > { %v4312_v53 = vadd.f32 %v4207_v43, %v4109_v22  ;;  %v4112_v44 = vadd.f32 %v4064_v7, %v6864_v33 }
 0xa74   : > { %v4307_v26 = vpop.f32.mrf.mxu2 }
 0xa75   : > { %v4187_v23 = vpop.f32.mrf.mxu0  ;;  %v4287_v29 = vpop.f32.mrf.mxu1  ;;  %v4317_v24 = vadd.f32 %v4307_v26, %v4114_v54 }
 0xa76   : > { %v4311_v13 = vadd.f32 %v4187_v23, %v4108_v9  ;;  %v4316_v2 = vadd.f32 %v4287_v29, %v4113_v11 }
 0xa7c   : > { %v4430_v56 = vpop.f32.mrf.mxu2 }
 0xa7d   : > { %v4267_v51 = vpop.f32.mrf.mxu0  ;;  %v4410_v63 = vpop.f32.mrf.mxu1  ;;  %v4516_v58 = vadd.f32 %v4430_v56, %v4313_v18 }
 0xa7e   : > { %v4515_v47 = vadd.f32 %v4410_v63, %v4312_v53  ;;  %v4315_v14 = vadd.f32 %v4267_v51, %v4112_v44 }
 0xa84   : > { %v4510_v16 = vpop.f32.mrf.mxu2 }
 0xa85   : > { %v4390_v57 = vpop.f32.mrf.mxu0  ;;  %v4490_v60 = vpop.f32.mrf.mxu1  ;;  %v4520_v5 = vadd.f32 %v4510_v16, %v4317_v24 }
 0xa86   : > { %v4514_v45 = vadd.f32 %v4390_v57, %v4311_v13  ;;  %v4519_v27 = vadd.f32 %v4490_v60, %v4316_v2 }
 0xa8c   : > { %v4633_v59 = vpop.f32.mrf.mxu2 }
 0xa8d   : > { %v4719_v55 = vadd.f32 %v4633_v59, %v4516_v58  ;;  %v4470_v36 = vpop.f32.mrf.mxu0  ;;  %v4613_v42 = vpop.f32.mrf.mxu1 }
 0xa8e   : > { %v4718_v12 = vadd.f32 %v4613_v42, %v4515_v47  ;;  %v4518_v0 = vadd.f32 %v4470_v36, %v4315_v14 }
 0xa8f   : > { %v4732_v48 = vadd.f32 %v6868_v21, %v4719_v55 }
 0xa90   : > { %v4731_v17 = vadd.f32 %v6868_v21, %v4718_v12 }
 0xa91   : > { %v4740_v35 = vmax.f32 %v4732_v48, 0.0 }
 0xa92   : > { %v4739_v50 = vmax.f32 %v4731_v17, 0.0 }
 0xa93   : > { %4830 = vmatpush.msra.mxu2 %v4740_v35 }
 0xa94   : > { %v4713_v10 = vpop.f32.mrf.mxu2  ;;  %5262 = vmatmul.msk.f32.vlgmr.msra.gmra.mxu2 %vm7106_vm2, %v6874_v25  ;;  %4810 = vmatpush.msra.mxu1 %v4739_v50 }
 0xa95   : > { %v4723_v37 = vadd.f32 %v4713_v10, %v4520_v5  ;;  %v4593_v32 = vpop.f32.mrf.mxu0  ;;  %v4693_v30 = vpop.f32.mrf.mxu1  ;;  %5261 = vmatmul.msk.f32.vlgmr.msra.gmra.mxu1 %vm7107_vm5, %v6874_v25 }
 0xa96   : > { %v4717_v31 = vadd.f32 %v4593_v32, %v4514_v45  ;;  %v4722_v40 = vadd.f32 %v4693_v30, %v4519_v27 }
 0xa97   : > { %v4736_v46 = vadd.f32 %v6868_v21, %v4723_v37 }
 0xa98   : > { %v4730_v15 = vadd.f32 %v6868_v21, %v4717_v31  ;;  %v4735_v38 = vadd.f32 %v6868_v21, %v4722_v40 }
 0xa99   : > { %v4744_v49 = vmax.f32 %v4736_v46, 0.0 }
 0xa9a   : > { %v4738_v28 = vmax.f32 %v4730_v15, 0.0  ;;  %v4743_v62 = vmax.f32 %v4735_v38, 0.0 }
 0xa9b   : > { %4910 = vmatpush.msrb.mxu2 %v4744_v49 }
 0xa9c   : > { %5266 = vmatmul.msk.f32.vlgmr.msrb.gmra.mxu2 %vm7108_vm7, %v6874_v25  ;;  %4790 = vmatpush.msra.mxu0 %v4738_v28 }
 0xa9d   : > { %4890 = vmatpush.msrb.mxu1 %v4743_v62  ;;  %v4673_v1 = vpop.f32.mrf.mxu0  ;;  %5260 = vmatmul.msk.f32.vlgmr.msra.gmra.mxu0 %vm7109_vm15, %v6874_v25 }
 0xa9e   : > { %v4721_v33 = vadd.f32 %v4673_v1, %v4518_v0  ;;  %5265 = vmatmul.msk.f32.vlgmr.msrb.gmra.mxu1 %vm7110_vm11, %v6874_v25 }
 0xaa0   : > { %v4734_v8 = vadd.f32 %v6868_v21, %v4721_v33 }
 0xaa2   : > { %v4742_v3 = vmax.f32 %v4734_v8, 0.0 }
 0xaa4   : > { %4870 = vmatpush.msrb.mxu0 %v4742_v3 }
 0xaa5   : > { %5264 = vmatmul.msk.f32.vlgmr.msrb.gmra.mxu0 %vm7111_vm4, %v6874_v25 }
 0xae6   : > { %v4772_v6 = vpop.f32.mrf.mxu3 }
 0xae7   : > { %v4773_v34 = vadd.f32 %v4772_v6, %v4750_v19 }
 0xae9   : > { %4915 = vst [vmem:[%s376_s16] sm:$0x1f] %v4773_v34 }
 0xaee   : > { %v4852_v61 = vpop.f32.mrf.mxu3 }
 0xaef   : > { %v4853_v20 = vadd.f32 %v4852_v61, %v4750_v19 }
 0xaf1   : > { %4919 = vst [vmem:[%s376_s16 + $0x20] sm:$0x1f] %v4853_v20 }
 0xb12   : > { %v4812_v52 = vpop.f32.mrf.mxu1 }
 0xb13   : > { %v4813_v39 = vadd.f32 %v4812_v52, %v4750_v19 }
 0xb15   : > { %4917 = vst [vmem:[%s376_s16 + $0x10] sm:$0x1f] %v4813_v39 }
 0xb17   : > { %v4832_v21 = vpop.f32.mrf.mxu2 }
 0xb18   : > { %v4833_v7 = vadd.f32 %v4832_v21, %v4750_v19 }
 0xb1a   : > { %4918 = vst [vmem:[%s376_s16 + $0x18] sm:$0x1f] %v4833_v7  ;;  %v4792_v43 = vpop.f32.mrf.mxu0 }
 0xb1b   : > { %v4793_v25 = vadd.f32 %v4792_v43, %v4750_v19  ;;  %v4892_v26 = vpop.f32.mrf.mxu1 }
 0xb1c   : > { %v4893_v23 = vadd.f32 %v4892_v26, %v4750_v19 }
 0xb1d   : > { %4916 = vst [vmem:[%s376_s16 + $0x8] sm:$0x1f] %v4793_v25 }
 0xb1e   : > { %4921 = vst [vmem:[%s376_s16 + $0x30] sm:$0x1f] %v4893_v23 }
 0xb1f   : > { %v4912_v29 = vpop.f32.mrf.mxu2 }
 0xb20   : > { %v4913_v56 = vadd.f32 %v4912_v29, %v4750_v19 }
 0xb22   : > { %4922 = vst [vmem:[%s376_s16 + $0x38] sm:$0x1f] %v4913_v56  ;;  %v4872_v51 = vpop.f32.mrf.mxu0 }
 0xb23   : > { %v4873_v63 = vadd.f32 %v4872_v51, %v4750_v19 }
 0xb25   : > { %4920 = vst [vmem:[%s376_s16 + $0x28] sm:$0x1f] %v4873_v63 }
 0xb26 PF: > { %s20_s13 = sadd.s32 1, %s5408_s13  }
 0xb27   : > { %p17_p4 = scmp.ge.s32.totalorder %s20_s13, 4  }
 0xb29   :  { %19 = sbr.rel (!%p17_p4) target bundleno = 1 (0x1), region = 99 }

</bundles_post_ra>
